<compile_context>
chip_gen: v6e
topology: v6e:2x2x1
jax: 0.10.0
libtpu: 0.0.40
codegen_flags: <defaults>
</compile_context>

<pallas_src>
import jax
import jax.numpy as jnp
from jax import lax
from jax.experimental import pallas as pl
from jax.experimental.pallas import tpu as pltpu

LANES = 128                      # TPU lane width; all kernel outputs padded to this (lane-dense vst)
VMEM_LIMIT = 32 * 1024 * 1024    # explicit scoped-VMEM cap; tiles below use only a few MiB
                                 # (comfortably inside v7x's 64 MiB physical VMEM)


def _round_up(n, m):
    return ((n + m - 1) // m) * m


# ----------------------------------------------------------------------------
# Pallas kernels
# ----------------------------------------------------------------------------
def conv_pool_relu_kernel(p_ref, w_ref, b_ref, o_ref):
    """Fused im2col-conv + 2x2 max-pool + bias + ReLU for one row tile.

    p_ref: [4, T, Kpad] bf16 -- 4 pool-offset patch matrices, rows (b,i,j), cols (kh,kw,c)
    w_ref: [Kpad, 128]  bf16 -- zero-padded (kh,kw,c) x OC weight (resident across grid)
    b_ref: [1, 128]     f32  -- zero-padded bias
    o_ref: [T, 128]     bf16 -- lane-dense pooled/ReLU'd activations (first OC lanes valid)
    """
    t = p_ref.shape[1]
    kpad = p_ref.shape[2]
    # Single large MXU matmul over all 4 pool offsets (better M-dim utilization than 4 skinny dots).
    y = jnp.dot(p_ref[...].reshape(4 * t, kpad), w_ref[...],
                preferred_element_type=jnp.float32)                  # [4*T, 128] f32
    # maxpool(relu(conv + b)) == relu(max(conv) + b): bias added once, after the 4-way max.
    m = jnp.maximum(jnp.maximum(y[0:t], y[t:2 * t]),
                    jnp.maximum(y[2 * t:3 * t], y[3 * t:4 * t]))     # [T, 128] f32
    o_ref[...] = jnp.maximum(m + b_ref[...], 0.0).astype(o_ref.dtype)


def mlp_kernel(x_ref, w1_ref, b1_ref, w2_ref, b2_ref, w3_ref, b3_ref, o_ref):
    """fc1+ReLU -> fc2+ReLU -> fc3; widths zero-padded to 128 lanes; fp32 accumulate/epilogue."""
    h = jnp.dot(x_ref[...], w1_ref[...], preferred_element_type=jnp.float32) + b1_ref[...]
    h = jnp.maximum(h, 0.0).astype(jnp.bfloat16)
    h = jnp.dot(h, w2_ref[...], preferred_element_type=jnp.float32) + b2_ref[...]
    h = jnp.maximum(h, 0.0).astype(jnp.bfloat16)
    o_ref[...] = jnp.dot(h, w3_ref[...], preferred_element_type=jnp.float32) + b3_ref[...]


# ----------------------------------------------------------------------------
# Wrappers (pallas_call with row-tiled grids)
# ----------------------------------------------------------------------------
def conv_pool_relu(x_nhwc, w_oihw, b, *, k, ph, pw, tile_rows=1024):
    """conv(k x k, VALID) + ReLU + 2x2 maxpool on NHWC input. Returns [B*ph*pw, OC] bf16."""
    B, H, W, C = x_nhwc.shape
    OC = w_oihw.shape[0]
    K = k * k * C
    Kpad = _round_up(K, LANES)
    N = B * ph * pw
    tile = min(tile_rows, _round_up(N, 8))
    Npad = _round_up(N, tile)

    # im2col (plain-JAX layout glue): 4 pool-offset patch matrices stacked on a leading axis.
    # Rows ordered (b, i, j); columns ordered (kh, kw, c) to match the NHWC weight flatten.
    offs = []
    for di in (0, 1):
        for dj in (0, 1):
            cols = [x_nhwc[:, di + kh: di + kh + 2 * ph: 2,
                              dj + kw: dj + kw + 2 * pw: 2, :]
                    for kh in range(k) for kw in range(k)]
            offs.append(jnp.stack(cols, axis=3).reshape(N, K))       # [N, k*k*C]
    P = jnp.stack(offs, axis=0)                                      # [4, N, K]
    P = jnp.pad(P, ((0, 0), (0, Npad - N), (0, Kpad - K))).astype(jnp.bfloat16)

    Wm = jnp.transpose(w_oihw, (2, 3, 1, 0)).reshape(K, OC)          # cols (kh,kw,c) x OC
    Wm = jnp.pad(Wm, ((0, Kpad - K), (0, LANES - OC))).astype(jnp.bfloat16)
    bm = jnp.pad(b.reshape(1, OC), ((0, 0), (0, LANES - OC))).astype(jnp.float32)

    grid = (Npad // tile,)
    flops = 2 * 4 * Npad * Kpad * LANES
    bytes_accessed = P.size * 2 + Wm.size * 2 + bm.size * 4 + Npad * LANES * 2

    out = pl.pallas_call(
        conv_pool_relu_kernel,
        out_shape=jax.ShapeDtypeStruct((Npad, LANES), jnp.bfloat16),
        grid_spec=pltpu.PrefetchScalarGridSpec(
            num_scalar_prefetch=0,
            grid=grid,
            in_specs=[pl.BlockSpec((4, tile, Kpad), lambda i: (0, i, 0)),
                      pl.BlockSpec((Kpad, LANES), lambda i: (0, 0)),
                      pl.BlockSpec((1, LANES), lambda i: (0, 0))],
            out_specs=pl.BlockSpec((tile, LANES), lambda i: (i, 0)),
        ),
        compiler_params=pltpu.CompilerParams(
            dimension_semantics=("parallel",),
            vmem_limit_bytes=VMEM_LIMIT,
        ),
        cost_estimate=pl.CostEstimate(flops=int(flops), transcendentals=0,
                                      bytes_accessed=int(bytes_accessed)),
    )(P, Wm, bm)
    return out[:N, :OC]                                              # drop row/lane padding in XLA


def mlp(x, w1, b1, w2, b2, w3, b3, *, tile_rows=512):
    """fc1+ReLU -> fc2+ReLU -> fc3 on [B, D] input; returns [B, num_classes] fp32."""
    B, D = x.shape
    oc = w3.shape[1]
    tile = min(tile_rows, _round_up(B, 8))
    Bpad = _round_up(B, tile)

    def pad2(a, rows, cols, dtype):
        return jnp.pad(a, ((0, rows - a.shape[0]), (0, cols - a.shape[1]))).astype(dtype)

    xb = pad2(x, Bpad, D, jnp.bfloat16)
    w1p = pad2(w1, D, LANES, jnp.bfloat16)          # [400, 128]
    w2p = pad2(w2, LANES, LANES, jnp.bfloat16)      # [128, 128]
    w3p = pad2(w3, LANES, LANES, jnp.bfloat16)      # [128, 128]
    b1p = pad2(b1.reshape(1, -1), 1, LANES, jnp.float32)
    b2p = pad2(b2.reshape(1, -1), 1, LANES, jnp.float32)
    b3p = pad2(b3.reshape(1, -1), 1, LANES, jnp.float32)

    grid = (Bpad // tile,)
    flops = 2 * Bpad * (D * LANES + LANES * LANES + LANES * LANES)
    bytes_accessed = ((xb.size + w1p.size + w2p.size + w3p.size) * 2
                      + (b1p.size + b2p.size + b3p.size + Bpad * LANES) * 4)

    out = pl.pallas_call(
        mlp_kernel,
        out_shape=jax.ShapeDtypeStruct((Bpad, LANES), jnp.float32),
        grid_spec=pltpu.PrefetchScalarGridSpec(
            num_scalar_prefetch=0,
            grid=grid,
            in_specs=[pl.BlockSpec((tile, D), lambda i: (i, 0)),
                      pl.BlockSpec((D, LANES), lambda i: (0, 0)),
                      pl.BlockSpec((1, LANES), lambda i: (0, 0)),
                      pl.BlockSpec((LANES, LANES), lambda i: (0, 0)),
                      pl.BlockSpec((1, LANES), lambda i: (0, 0)),
                      pl.BlockSpec((LANES, LANES), lambda i: (0, 0)),
                      pl.BlockSpec((1, LANES), lambda i: (0, 0))],
            out_specs=pl.BlockSpec((tile, LANES), lambda i: (i, 0)),
        ),
        compiler_params=pltpu.CompilerParams(
            dimension_semantics=("parallel",),
            vmem_limit_bytes=VMEM_LIMIT,
        ),
        cost_estimate=pl.CostEstimate(flops=int(flops), transcendentals=0,
                                      bytes_accessed=int(bytes_accessed)),
    )(xb, w1p, b1p, w2p, b2p, w3p, b3p)
    return out[:B, :oc]


# ----------------------------------------------------------------------------
# Forward pass (equivalent to PyTorch Net.forward)
# ----------------------------------------------------------------------------
def net_forward(params, x):
    c1w, c1b, c2w, c2b, f1w, f1b, f2w, f2b, f3w, f3b = params
    B = x.shape[0]

    # NHWC internally (single transpose at the boundary, no NCHW round trips between layers).
    x_nhwc = jnp.transpose(x, (0, 2, 3, 1))                          # [B, 32, 32, 3]

    # conv1 (3->6, 5x5) + ReLU + maxpool(2,2): -> [B, 14, 14, 6]
    a1 = conv_pool_relu(x_nhwc, c1w, c1b, k=5, ph=14, pw=14)         # [B*196, 6] bf16
    a1 = a1.reshape(B, 14, 14, 6)

    # conv2 (6->16, 5x5) + ReLU + maxpool(2,2): -> [B*25, 16]
    a2 = conv_pool_relu(a1, c2w, c2b, k=5, ph=5, pw=5)               # [B*25, 16] bf16

    # Flatten in (h, w, c) order; permute fc1's columns (PyTorch flattens (c, h, w)) so no
    # activation transpose is needed.
    flat = a2.reshape(B, 16 * 5 * 5)                                 # [B, 400], (h, w, c) order
    oc2 = c2w.shape[0]
    w1 = jnp.transpose(f1w.reshape(f1w.shape[0], oc2, 5, 5),
                       (0, 2, 3, 1)).reshape(f1w.shape[0], -1).T     # [400, 120], rows (h, w, c)

    return mlp(flat, w1, f1b, f2w.T, f2b, f3w.T, f3b)                # [B, 10]


# ----------------------------------------------------------------------------
# Pure-JAX reference (mirrors the PyTorch module exactly)
# ----------------------------------------------------------------------------
def net_reference(params, x):
    c1w, c1b, c2w, c2b, f1w, f1b, f2w, f2b, f3w, f3b = params

    def conv(a, w, b):
        y = lax.conv_general_dilated(a, w, (1, 1), "VALID",
                                     dimension_numbers=("NCHW", "OIHW", "NCHW"))
        return y + b.reshape(1, -1, 1, 1)

    def pool(a):
        return lax.reduce_window(a, -jnp.inf, lax.max, (1, 1, 2, 2), (1, 1, 2, 2), "VALID")

    a = pool(jnp.maximum(conv(x, c1w, c1b), 0.0))
    a = pool(jnp.maximum(conv(a, c2w, c2b), 0.0))
    a = a.reshape(x.shape[0], -1)
    a = jnp.maximum(a @ f1w.T + f1b, 0.0)
    a = jnp.maximum(a @ f2w.T + f2b, 0.0)
    return a @ f3w.T + f3b


# ----------------------------------------------------------------------------
# Deterministic parameter init (PyTorch-style shapes and fan-in bounds)
# ----------------------------------------------------------------------------
def init_params(key):
    ks = jax.random.split(key, 10)

    def u(k, shape, fan_in):
        bound = 1.0 / jnp.sqrt(jnp.float32(fan_in))
        return jax.random.uniform(k, shape, jnp.float32, -bound, bound)

    c1w = u(ks[0], (6, 3, 5, 5), 3 * 25)
    c1b = u(ks[1], (6,), 3 * 25)
    c2w = u(ks[2], (16, 6, 5, 5), 6 * 25)
    c2b = u(ks[3], (16,), 6 * 25)
    f1w = u(ks[4], (120, 400), 400)
    f1b = u(ks[5], (120,), 400)
    f2w = u(ks[6], (84, 120), 120)
    f2b = u(ks[7], (84,), 120)
    f3w = u(ks[8], (10, 84), 84)
    f3b = u(ks[9], (10,), 84)
    return (c1w, c1b, c2w, c2b, f1w, f1b, f2w, f2b, f3w, f3b)


if __name__ == "__main__":
    key = jax.random.PRNGKey(0)
    pkey, xkey = jax.random.split(key)
    params = init_params(pkey)
    # CIFAR-10 sized input (32x32 spatial is required by the fc1 = 16*5*5 flatten).
    x = jax.random.normal(xkey, (4, 3, 32, 32), jnp.float32)

    out = jax.block_until_ready(jax.jit(net_forward)(params, x))
    assert out.shape == (4, 10)

    ref = net_reference(params, x)
    max_err = float(jnp.max(jnp.abs(out - ref)))
    assert jnp.allclose(out, ref, atol=2.5e-2, rtol=2.5e-2), max_err

    print("KERNEL_OK")
</pallas_src>

<mosaic_0001>
module attributes {stable_mosaic.version = 11 : i64} {
  func.func @conv_pool_relu_kernel(%arg0: i32, %arg1: memref<4x784x128xbf16, #tpu.memory_space<vmem>>, %arg2: memref<128x128xbf16, #tpu.memory_space<vmem>>, %arg3: memref<1x128xf32, #tpu.memory_space<vmem>>, %arg4: memref<784x128xbf16, #tpu.memory_space<vmem>>) attributes {dimension_semantics = [#tpu.dimension_semantics<parallel>], iteration_bounds = array<i64: 1>, scalar_prefetch = 0 : i64, scratch_operands = 0 : i64, tpu.core_type = #tpu.core_type<tc>, window_params = [{transform_indices = @transform_0, window_bounds = array<i64: 4, 784, 128>}, {pipeline_mode = #tpu.pipeline_mode<synchronous>, transform_indices = @transform_1, window_bounds = array<i64: 128, 128>}, {pipeline_mode = #tpu.pipeline_mode<synchronous>, transform_indices = @transform_2, window_bounds = array<i64: 1, 128>}, {transform_indices = @transform_3, window_bounds = array<i64: 784, 128>}]} {
    %c0 = arith.constant 0 : index
    %c0_0 = arith.constant 0 : index
    %c0_1 = arith.constant 0 : index
    %0 = vector.load %arg1[%c0, %c0_0, %c0_1] : memref<4x784x128xbf16, #tpu.memory_space<vmem>>, vector<4x784x128xbf16>
    %1 = vector.shape_cast %0 : vector<4x784x128xbf16> to vector<3136x128xbf16>
    %c0_2 = arith.constant 0 : index
    %c0_3 = arith.constant 0 : index
    %2 = vector.load %arg2[%c0_2, %c0_3] : memref<128x128xbf16, #tpu.memory_space<vmem>>, vector<128x128xbf16>
    %cst = arith.constant dense<0.000000e+00> : vector<3136x128xf32>
    %3 = tpu.matmul %1, %2, %cst {dimension_numbers = #tpu.dot_dimension_numbers<[1], [0], [0], [1], [0, 0, 1, 1], [], []>} : vector<3136x128xbf16>, vector<128x128xbf16>, vector<3136x128xf32> -> vector<3136x128xf32>
    %4 = vector.extract_strided_slice %3 {offsets = [0, 0], sizes = [784, 128], strides = [1, 1]} : vector<3136x128xf32> to vector<784x128xf32>
    %5 = vector.extract_strided_slice %3 {offsets = [784, 0], sizes = [784, 128], strides = [1, 1]} : vector<3136x128xf32> to vector<784x128xf32>
    %6 = arith.maximumf %4, %5 : vector<784x128xf32>
    %7 = vector.extract_strided_slice %3 {offsets = [1568, 0], sizes = [784, 128], strides = [1, 1]} : vector<3136x128xf32> to vector<784x128xf32>
    %8 = vector.extract_strided_slice %3 {offsets = [2352, 0], sizes = [784, 128], strides = [1, 1]} : vector<3136x128xf32> to vector<784x128xf32>
    %9 = arith.maximumf %7, %8 : vector<784x128xf32>
    %10 = arith.maximumf %6, %9 : vector<784x128xf32>
    %c0_4 = arith.constant 0 : index
    %c0_5 = arith.constant 0 : index
    %11 = vector.load %arg3[%c0_4, %c0_5] : memref<1x128xf32, #tpu.memory_space<vmem>>, vector<1x128xf32>
    %12 = vector.broadcast %11 : vector<1x128xf32> to vector<784x128xf32>
    %13 = arith.addf %10, %12 : vector<784x128xf32>
    %cst_6 = arith.constant 0.000000e+00 : f32
    %14 = vector.broadcast %cst_6 : f32 to vector<784x128xf32>
    %15 = arith.maximumf %13, %14 : vector<784x128xf32>
    %16 = arith.truncf %15 : vector<784x128xf32> to vector<784x128xbf16>
    %c0_7 = arith.constant 0 : index
    %c0_8 = arith.constant 0 : index
    %17 = vector.load %arg4[%c0_7, %c0_8] : memref<784x128xbf16, #tpu.memory_space<vmem>>, vector<784x128xbf16>
    tpu.vector_store %arg4[%c0_7, %c0_8], %16 {strides = array<i32>} : memref<784x128xbf16, #tpu.memory_space<vmem>>, vector<784x128xbf16>,
    return
  }
  func.func @transform_0(%arg0: i32) -> (i32, i32, i32) {
    %c0_i32 = arith.constant 0 : i32
    %c0_i32_0 = arith.constant 0 : i32
    %c0_i32_1 = arith.constant 0 : i32
    return %c0_i32, %arg0, %c0_i32_0 : i32, i32, i32
  }
  func.func @transform_1(%arg0: i32) -> (i32, i32) {
    %c0_i32 = arith.constant 0 : i32
    %c0_i32_0 = arith.constant 0 : i32
    %c0_i32_1 = arith.constant 0 : i32
    return %c0_i32, %c0_i32_0 : i32, i32
  }
  func.func @transform_2(%arg0: i32) -> (i32, i32) {
    %c0_i32 = arith.constant 0 : i32
    %c0_i32_0 = arith.constant 0 : i32
    %c0_i32_1 = arith.constant 0 : i32
    return %c0_i32, %c0_i32_0 : i32, i32
  }
  func.func @transform_3(%arg0: i32) -> (i32, i32) {
    %c0_i32 = arith.constant 0 : i32
    %c0_i32_0 = arith.constant 0 : i32
    return %arg0, %c0_i32 : i32, i32
  }
}

module attributes {stable_mosaic.version = 11 : i64} {
  func.func @conv_pool_relu_kernel(%arg0: i32, %arg1: memref<4x104x256xbf16, #tpu.memory_space<vmem>>, %arg2: memref<256x128xbf16, #tpu.memory_space<vmem>>, %arg3: memref<1x128xf32, #tpu.memory_space<vmem>>, %arg4: memref<104x128xbf16, #tpu.memory_space<vmem>>) attributes {dimension_semantics = [#tpu.dimension_semantics<parallel>], iteration_bounds = array<i64: 1>, scalar_prefetch = 0 : i64, scratch_operands = 0 : i64, tpu.core_type = #tpu.core_type<tc>, window_params = [{transform_indices = @transform_0, window_bounds = array<i64: 4, 104, 256>}, {pipeline_mode = #tpu.pipeline_mode<synchronous>, transform_indices = @transform_1, window_bounds = array<i64: 256, 128>}, {pipeline_mode = #tpu.pipeline_mode<synchronous>, transform_indices = @transform_2, window_bounds = array<i64: 1, 128>}, {transform_indices = @transform_3, window_bounds = array<i64: 104, 128>}]} {
    %c0 = arith.constant 0 : index
    %c0_0 = arith.constant 0 : index
    %c0_1 = arith.constant 0 : index
    %0 = vector.load %arg1[%c0, %c0_0, %c0_1] : memref<4x104x256xbf16, #tpu.memory_space<vmem>>, vector<4x104x256xbf16>
    %1 = vector.shape_cast %0 : vector<4x104x256xbf16> to vector<416x256xbf16>
    %c0_2 = arith.constant 0 : index
    %c0_3 = arith.constant 0 : index
    %2 = vector.load %arg2[%c0_2, %c0_3] : memref<256x128xbf16, #tpu.memory_space<vmem>>, vector<256x128xbf16>
    %cst = arith.constant dense<0.000000e+00> : vector<416x128xf32>
    %3 = tpu.matmul %1, %2, %cst {dimension_numbers = #tpu.dot_dimension_numbers<[1], [0], [0], [1], [0, 0, 1, 1], [], []>} : vector<416x256xbf16>, vector<256x128xbf16>, vector<416x128xf32> -> vector<416x128xf32>
    %4 = vector.extract_strided_slice %3 {offsets = [0, 0], sizes = [104, 128], strides = [1, 1]} : vector<416x128xf32> to vector<104x128xf32>
    %5 = vector.extract_strided_slice %3 {offsets = [104, 0], sizes = [104, 128], strides = [1, 1]} : vector<416x128xf32> to vector<104x128xf32>
    %6 = arith.maximumf %4, %5 : vector<104x128xf32>
    %7 = vector.extract_strided_slice %3 {offsets = [208, 0], sizes = [104, 128], strides = [1, 1]} : vector<416x128xf32> to vector<104x128xf32>
    %8 = vector.extract_strided_slice %3 {offsets = [312, 0], sizes = [104, 128], strides = [1, 1]} : vector<416x128xf32> to vector<104x128xf32>
    %9 = arith.maximumf %7, %8 : vector<104x128xf32>
    %10 = arith.maximumf %6, %9 : vector<104x128xf32>
    %c0_4 = arith.constant 0 : index
    %c0_5 = arith.constant 0 : index
    %11 = vector.load %arg3[%c0_4, %c0_5] : memref<1x128xf32, #tpu.memory_space<vmem>>, vector<1x128xf32>
    %12 = vector.broadcast %11 : vector<1x128xf32> to vector<104x128xf32>
    %13 = arith.addf %10, %12 : vector<104x128xf32>
    %cst_6 = arith.constant 0.000000e+00 : f32
    %14 = vector.broadcast %cst_6 : f32 to vector<104x128xf32>
    %15 = arith.maximumf %13, %14 : vector<104x128xf32>
    %16 = arith.truncf %15 : vector<104x128xf32> to vector<104x128xbf16>
    %c0_7 = arith.constant 0 : index
    %c0_8 = arith.constant 0 : index
    %17 = vector.load %arg4[%c0_7, %c0_8] : memref<104x128xbf16, #tpu.memory_space<vmem>>, vector<104x128xbf16>
    tpu.vector_store %arg4[%c0_7, %c0_8], %16 {strides = array<i32>} : memref<104x128xbf16, #tpu.memory_space<vmem>>, vector<104x128xbf16>,
    return
  }
  func.func @transform_0(%arg0: i32) -> (i32, i32, i32) {
    %c0_i32 = arith.constant 0 : i32
    %c0_i32_0 = arith.constant 0 : i32
    %c0_i32_1 = arith.constant 0 : i32
    return %c0_i32, %arg0, %c0_i32_0 : i32, i32, i32
  }
  func.func @transform_1(%arg0: i32) -> (i32, i32) {
    %c0_i32 = arith.constant 0 : i32
    %c0_i32_0 = arith.constant 0 : i32
    %c0_i32_1 = arith.constant 0 : i32
    return %c0_i32, %c0_i32_0 : i32, i32
  }
  func.func @transform_2(%arg0: i32) -> (i32, i32) {
    %c0_i32 = arith.constant 0 : i32
    %c0_i32_0 = arith.constant 0 : i32
    %c0_i32_1 = arith.constant 0 : i32
    return %c0_i32, %c0_i32_0 : i32, i32
  }
  func.func @transform_3(%arg0: i32) -> (i32, i32) {
    %c0_i32 = arith.constant 0 : i32
    %c0_i32_0 = arith.constant 0 : i32
    return %arg0, %c0_i32 : i32, i32
  }
}

module attributes {stable_mosaic.version = 11 : i64} {
  func.func @mlp_kernel(%arg0: i32, %arg1: memref<8x400xbf16, #tpu.memory_space<vmem>>, %arg2: memref<400x128xbf16, #tpu.memory_space<vmem>>, %arg3: memref<1x128xf32, #tpu.memory_space<vmem>>, %arg4: memref<128x128xbf16, #tpu.memory_space<vmem>>, %arg5: memref<1x128xf32, #tpu.memory_space<vmem>>, %arg6: memref<128x128xbf16, #tpu.memory_space<vmem>>, %arg7: memref<1x128xf32, #tpu.memory_space<vmem>>, %arg8: memref<8x128xf32, #tpu.memory_space<vmem>>) attributes {dimension_semantics = [#tpu.dimension_semantics<parallel>], iteration_bounds = array<i64: 1>, scalar_prefetch = 0 : i64, scratch_operands = 0 : i64, tpu.core_type = #tpu.core_type<tc>, window_params = [{transform_indices = @transform_0, window_bounds = array<i64: 8, 400>}, {pipeline_mode = #tpu.pipeline_mode<synchronous>, transform_indices = @transform_1, window_bounds = array<i64: 400, 128>}, {pipeline_mode = #tpu.pipeline_mode<synchronous>, transform_indices = @transform_2, window_bounds = array<i64: 1, 128>}, {pipeline_mode = #tpu.pipeline_mode<synchronous>, transform_indices = @transform_3, window_bounds = array<i64: 128, 128>}, {pipeline_mode = #tpu.pipeline_mode<synchronous>, transform_indices = @transform_4, window_bounds = array<i64: 1, 128>}, {pipeline_mode = #tpu.pipeline_mode<synchronous>, transform_indices = @transform_5, window_bounds = array<i64: 128, 128>}, {pipeline_mode = #tpu.pipeline_mode<synchronous>, transform_indices = @transform_6, window_bounds = array<i64: 1, 128>}, {transform_indices = @transform_7, window_bounds = array<i64: 8, 128>}]} {
    %c0 = arith.constant 0 : index
    %c0_0 = arith.constant 0 : index
    %0 = vector.load %arg1[%c0, %c0_0] : memref<8x400xbf16, #tpu.memory_space<vmem>>, vector<8x400xbf16>
    %c0_1 = arith.constant 0 : index
    %c0_2 = arith.constant 0 : index
    %1 = vector.load %arg2[%c0_1, %c0_2] : memref<400x128xbf16, #tpu.memory_space<vmem>>, vector<400x128xbf16>
    %cst = arith.constant dense<0.000000e+00> : vector<8x128xf32>
    %2 = tpu.matmul %0, %1, %cst {dimension_numbers = #tpu.dot_dimension_numbers<[1], [0], [0], [1], [0, 0, 1, 1], [], []>} : vector<8x400xbf16>, vector<400x128xbf16>, vector<8x128xf32> -> vector<8x128xf32>
    %c0_3 = arith.constant 0 : index
    %c0_4 = arith.constant 0 : index
    %3 = vector.load %arg3[%c0_3, %c0_4] : memref<1x128xf32, #tpu.memory_space<vmem>>, vector<1x128xf32>
    %4 = vector.broadcast %3 : vector<1x128xf32> to vector<8x128xf32>
    %5 = arith.addf %2, %4 : vector<8x128xf32>
    %cst_5 = arith.constant 0.000000e+00 : f32
    %6 = vector.broadcast %cst_5 : f32 to vector<8x128xf32>
    %7 = arith.maximumf %5, %6 : vector<8x128xf32>
    %8 = arith.truncf %7 : vector<8x128xf32> to vector<8x128xbf16>
    %c0_6 = arith.constant 0 : index
    %c0_7 = arith.constant 0 : index
    %9 = vector.load %arg4[%c0_6, %c0_7] : memref<128x128xbf16, #tpu.memory_space<vmem>>, vector<128x128xbf16>
    %cst_8 = arith.constant dense<0.000000e+00> : vector<8x128xf32>
    %10 = tpu.matmul %8, %9, %cst_8 {dimension_numbers = #tpu.dot_dimension_numbers<[1], [0], [0], [1], [0, 0, 1, 1], [], []>} : vector<8x128xbf16>, vector<128x128xbf16>, vector<8x128xf32> -> vector<8x128xf32>
    %c0_9 = arith.constant 0 : index
    %c0_10 = arith.constant 0 : index
    %11 = vector.load %arg5[%c0_9, %c0_10] : memref<1x128xf32, #tpu.memory_space<vmem>>, vector<1x128xf32>
    %12 = vector.broadcast %11 : vector<1x128xf32> to vector<8x128xf32>
    %13 = arith.addf %10, %12 : vector<8x128xf32>
    %cst_11 = arith.constant 0.000000e+00 : f32
    %14 = vector.broadcast %cst_11 : f32 to vector<8x128xf32>
    %15 = arith.maximumf %13, %14 : vector<8x128xf32>
    %16 = arith.truncf %15 : vector<8x128xf32> to vector<8x128xbf16>
    %c0_12 = arith.constant 0 : index
    %c0_13 = arith.constant 0 : index
    %17 = vector.load %arg6[%c0_12, %c0_13] : memref<128x128xbf16, #tpu.memory_space<vmem>>, vector<128x128xbf16>
    %cst_14 = arith.constant dense<0.000000e+00> : vector<8x128xf32>
    %18 = tpu.matmul %16, %17, %cst_14 {dimension_numbers = #tpu.dot_dimension_numbers<[1], [0], [0], [1], [0, 0, 1, 1], [], []>} : vector<8x128xbf16>, vector<128x128xbf16>, vector<8x128xf32> -> vector<8x128xf32>
    %c0_15 = arith.constant 0 : index
    %c0_16 = arith.constant 0 : index
    %19 = vector.load %arg7[%c0_15, %c0_16] : memref<1x128xf32, #tpu.memory_space<vmem>>, vector<1x128xf32>
    %20 = vector.broadcast %19 : vector<1x128xf32> to vector<8x128xf32>
    %21 = arith.addf %18, %20 : vector<8x128xf32>
    %c0_17 = arith.constant 0 : index
    %c0_18 = arith.constant 0 : index
    %22 = vector.load %arg8[%c0_17, %c0_18] : memref<8x128xf32, #tpu.memory_space<vmem>>, vector<8x128xf32>
    tpu.vector_store %arg8[%c0_17, %c0_18], %21 {strides = array<i32>} : memref<8x128xf32, #tpu.memory_space<vmem>>, vector<8x128xf32>,
    return
  }
  func.func @transform_0(%arg0: i32) -> (i32, i32) {
    %c0_i32 = arith.constant 0 : i32
    %c0_i32_0 = arith.constant 0 : i32
    return %arg0, %c0_i32 : i32, i32
  }
  func.func @transform_1(%arg0: i32) -> (i32, i32) {
    %c0_i32 = arith.constant 0 : i32
    %c0_i32_0 = arith.constant 0 : i32
    %c0_i32_1 = arith.constant 0 : i32
    return %c0_i32, %c0_i32_0 : i32, i32
  }
  func.func @transform_2(%arg0: i32) -> (i32, i32) {
    %c0_i32 = arith.constant 0 : i32
    %c0_i32_0 = arith.constant 0 : i32
    %c0_i32_1 = arith.constant 0 : i32
    return %c0_i32, %c0_i32_0 : i32, i32
  }
  func.func @transform_3(%arg0: i32) -> (i32, i32) {
    %c0_i32 = arith.constant 0 : i32
    %c0_i32_0 = arith.constant 0 : i32
    %c0_i32_1 = arith.constant 0 : i32
    return %c0_i32, %c0_i32_0 : i32, i32
  }
  func.func @transform_4(%arg0: i32) -> (i32, i32) {
    %c0_i32 = arith.constant 0 : i32
    %c0_i32_0 = arith.constant 0 : i32
    %c0_i32_1 = arith.constant 0 : i32
    return %c0_i32, %c0_i32_0 : i32, i32
  }
  func.func @transform_5(%arg0: i32) -> (i32, i32) {
    %c0_i32 = arith.constant 0 : i32
    %c0_i32_0 = arith.constant 0 : i32
    %c0_i32_1 = arith.constant 0 : i32
    return %c0_i32, %c0_i32_0 : i32, i32
  }
  func.func @transform_6(%arg0: i32) -> (i32, i32) {
    %c0_i32 = arith.constant 0 : i32
    %c0_i32_0 = arith.constant 0 : i32
    %c0_i32_1 = arith.constant 0 : i32
    return %c0_i32, %c0_i32_0 : i32, i32
  }
  func.func @transform_7(%arg0: i32) -> (i32, i32) {
    %c0_i32 = arith.constant 0 : i32
    %c0_i32_0 = arith.constant 0 : i32
    return %arg0, %c0_i32 : i32, i32
  }
}

</mosaic_0001>

<bundles_post_ra>
// kernel: net_forward.3
= control target key start
LH: loop header
LB: loop body
LE: loop exit
PB: predicated region body
PF: predicated region fallthrough
CT: control target
= control target key end

     0   :  { %s7241_s1 = inlined_call_operand.vmem [shape: bf16[128,128], index: 1, kind: input, shape index: {}]   ;;  %s7242_s0 = inlined_call_operand.vmem [shape: bf16[4,784,128], index: 0, kind: input, shape index: {}]   ;;  %s7243_s2 = inlined_call_operand.vmem [shape: f32[1,128], index: 2, kind: input, shape index: {}]   ;;  %s7244_s3 = inlined_call_operand.vmem [shape: bf16[784,128], index: 3, kind: output, shape index: {}]  }
   0x1   :  { %v5561_v0 = vld [vmem:[%s7241_s1 + $0x38] sm:$0xff]   ;;  %v5562_v1 = vld [vmem:[%s7241_s1 + $0x30] sm:$0xff]   ;;  %v5563_v2 = vld [vmem:[%s7241_s1 + $0x28] sm:$0xff]  }
   0x2   :  { %5137 = vmatprep.subr.bf16.mxu0 %v5561_v0  ;;  %5545 = vmatprep.subr.bf16.mxu1 %v5561_v0  ;;  %v5564_v3 = vld [vmem:[%s7241_s1 + $0x20] sm:$0xff]   ;;  %v5570_v5 = vld [vmem:[%s7242_s0 + $0x310] sm:$0xff]   ;;  %v5565_v6 = vld [vmem:[%s7241_s1 + $0x18] sm:$0xff]  }
   0x3   :  { %5138 = vmatpush3.bf16.msra.mxu0 %v5561_v0  ;;  %5553 = vmatpush3.bf16.msra.mxu1 %v5561_v0  ;;  %v5569_v4 = vld [vmem:[%s7242_s0] sm:$0xff]   ;;  %v5566_v7 = vld [vmem:[%s7241_s1 + $0x10] sm:$0xff]   ;;  %v5567_v8 = vld [vmem:[%s7241_s1 + $0x8] sm:$0xff]  }
   0x4   :  { %5139 = vmatprep.subr.bf16.mxu0 %v5562_v1  ;;  %5546 = vmatprep.subr.bf16.mxu1 %v5562_v1  ;;  %v5568_v9 = vld [vmem:[%s7241_s1] sm:$0xff]   ;;  %v5571_v10 = vld [vmem:[%s7242_s0 + $0x8] sm:$0xff]   ;;  %v5572_v11 = vld [vmem:[%s7242_s0 + $0x318] sm:$0xff]  }
   0x5   :  { %5153 = vmatprep.mubr.bf16.mxu0 %v5569_v4  ;;  %5349 = vmatprep.mubr.bf16.mxu1 %v5570_v5  ;;  %v5573_v12 = vld [vmem:[%s7242_s0 + $0x10] sm:$0xff]   ;;  %v5574_v13 = vld [vmem:[%s7242_s0 + $0x320] sm:$0xff]   ;;  %v5575_v14 = vld [vmem:[%s7242_s0 + $0x18] sm:$0xff]  }
   0x6   :  { %v5576_v15 = vld [vmem:[%s7242_s0 + $0x328] sm:$0xff]   ;;  %v5577_v16 = vld [vmem:[%s7242_s0 + $0x20] sm:$0xff]   ;;  %v5578_v17 = vld [vmem:[%s7242_s0 + $0x330] sm:$0xff]  }
   0x7   :  { %5140 = vmatpush3.bf16.msra.mxu0 %v5562_v1  ;;  %5554 = vmatpush3.bf16.msra.mxu1 %v5562_v1  ;;  %v5579_v18 = vld [vmem:[%s7242_s0 + $0x28] sm:$0xff]   ;;  %v5580_v19 = vld [vmem:[%s7242_s0 + $0x338] sm:$0xff]   ;;  %v5581_v20 = vld [vmem:[%s7242_s0 + $0x30] sm:$0xff]  }
   0x8   :  { %5141 = vmatprep.subr.bf16.mxu0 %v5563_v2  ;;  %5547 = vmatprep.subr.bf16.mxu1 %v5563_v2  ;;  %v5582_v21 = vld [vmem:[%s7242_s0 + $0x340] sm:$0xff]   ;;  %v5583_v22 = vld [vmem:[%s7242_s0 + $0x38] sm:$0xff]   ;;  %v5584_v23 = vld [vmem:[%s7242_s0 + $0x348] sm:$0xff]  }
   0x9   :  { %v5585_v24 = vld [vmem:[%s7242_s0 + $0x40] sm:$0xff]   ;;  %v5586_v25 = vld [vmem:[%s7242_s0 + $0x350] sm:$0xff]   ;;  %v5587_v26 = vld [vmem:[%s7242_s0 + $0x48] sm:$0xff]  }
   0xa   :  { %v5588_v27 = vld [vmem:[%s7242_s0 + $0x358] sm:$0xff]   ;;  %v5589_v28 = vld [vmem:[%s7242_s0 + $0x50] sm:$0xff]   ;;  %v5590_v29 = vld [vmem:[%s7242_s0 + $0x360] sm:$0xff]  }
   0xb   :  { %5142 = vmatpush3.bf16.msra.mxu0 %v5563_v2  ;;  %5555 = vmatpush3.bf16.msra.mxu1 %v5563_v2  ;;  %v5591_v30 = vld [vmem:[%s7242_s0 + $0x58] sm:$0xff]   ;;  %v5592_v31 = vld [vmem:[%s7242_s0 + $0x368] sm:$0xff]   ;;  %v5593_v32 = vld [vmem:[%s7242_s0 + $0x60] sm:$0xff]  }
   0xc   :  { %5143 = vmatprep.subr.bf16.mxu0 %v5564_v3  ;;  %5548 = vmatprep.subr.bf16.mxu1 %v5564_v3  ;;  %v5594_v33 = vld [vmem:[%s7242_s0 + $0x370] sm:$0xff]   ;;  %v5595_v34 = vld [vmem:[%s7242_s0 + $0x68] sm:$0xff]   ;;  %v5596_v35 = vld [vmem:[%s7242_s0 + $0x378] sm:$0xff]  }
   0xd   :  { %v5597_v36 = vld [vmem:[%s7242_s0 + $0x70] sm:$0xff]   ;;  %v5598_v37 = vld [vmem:[%s7242_s0 + $0x380] sm:$0xff]   ;;  %v5599_v38 = vld [vmem:[%s7242_s0 + $0x78] sm:$0xff]  }
   0xe   :  { %v5600_v39 = vld [vmem:[%s7242_s0 + $0x388] sm:$0xff]   ;;  %v5601_v40 = vld [vmem:[%s7242_s0 + $0x80] sm:$0xff]   ;;  %v5602_v41 = vld [vmem:[%s7242_s0 + $0x390] sm:$0xff]  }
   0xf   :  { %5144 = vmatpush3.bf16.msra.mxu0 %v5564_v3  ;;  %5556 = vmatpush3.bf16.msra.mxu1 %v5564_v3  ;;  %v5603_v42 = vld [vmem:[%s7242_s0 + $0x88] sm:$0xff]   ;;  %v5604_v43 = vld [vmem:[%s7242_s0 + $0x398] sm:$0xff]   ;;  %v5605_v44 = vld [vmem:[%s7242_s0 + $0x90] sm:$0xff]  }
  0x10   :  { %5145 = vmatprep.subr.bf16.mxu0 %v5565_v6  ;;  %5549 = vmatprep.subr.bf16.mxu1 %v5565_v6  ;;  %v5606_v45 = vld [vmem:[%s7242_s0 + $0x3a0] sm:$0xff]   ;;  %v5607_v46 = vld [vmem:[%s7242_s0 + $0x98] sm:$0xff]   ;;  %v5608_v47 = vld [vmem:[%s7242_s0 + $0x3a8] sm:$0xff]  }
  0x11   :  { %v5609_v48 = vld [vmem:[%s7242_s0 + $0xa0] sm:$0xff]   ;;  %v5610_v49 = vld [vmem:[%s7242_s0 + $0x3b0] sm:$0xff]   ;;  %v5611_v50 = vld [vmem:[%s7242_s0 + $0xa8] sm:$0xff]  }
  0x12   :  { %v5612_v51 = vld [vmem:[%s7242_s0 + $0x3b8] sm:$0xff]   ;;  %v5613_v52 = vld [vmem:[%s7242_s0 + $0xb0] sm:$0xff]   ;;  %v5614_v53 = vld [vmem:[%s7242_s0 + $0x3c0] sm:$0xff]  }
  0x13   :  { %5146 = vmatpush3.bf16.msra.mxu0 %v5565_v6  ;;  %5557 = vmatpush3.bf16.msra.mxu1 %v5565_v6  ;;  %v5615_v54 = vld [vmem:[%s7242_s0 + $0xb8] sm:$0xff]   ;;  %v5616_v55 = vld [vmem:[%s7242_s0 + $0x3c8] sm:$0xff]   ;;  %v5617_v56 = vld [vmem:[%s7242_s0 + $0xc0] sm:$0xff]  }
  0x14   :  { %5147 = vmatprep.subr.bf16.mxu0 %v5566_v7  ;;  %5550 = vmatprep.subr.bf16.mxu1 %v5566_v7  ;;  %v5618_v57 = vld [vmem:[%s7242_s0 + $0x3d0] sm:$0xff]   ;;  %v5619_v58 = vld [vmem:[%s7242_s0 + $0xc8] sm:$0xff]   ;;  %v5620_v59 = vld [vmem:[%s7242_s0 + $0x3d8] sm:$0xff]  }
  0x15   :  { %v5621_v60 = vld [vmem:[%s7242_s0 + $0xd0] sm:$0xff]   ;;  %v5622_v61 = vld [vmem:[%s7242_s0 + $0x3e0] sm:$0xff]   ;;  %v5623_v62 = vld [vmem:[%s7242_s0 + $0xd8] sm:$0xff]  }
  0x16   :  { %v5624_v63 = vld [vmem:[%s7242_s0 + $0x3e8] sm:$0xff]   ;;  %v5625_v0 = vld [vmem:[%s7242_s0 + $0xe0] sm:$0xff]   ;;  %v5626_v1 = vld [vmem:[%s7242_s0 + $0x3f0] sm:$0xff]  }
  0x17   :  { %5148 = vmatpush3.bf16.msra.mxu0 %v5566_v7  ;;  %5558 = vmatpush3.bf16.msra.mxu1 %v5566_v7  ;;  %v5627_v2 = vld [vmem:[%s7242_s0 + $0xe8] sm:$0xff]   ;;  %v5628_v3 = vld [vmem:[%s7242_s0 + $0x3f8] sm:$0xff]   ;;  %v5629_v4 = vld [vmem:[%s7242_s0 + $0xf0] sm:$0xff]  }
  0x18   :  { %5149 = vmatprep.subr.bf16.mxu0 %v5567_v8  ;;  %5551 = vmatprep.subr.bf16.mxu1 %v5567_v8  ;;  %v5630_v5 = vld [vmem:[%s7242_s0 + $0x400] sm:$0xff]   ;;  %v5631_v6 = vld [vmem:[%s7242_s0 + $0xf8] sm:$0xff]   ;;  %v5632_v7 = vld [vmem:[%s7242_s0 + $0x408] sm:$0xff]  }
  0x1b   :  { %5150 = vmatpush3.bf16.msra.mxu0 %v5567_v8  ;;  %5559 = vmatpush3.bf16.msra.mxu1 %v5567_v8  ;;  %v5633_v8 = vld [vmem:[%s7242_s0 + $0x100] sm:$0xff]  }
  0x1c   :  { %5151 = vmatprep.subr.bf16.mxu0 %v5568_v9  ;;  %5552 = vmatprep.subr.bf16.mxu1 %v5568_v9 }
  0x1f   :  { %5152 = vmatpush3.bf16.msra.mxu0 %v5568_v9  ;;  %5560 = vmatpush3.bf16.msra.mxu1 %v5568_v9  ;;  %v5634_v9 = vld [vmem:[%s7242_s0 + $0x410] sm:$0xff]  }
  0x22   :  { %5154 = vmatmul.mubr.bf16.vlgmr.msra.gmra.mxu0 %v5571_v10  ;;  %5350 = vmatmul.mubr.bf16.vlgmr.msra.gmra.mxu1 %v5572_v11  ;;  %v5635_v10 = vld [vmem:[%s7242_s0 + $0x108] sm:$0xff]   ;;  %v5636_v11 = vld [vmem:[%s7242_s0 + $0x418] sm:$0xff]  }
  0x23   :  { %5157 = vmatprep.mubr.bf16.mxu0 %v5573_v12  ;;  %5353 = vmatprep.mubr.bf16.mxu1 %v5574_v13  ;;  %v5637_v12 = vld [vmem:[%s7242_s0 + $0x110] sm:$0xff]   ;;  %v5638_v13 = vld [vmem:[%s7242_s0 + $0x420] sm:$0xff]  }
  0x2a   :  { %5158 = vmatmul.mubr.bf16.gmra.mxu0 %v5575_v14  ;;  %5354 = vmatmul.mubr.bf16.gmra.mxu1 %v5576_v15  ;;  %v5639_v14 = vld [vmem:[%s7242_s0 + $0x118] sm:$0xff]   ;;  %v5640_v15 = vld [vmem:[%s7242_s0 + $0x428] sm:$0xff]  }
  0x2b   :  { %5161 = vmatprep.mubr.bf16.mxu0 %v5577_v16  ;;  %5357 = vmatprep.mubr.bf16.mxu1 %v5578_v17  ;;  %v5641_v16 = vld [vmem:[%s7242_s0 + $0x120] sm:$0xff]   ;;  %v5642_v17 = vld [vmem:[%s7242_s0 + $0x430] sm:$0xff]  }
  0x32   :  { %5162 = vmatmul.mubr.bf16.gmra.mxu0 %v5579_v18  ;;  %5358 = vmatmul.mubr.bf16.gmra.mxu1 %v5580_v19  ;;  %v5643_v18 = vld [vmem:[%s7242_s0 + $0x128] sm:$0xff]   ;;  %v5644_v19 = vld [vmem:[%s7242_s0 + $0x438] sm:$0xff]  }
  0x33   :  { %5165 = vmatprep.mubr.bf16.mxu0 %v5581_v20  ;;  %5361 = vmatprep.mubr.bf16.mxu1 %v5582_v21  ;;  %v5645_v20 = vld [vmem:[%s7242_s0 + $0x130] sm:$0xff]   ;;  %v5646_v21 = vld [vmem:[%s7242_s0 + $0x440] sm:$0xff]  }
  0x3a   :  { %5166 = vmatmul.mubr.bf16.gmra.mxu0 %v5583_v22  ;;  %5362 = vmatmul.mubr.bf16.gmra.mxu1 %v5584_v23  ;;  %v5647_v22 = vld [vmem:[%s7242_s0 + $0x138] sm:$0xff]   ;;  %v5648_v23 = vld [vmem:[%s7242_s0 + $0x448] sm:$0xff]  }
  0x3b   :  { %5169 = vmatprep.mubr.bf16.mxu0 %v5585_v24  ;;  %5365 = vmatprep.mubr.bf16.mxu1 %v5586_v25  ;;  %v5649_v24 = vld [vmem:[%s7242_s0 + $0x140] sm:$0xff]   ;;  %v5650_v25 = vld [vmem:[%s7242_s0 + $0x450] sm:$0xff]  }
  0x42   :  { %5170 = vmatmul.mubr.bf16.gmra.mxu0 %v5587_v26  ;;  %5366 = vmatmul.mubr.bf16.gmra.mxu1 %v5588_v27  ;;  %v5651_v26 = vld [vmem:[%s7242_s0 + $0x148] sm:$0xff]   ;;  %v5652_v27 = vld [vmem:[%s7242_s0 + $0x458] sm:$0xff]  }
  0x43   :  { %5173 = vmatprep.mubr.bf16.mxu0 %v5589_v28  ;;  %5369 = vmatprep.mubr.bf16.mxu1 %v5590_v29  ;;  %v5653_v28 = vld [vmem:[%s7242_s0 + $0x150] sm:$0xff]   ;;  %v5654_v29 = vld [vmem:[%s7242_s0 + $0x460] sm:$0xff]  }
  0x4a   :  { %5174 = vmatmul.mubr.bf16.gmra.mxu0 %v5591_v30  ;;  %5370 = vmatmul.mubr.bf16.gmra.mxu1 %v5592_v31  ;;  %v5655_v30 = vld [vmem:[%s7242_s0 + $0x158] sm:$0xff]   ;;  %v5656_v31 = vld [vmem:[%s7242_s0 + $0x468] sm:$0xff]  }
  0x4b   :  { %5177 = vmatprep.mubr.bf16.mxu0 %v5593_v32  ;;  %5373 = vmatprep.mubr.bf16.mxu1 %v5594_v33  ;;  %v5657_v32 = vld [vmem:[%s7242_s0 + $0x160] sm:$0xff]   ;;  %v5658_v33 = vld [vmem:[%s7242_s0 + $0x470] sm:$0xff]  }
  0x52   :  { %5178 = vmatmul.mubr.bf16.gmra.mxu0 %v5595_v34  ;;  %5374 = vmatmul.mubr.bf16.gmra.mxu1 %v5596_v35  ;;  %v5659_v34 = vld [vmem:[%s7242_s0 + $0x168] sm:$0xff]   ;;  %v5660_v35 = vld [vmem:[%s7242_s0 + $0x478] sm:$0xff]  }
  0x53   :  { %5181 = vmatprep.mubr.bf16.mxu0 %v5597_v36  ;;  %5377 = vmatprep.mubr.bf16.mxu1 %v5598_v37  ;;  %v5661_v36 = vld [vmem:[%s7242_s0 + $0x170] sm:$0xff]   ;;  %v5662_v37 = vld [vmem:[%s7242_s0 + $0x480] sm:$0xff]  }
  0x5a   :  { %5182 = vmatmul.mubr.bf16.gmra.mxu0 %v5599_v38  ;;  %5378 = vmatmul.mubr.bf16.gmra.mxu1 %v5600_v39  ;;  %v5663_v38 = vld [vmem:[%s7242_s0 + $0x178] sm:$0xff]   ;;  %v5664_v39 = vld [vmem:[%s7242_s0 + $0x488] sm:$0xff]  }
  0x5b   :  { %5185 = vmatprep.mubr.bf16.mxu0 %v5601_v40  ;;  %5381 = vmatprep.mubr.bf16.mxu1 %v5602_v41  ;;  %v5665_v40 = vld [vmem:[%s7242_s0 + $0x180] sm:$0xff]   ;;  %v5666_v41 = vld [vmem:[%s7242_s0 + $0x490] sm:$0xff]  }
  0x62   :  { %5186 = vmatmul.mubr.bf16.gmra.mxu0 %v5603_v42  ;;  %5382 = vmatmul.mubr.bf16.gmra.mxu1 %v5604_v43  ;;  %v5667_v42 = vld [vmem:[%s7242_s0 + $0x188] sm:$0xff]   ;;  %v5668_v43 = vld [vmem:[%s7242_s0 + $0x498] sm:$0xff]  }
  0x63   :  { %5189 = vmatprep.mubr.bf16.mxu0 %v5605_v44  ;;  %5385 = vmatprep.mubr.bf16.mxu1 %v5606_v45  ;;  %v5669_v44 = vld [vmem:[%s7242_s0 + $0x190] sm:$0xff]   ;;  %v5670_v45 = vld [vmem:[%s7242_s0 + $0x4a0] sm:$0xff]  }
  0x6a   :  { %5190 = vmatmul.mubr.bf16.gmra.mxu0 %v5607_v46  ;;  %5386 = vmatmul.mubr.bf16.gmra.mxu1 %v5608_v47 }
  0x6b   :  { %5193 = vmatprep.mubr.bf16.mxu0 %v5609_v48  ;;  %5389 = vmatprep.mubr.bf16.mxu1 %v5610_v49 }
  0x72   :  { %5194 = vmatmul.mubr.bf16.gmra.mxu0 %v5611_v50  ;;  %5390 = vmatmul.mubr.bf16.gmra.mxu1 %v5612_v51 }
  0x73   :  { %5197 = vmatprep.mubr.bf16.mxu0 %v5613_v52  ;;  %5393 = vmatprep.mubr.bf16.mxu1 %v5614_v53  ;;  %v5671_v52 = vld [vmem:[%s7242_s0 + $0x198] sm:$0xff]   ;;  %v5672_v53 = vld [vmem:[%s7242_s0 + $0x4a8] sm:$0xff]  }
  0x7a   :  { %5198 = vmatmul.mubr.bf16.gmra.mxu0 %v5615_v54  ;;  %5394 = vmatmul.mubr.bf16.gmra.mxu1 %v5616_v55  ;;  %v5673_v54 = vld [vmem:[%s7242_s0 + $0x1a0] sm:$0xff]   ;;  %v5674_v55 = vld [vmem:[%s7242_s0 + $0x4b0] sm:$0xff]  }
  0x7b   :  { %5201 = vmatprep.mubr.bf16.mxu0 %v5617_v56  ;;  %5397 = vmatprep.mubr.bf16.mxu1 %v5618_v57 }
  0x82   :  { %5202 = vmatmul.mubr.bf16.gmra.mxu0 %v5619_v58  ;;  %5398 = vmatmul.mubr.bf16.gmra.mxu1 %v5620_v59 }
  0x83   :  { %5205 = vmatprep.mubr.bf16.mxu0 %v5621_v60  ;;  %5401 = vmatprep.mubr.bf16.mxu1 %v5622_v61 }
  0x8a   :  { %5206 = vmatmul.mubr.bf16.gmra.mxu0 %v5623_v62  ;;  %5402 = vmatmul.mubr.bf16.gmra.mxu1 %v5624_v63 }
  0x8b   :  { %5209 = vmatprep.mubr.bf16.mxu0 %v5625_v0  ;;  %5405 = vmatprep.mubr.bf16.mxu1 %v5626_v1  ;;  %v5675_v0 = vld [vmem:[%s7242_s0 + $0x1a8] sm:$0xff]   ;;  %v5676_v1 = vld [vmem:[%s7242_s0 + $0x4b8] sm:$0xff]  }
  0x92   :  { %5210 = vmatmul.mubr.bf16.gmra.mxu0 %v5627_v2  ;;  %5406 = vmatmul.mubr.bf16.gmra.mxu1 %v5628_v3  ;;  %v5677_v2 = vld [vmem:[%s7242_s0 + $0x1b0] sm:$0xff]   ;;  %v5678_v3 = vld [vmem:[%s7242_s0 + $0x4c0] sm:$0xff]  }
  0x93   :  { %5213 = vmatprep.mubr.bf16.mxu0 %v5629_v4  ;;  %5409 = vmatprep.mubr.bf16.mxu1 %v5630_v5 }
  0x9a   :  { %5214 = vmatmul.mubr.bf16.gmra.mxu0 %v5631_v6  ;;  %5410 = vmatmul.mubr.bf16.gmra.mxu1 %v5632_v7 }
  0x9b   :  { %5217 = vmatprep.mubr.bf16.mxu0 %v5633_v8  ;;  %5413 = vmatprep.mubr.bf16.mxu1 %v5634_v9 }
  0xa2   :  { %5218 = vmatmul.mubr.bf16.gmra.mxu0 %v5635_v10  ;;  %5414 = vmatmul.mubr.bf16.gmra.mxu1 %v5636_v11 }
  0xa3   :  { %5221 = vmatprep.mubr.bf16.mxu0 %v5637_v12  ;;  %5417 = vmatprep.mubr.bf16.mxu1 %v5638_v13  ;;  %v5679_v12 = vld [vmem:[%s7242_s0 + $0x1b8] sm:$0xff]   ;;  %v5680_v13 = vld [vmem:[%s7242_s0 + $0x4c8] sm:$0xff]  }
  0xaa   :  { %5222 = vmatmul.mubr.bf16.gmra.mxu0 %v5639_v14  ;;  %5418 = vmatmul.mubr.bf16.gmra.mxu1 %v5640_v15  ;;  %v5681_v14 = vld [vmem:[%s7242_s0 + $0x1c0] sm:$0xff]   ;;  %v5682_v15 = vld [vmem:[%s7242_s0 + $0x4d0] sm:$0xff]  }
  0xab   :  { %5225 = vmatprep.mubr.bf16.mxu0 %v5641_v16  ;;  %5421 = vmatprep.mubr.bf16.mxu1 %v5642_v17 }
  0xb2   :  { %5226 = vmatmul.mubr.bf16.gmra.mxu0 %v5643_v18  ;;  %5422 = vmatmul.mubr.bf16.gmra.mxu1 %v5644_v19 }
  0xb3   :  { %5229 = vmatprep.mubr.bf16.mxu0 %v5645_v20  ;;  %5425 = vmatprep.mubr.bf16.mxu1 %v5646_v21 }
  0xba   :  { %5230 = vmatmul.mubr.bf16.gmra.mxu0 %v5647_v22  ;;  %5426 = vmatmul.mubr.bf16.gmra.mxu1 %v5648_v23 }
  0xbb   :  { %5233 = vmatprep.mubr.bf16.mxu0 %v5649_v24  ;;  %5429 = vmatprep.mubr.bf16.mxu1 %v5650_v25  ;;  %v5683_v24 = vld [vmem:[%s7242_s0 + $0x1c8] sm:$0xff]   ;;  %v5684_v25 = vld [vmem:[%s7242_s0 + $0x4d8] sm:$0xff]  }
  0xc2   :  { %5234 = vmatmul.mubr.bf16.gmra.mxu0 %v5651_v26  ;;  %5430 = vmatmul.mubr.bf16.gmra.mxu1 %v5652_v27  ;;  %v5685_v26 = vld [vmem:[%s7242_s0 + $0x1d0] sm:$0xff]   ;;  %v5686_v27 = vld [vmem:[%s7242_s0 + $0x4e0] sm:$0xff]  }
  0xc3   :  { %5237 = vmatprep.mubr.bf16.mxu0 %v5653_v28  ;;  %5433 = vmatprep.mubr.bf16.mxu1 %v5654_v29 }
  0xca   :  { %5238 = vmatmul.mubr.bf16.gmra.mxu0 %v5655_v30  ;;  %5434 = vmatmul.mubr.bf16.gmra.mxu1 %v5656_v31 }
  0xcb   :  { %5241 = vmatprep.mubr.bf16.mxu0 %v5657_v32  ;;  %5437 = vmatprep.mubr.bf16.mxu1 %v5658_v33 }
  0xd2   :  { %5242 = vmatmul.mubr.bf16.gmra.mxu0 %v5659_v34  ;;  %5438 = vmatmul.mubr.bf16.gmra.mxu1 %v5660_v35 }
  0xd3   :  { %5245 = vmatprep.mubr.bf16.mxu0 %v5661_v36  ;;  %5441 = vmatprep.mubr.bf16.mxu1 %v5662_v37  ;;  %v5687_v36 = vld [vmem:[%s7242_s0 + $0x1d8] sm:$0xff]   ;;  %v5688_v37 = vld [vmem:[%s7242_s0 + $0x4e8] sm:$0xff]  }
  0xda   :  { %5246 = vmatmul.mubr.bf16.gmra.mxu0 %v5663_v38  ;;  %5442 = vmatmul.mubr.bf16.gmra.mxu1 %v5664_v39  ;;  %v5689_v38 = vld [vmem:[%s7242_s0 + $0x1e0] sm:$0xff]   ;;  %v5690_v39 = vld [vmem:[%s7242_s0 + $0x4f0] sm:$0xff]  }
  0xdb   :  { %5249 = vmatprep.mubr.bf16.mxu0 %v5665_v40  ;;  %5445 = vmatprep.mubr.bf16.mxu1 %v5666_v41 }
  0xe2   :  { %v6116_v46 = vpop.f32.mrf.mxu0  ;;  %5250 = vmatmul.mubr.bf16.gmra.mxu0 %v5667_v42  ;;  %v6118_v47 = vpop.f32.mrf.mxu1  ;;  %5446 = vmatmul.mubr.bf16.gmra.mxu1 %v5668_v43 }
  0xe3   :  { %5253 = vmatprep.mubr.bf16.mxu0 %v5669_v44  ;;  %5449 = vmatprep.mubr.bf16.mxu1 %v5670_v45 }
  0xe4   :  { %v6120_v48 = vpop.f32.mrf.mxu0  ;;  %v6122_v49 = vpop.f32.mrf.mxu1 }
  0xe6   :  { %v6124_v50 = vpop.f32.mrf.mxu0  ;;  %v6126_v51 = vpop.f32.mrf.mxu1 }
  0xe8   :  { %v6140_v56 = vpop.f32.mrf.mxu0  ;;  %v6142_v57 = vpop.f32.mrf.mxu1 }
  0xea   :  { %v6144_v58 = vpop.f32.mrf.mxu0  ;;  %5254 = vmatmul.mubr.bf16.gmra.mxu0 %v5671_v52  ;;  %v6146_v59 = vpop.f32.mrf.mxu1  ;;  %5450 = vmatmul.mubr.bf16.gmra.mxu1 %v5672_v53 }
  0xeb   :  { %5257 = vmatprep.mubr.bf16.mxu0 %v5673_v54  ;;  %5453 = vmatprep.mubr.bf16.mxu1 %v5674_v55  ;;  %v5691_v54 = vld [vmem:[%s7242_s0 + $0x1e8] sm:$0xff]   ;;  %v5692_v55 = vld [vmem:[%s7242_s0 + $0x4f8] sm:$0xff]  }
  0xec   :  { %v6148_v60 = vpop.f32.mrf.mxu0  ;;  %v6150_v61 = vpop.f32.mrf.mxu1 }
  0xee   :  { %v6152_v62 = vpop.f32.mrf.mxu0  ;;  %v6154_v63 = vpop.f32.mrf.mxu1 }
  0xf0   :  { %v6168_v4 = vpop.f32.mrf.mxu0  ;;  %v6170_v5 = vpop.f32.mrf.mxu1 }
  0xf2   :  { %v6172_v6 = vpop.f32.mrf.mxu0  ;;  %5258 = vmatmul.mubr.bf16.gmra.mxu0 %v5675_v0  ;;  %v6174_v7 = vpop.f32.mrf.mxu1  ;;  %5454 = vmatmul.mubr.bf16.gmra.mxu1 %v5676_v1  ;;  %v5693_v0 = vld [vmem:[%s7242_s0 + $0x1f0] sm:$0xff]   ;;  %v5694_v1 = vld [vmem:[%s7242_s0 + $0x500] sm:$0xff]  }
  0xf3   :  { %5261 = vmatprep.mubr.bf16.mxu0 %v5677_v2  ;;  %5457 = vmatprep.mubr.bf16.mxu1 %v5678_v3 }
  0xf4   :  { %v6176_v8 = vpop.f32.mrf.mxu0  ;;  %v6178_v9 = vpop.f32.mrf.mxu1 }
  0xf6   :  { %v6180_v10 = vpop.f32.mrf.mxu0  ;;  %v6182_v11 = vpop.f32.mrf.mxu1 }
  0xf8   :  { %v6196_v16 = vpop.f32.mrf.mxu0  ;;  %v6198_v17 = vpop.f32.mrf.mxu1 }
  0xfa   :  { %v6200_v18 = vpop.f32.mrf.mxu0  ;;  %5262 = vmatmul.mubr.bf16.gmra.mxu0 %v5679_v12  ;;  %v6202_v19 = vpop.f32.mrf.mxu1  ;;  %5458 = vmatmul.mubr.bf16.gmra.mxu1 %v5680_v13 }
  0xfb   :  { %5265 = vmatprep.mubr.bf16.mxu0 %v5681_v14  ;;  %5461 = vmatprep.mubr.bf16.mxu1 %v5682_v15 }
  0xfc   :  { %v6204_v20 = vpop.f32.mrf.mxu0  ;;  %v6206_v21 = vpop.f32.mrf.mxu1 }
  0xfe   :  { %v6208_v22 = vpop.f32.mrf.mxu0  ;;  %v6210_v23 = vpop.f32.mrf.mxu1 }
 0x100   :  { %v6224_v28 = vpop.f32.mrf.mxu0  ;;  %v6226_v29 = vpop.f32.mrf.mxu1 }
 0x102   :  { %v6228_v30 = vpop.f32.mrf.mxu0  ;;  %5266 = vmatmul.mubr.bf16.gmra.mxu0 %v5683_v24  ;;  %v6230_v31 = vpop.f32.mrf.mxu1  ;;  %5462 = vmatmul.mubr.bf16.gmra.mxu1 %v5684_v25 }
 0x103   :  { %5269 = vmatprep.mubr.bf16.mxu0 %v5685_v26  ;;  %5465 = vmatprep.mubr.bf16.mxu1 %v5686_v27  ;;  %v5695_v26 = vld [vmem:[%s7242_s0 + $0x1f8] sm:$0xff]   ;;  %v5696_v27 = vld [vmem:[%s7242_s0 + $0x508] sm:$0xff]  }
 0x104   :  { %v6232_v32 = vpop.f32.mrf.mxu0  ;;  %v6234_v33 = vpop.f32.mrf.mxu1 }
 0x106   :  { %v6236_v34 = vpop.f32.mrf.mxu0  ;;  %v6238_v35 = vpop.f32.mrf.mxu1 }
 0x108   :  { %v6252_v40 = vpop.f32.mrf.mxu0  ;;  %v6254_v41 = vpop.f32.mrf.mxu1 }
 0x10a   :  { %v6256_v42 = vpop.f32.mrf.mxu0  ;;  %5270 = vmatmul.mubr.bf16.gmra.mxu0 %v5687_v36  ;;  %v6258_v43 = vpop.f32.mrf.mxu1  ;;  %5466 = vmatmul.mubr.bf16.gmra.mxu1 %v5688_v37  ;;  %v5697_v36 = vld [vmem:[%s7242_s0 + $0x200] sm:$0xff]   ;;  %v5698_v37 = vld [vmem:[%s7242_s0 + $0x510] sm:$0xff]  }
 0x10b   :  { %5273 = vmatprep.mubr.bf16.mxu0 %v5689_v38  ;;  %5469 = vmatprep.mubr.bf16.mxu1 %v5690_v39 }
 0x10c   :  { %v6260_v44 = vpop.f32.mrf.mxu0  ;;  %v6262_v45 = vpop.f32.mrf.mxu1 }
 0x10e   :  { %v6264_v52 = vpop.f32.mrf.mxu0  ;;  %v6266_v53 = vpop.f32.mrf.mxu1 }
 0x10f   :  { %7245 = vst [vmem:[#allocation2_spill] sm:$0xff] %v6264_v52  ;;  %7246 = vst [vmem:[#allocation3_spill] sm:$0xff] %v6266_v53 }
 0x110   :  { %v6280_v2 = vpop.f32.mrf.mxu0  ;;  %v6282_v3 = vpop.f32.mrf.mxu1 }
 0x112   :  { %v6284_v12 = vpop.f32.mrf.mxu0  ;;  %5274 = vmatmul.mubr.bf16.gmra.mxu0 %v5691_v54  ;;  %v6286_v13 = vpop.f32.mrf.mxu1  ;;  %5470 = vmatmul.mubr.bf16.gmra.mxu1 %v5692_v55 }
 0x113   :  { %7247 = vst [vmem:[#allocation4_spill] sm:$0xff] %v6284_v12  ;;  %7248 = vst [vmem:[#allocation5_spill] sm:$0xff] %v6286_v13  ;;  %5277 = vmatprep.mubr.bf16.mxu0 %v5693_v0  ;;  %5473 = vmatprep.mubr.bf16.mxu1 %v5694_v1  ;;  %v5699_v13 = vld [vmem:[%s7242_s0 + $0x208] sm:$0xff]  }
 0x114   :  { %v6288_v14 = vpop.f32.mrf.mxu0  ;;  %v6290_v15 = vpop.f32.mrf.mxu1 }
 0x116   :  { %v6292_v24 = vpop.f32.mrf.mxu0  ;;  %v6294_v25 = vpop.f32.mrf.mxu1 }
 0x117   :  { %7249 = vst [vmem:[#allocation6_spill] sm:$0xff] %v6292_v24  ;;  %7250 = vst [vmem:[#allocation7_spill] sm:$0xff] %v6294_v25 }
 0x118   :  { %v6308_v38 = vpop.f32.mrf.mxu0  ;;  %v6310_v39 = vpop.f32.mrf.mxu1 }
 0x119   :  { %7251 = vst [vmem:[#allocation8_spill] sm:$0xff] %v6308_v38  ;;  %7252 = vst [vmem:[#allocation9_spill] sm:$0xff] %v6310_v39 }
 0x11a   :  { %v6312_v54 = vpop.f32.mrf.mxu0  ;;  %5278 = vmatmul.mubr.bf16.gmra.mxu0 %v5695_v26  ;;  %v6314_v55 = vpop.f32.mrf.mxu1  ;;  %5474 = vmatmul.mubr.bf16.gmra.mxu1 %v5696_v27  ;;  %v5700_v26 = vld [vmem:[%s7242_s0 + $0x518] sm:$0xff]   ;;  %v5701_v27 = vld [vmem:[%s7242_s0 + $0x210] sm:$0xff]  }
 0x11b   :  { %7253 = vst [vmem:[#allocation10_spill] sm:$0xff] %v6312_v54  ;;  %7254 = vst [vmem:[#allocation11_spill] sm:$0xff] %v6314_v55  ;;  %5281 = vmatprep.mubr.bf16.mxu0 %v5697_v36  ;;  %5477 = vmatprep.mubr.bf16.mxu1 %v5698_v37  ;;  %v5702_v36 = vld [vmem:[%s7242_s0 + $0x520] sm:$0xff]  }
 0x11c   :  { %v6316_v0 = vpop.f32.mrf.mxu0  ;;  %v6318_v1 = vpop.f32.mrf.mxu1 }
 0x11d   :  { %7255 = vst [vmem:[#allocation12_spill] sm:$0xff] %v6316_v0  ;;  %7256 = vst [vmem:[#allocation13_spill] sm:$0xff] %v6318_v1 }
 0x11e   :  { %v6320_v25 = vpop.f32.mrf.mxu0  ;;  %v6322_v24 = vpop.f32.mrf.mxu1 }
 0x11f   :  { %7257 = vst [vmem:[#allocation14_spill] sm:$0xff] %v6320_v25  ;;  %7258 = vst [vmem:[#allocation15_spill] sm:$0xff] %v6322_v24 }
 0x120   :  { %v6336_v37 = vpop.f32.mrf.mxu0  ;;  %v6338_v25 = vpop.f32.mrf.mxu1 }
 0x121   :  { %7259 = vst [vmem:[#allocation16_spill] sm:$0xff] %v6336_v37  ;;  %7260 = vst [vmem:[#allocation17_spill] sm:$0xff] %v6338_v25  ;;  %v5703_v25 = vld [vmem:[%s7242_s0 + $0x218] sm:$0xff]  }
 0x122   :  { %v6340_v24 = vpop.f32.mrf.mxu0  ;;  %5282 = vmatmul.mubr.bf16.gmra.mxu0 %v5699_v13  ;;  %v6342_v55 = vpop.f32.mrf.mxu1  ;;  %5478 = vmatmul.mubr.bf16.gmra.mxu1 %v5700_v26  ;;  %v5704_v13 = vld [vmem:[%s7242_s0 + $0x528] sm:$0xff]   ;;  %v5705_v26 = vld [vmem:[%s7242_s0 + $0x220] sm:$0xff]  }
 0x123   :  { %7261 = vst [vmem:[#allocation18_spill] sm:$0xff] %v6340_v24  ;;  %7262 = vst [vmem:[#allocation19_spill] sm:$0xff] %v6342_v55  ;;  %5285 = vmatprep.mubr.bf16.mxu0 %v5701_v27  ;;  %5481 = vmatprep.mubr.bf16.mxu1 %v5702_v36  ;;  %v5706_v27 = vld [vmem:[%s7242_s0 + $0x530] sm:$0xff]  }
 0x124   :  { %v6344_v54 = vpop.f32.mrf.mxu0  ;;  %v6346_v12 = vpop.f32.mrf.mxu1 }
 0x125   :  { %7263 = vst [vmem:[#allocation20_spill] sm:$0xff] %v6344_v54  ;;  %7264 = vst [vmem:[#allocation21_spill] sm:$0xff] %v6346_v12 }
 0x126   :  { %v6348_v1 = vpop.f32.mrf.mxu0  ;;  %v6350_v0 = vpop.f32.mrf.mxu1 }
 0x127   :  { %7265 = vst [vmem:[#allocation22_spill] sm:$0xff] %v6348_v1  ;;  %7266 = vst [vmem:[#allocation23_spill] sm:$0xff] %v6350_v0 }
 0x128   :  { %v6364_v36 = vpop.f32.mrf.mxu0  ;;  %v6366_v1 = vpop.f32.mrf.mxu1 }
 0x129   :  { %7267 = vst [vmem:[#allocation24_spill] sm:$0xff] %v6364_v36  ;;  %7268 = vst [vmem:[#allocation25_spill] sm:$0xff] %v6366_v1  ;;  %v5707_v1 = vld [vmem:[%s7242_s0 + $0x228] sm:$0xff]  }
 0x12a   :  { %v6368_v0 = vpop.f32.mrf.mxu0  ;;  %5286 = vmatmul.mubr.bf16.gmra.mxu0 %v5703_v25  ;;  %v6370_v55 = vpop.f32.mrf.mxu1  ;;  %5482 = vmatmul.mubr.bf16.gmra.mxu1 %v5704_v13  ;;  %v5708_v25 = vld [vmem:[%s7242_s0 + $0x538] sm:$0xff]   ;;  %v5709_v13 = vld [vmem:[%s7242_s0 + $0x230] sm:$0xff]  }
 0x12b   :  { %7269 = vst [vmem:[#allocation26_spill] sm:$0xff] %v6368_v0  ;;  %7270 = vst [vmem:[#allocation27_spill] sm:$0xff] %v6370_v55  ;;  %5289 = vmatprep.mubr.bf16.mxu0 %v5705_v26  ;;  %5485 = vmatprep.mubr.bf16.mxu1 %v5706_v27  ;;  %v5710_v26 = vld [vmem:[%s7242_s0 + $0x540] sm:$0xff]  }
 0x12c   :  { %v6372_v24 = vpop.f32.mrf.mxu0  ;;  %v6374_v12 = vpop.f32.mrf.mxu1 }
 0x12d   :  { %7271 = vst [vmem:[#allocation28_spill] sm:$0xff] %v6372_v24  ;;  %7272 = vst [vmem:[#allocation29_spill] sm:$0xff] %v6374_v12 }
 0x12e   :  { %v6376_v54 = vpop.f32.mrf.mxu0  ;;  %v6378_v37 = vpop.f32.mrf.mxu1 }
 0x12f   :  { %7273 = vst [vmem:[#allocation30_spill] sm:$0xff] %v6376_v54  ;;  %7274 = vst [vmem:[#allocation31_spill] sm:$0xff] %v6378_v37 }
 0x130   :  { %v6392_v27 = vpop.f32.mrf.mxu0  ;;  %v6394_v54 = vpop.f32.mrf.mxu1 }
 0x131   :  { %7275 = vst [vmem:[#allocation32_spill] sm:$0xff] %v6392_v27  ;;  %7276 = vst [vmem:[#allocation33_spill] sm:$0xff] %v6394_v54  ;;  %v5711_v54 = vld [vmem:[%s7242_s0 + $0x238] sm:$0xff]  }
 0x132   :  { %v6396_v37 = vpop.f32.mrf.mxu0  ;;  %5290 = vmatmul.mubr.bf16.gmra.mxu0 %v5707_v1  ;;  %v6398_v55 = vpop.f32.mrf.mxu1  ;;  %5486 = vmatmul.mubr.bf16.gmra.mxu1 %v5708_v25  ;;  %v5712_v1 = vld [vmem:[%s7242_s0 + $0x548] sm:$0xff]   ;;  %v5713_v25 = vld [vmem:[%s7242_s0 + $0x240] sm:$0xff]  }
 0x133   :  { %7277 = vst [vmem:[#allocation34_spill] sm:$0xff] %v6396_v37  ;;  %7278 = vst [vmem:[#allocation35_spill] sm:$0xff] %v6398_v55  ;;  %5293 = vmatprep.mubr.bf16.mxu0 %v5709_v13  ;;  %5489 = vmatprep.mubr.bf16.mxu1 %v5710_v26  ;;  %v5714_v13 = vld [vmem:[%s7242_s0 + $0x550] sm:$0xff]  }
 0x134   :  { %v6400_v0 = vpop.f32.mrf.mxu0  ;;  %v6402_v12 = vpop.f32.mrf.mxu1 }
 0x135   :  { %7279 = vst [vmem:[#allocation36_spill] sm:$0xff] %v6400_v0  ;;  %7280 = vst [vmem:[#allocation37_spill] sm:$0xff] %v6402_v12 }
 0x136   :  { %v6404_v24 = vpop.f32.mrf.mxu0  ;;  %v6406_v36 = vpop.f32.mrf.mxu1 }
 0x137   :  { %7281 = vst [vmem:[#allocation38_spill] sm:$0xff] %v6404_v24  ;;  %7282 = vst [vmem:[#allocation39_spill] sm:$0xff] %v6406_v36 }
 0x138   :  { %v6420_v26 = vpop.f32.mrf.mxu0  ;;  %v6422_v24 = vpop.f32.mrf.mxu1 }
 0x139   :  { %7283 = vst [vmem:[#allocation40_spill] sm:$0xff] %v6420_v26  ;;  %7284 = vst [vmem:[#allocation41_spill] sm:$0xff] %v6422_v24  ;;  %v5715_v24 = vld [vmem:[%s7242_s0 + $0x248] sm:$0xff]  }
 0x13a   :  { %v6424_v36 = vpop.f32.mrf.mxu0  ;;  %5294 = vmatmul.mubr.bf16.gmra.mxu0 %v5711_v54  ;;  %v6426_v55 = vpop.f32.mrf.mxu1  ;;  %5490 = vmatmul.mubr.bf16.gmra.mxu1 %v5712_v1  ;;  %v5716_v54 = vld [vmem:[%s7242_s0 + $0x558] sm:$0xff]   ;;  %v5717_v1 = vld [vmem:[%s7242_s0 + $0x250] sm:$0xff]  }
 0x13b   :  { %7285 = vst [vmem:[#allocation42_spill] sm:$0xff] %v6424_v36  ;;  %7286 = vst [vmem:[#allocation43_spill] sm:$0xff] %v6426_v55  ;;  %5297 = vmatprep.mubr.bf16.mxu0 %v5713_v25  ;;  %5493 = vmatprep.mubr.bf16.mxu1 %v5714_v13  ;;  %v5718_v25 = vld [vmem:[%s7242_s0 + $0x560] sm:$0xff]  }
 0x13c   :  { %v6428_v37 = vpop.f32.mrf.mxu0  ;;  %v6430_v12 = vpop.f32.mrf.mxu1 }
 0x13d   :  { %7287 = vst [vmem:[#allocation44_spill] sm:$0xff] %v6428_v37  ;;  %7288 = vst [vmem:[#allocation45_spill] sm:$0xff] %v6430_v12 }
 0x13e   :  { %v6432_v0 = vpop.f32.mrf.mxu0  ;;  %v6434_v27 = vpop.f32.mrf.mxu1 }
 0x13f   :  { %7289 = vst [vmem:[#allocation46_spill] sm:$0xff] %v6432_v0  ;;  %7290 = vst [vmem:[#allocation47_spill] sm:$0xff] %v6434_v27 }
 0x140   :  { %v6448_v13 = vpop.f32.mrf.mxu0  ;;  %v6450_v0 = vpop.f32.mrf.mxu1 }
 0x141   :  { %7291 = vst [vmem:[#allocation48_spill] sm:$0xff] %v6448_v13  ;;  %7292 = vst [vmem:[#allocation49_spill] sm:$0xff] %v6450_v0  ;;  %v5719_v0 = vld [vmem:[%s7242_s0 + $0x258] sm:$0xff]  }
 0x142   :  { %v6452_v27 = vpop.f32.mrf.mxu0  ;;  %5298 = vmatmul.mubr.bf16.gmra.mxu0 %v5715_v24  ;;  %v6454_v55 = vpop.f32.mrf.mxu1  ;;  %5494 = vmatmul.mubr.bf16.gmra.mxu1 %v5716_v54  ;;  %v5720_v24 = vld [vmem:[%s7242_s0 + $0x568] sm:$0xff]   ;;  %v5721_v54 = vld [vmem:[%s7242_s0 + $0x260] sm:$0xff]  }
 0x143   :  { %7293 = vst [vmem:[#allocation50_spill] sm:$0xff] %v6452_v27  ;;  %7294 = vst [vmem:[#allocation51_spill] sm:$0xff] %v6454_v55  ;;  %5301 = vmatprep.mubr.bf16.mxu0 %v5717_v1  ;;  %5497 = vmatprep.mubr.bf16.mxu1 %v5718_v25  ;;  %v5722_v1 = vld [vmem:[%s7242_s0 + $0x570] sm:$0xff]  }
 0x144   :  { %v6456_v36 = vpop.f32.mrf.mxu0  ;;  %v6458_v12 = vpop.f32.mrf.mxu1 }
 0x145   :  { %7295 = vst [vmem:[#allocation52_spill] sm:$0xff] %v6456_v36  ;;  %7296 = vst [vmem:[#allocation53_spill] sm:$0xff] %v6458_v12 }
 0x146   :  { %v6460_v37 = vpop.f32.mrf.mxu0  ;;  %v6462_v26 = vpop.f32.mrf.mxu1 }
 0x147   :  { %7297 = vst [vmem:[#allocation54_spill] sm:$0xff] %v6460_v37  ;;  %7298 = vst [vmem:[#allocation55_spill] sm:$0xff] %v6462_v26 }
 0x148   :  { %v6476_v25 = vpop.f32.mrf.mxu0  ;;  %v6478_v37 = vpop.f32.mrf.mxu1 }
 0x149   :  { %7299 = vst [vmem:[#allocation56_spill] sm:$0xff] %v6476_v25  ;;  %7300 = vst [vmem:[#allocation57_spill] sm:$0xff] %v6478_v37  ;;  %v5723_v37 = vld [vmem:[%s7242_s0 + $0x268] sm:$0xff]  }
 0x14a   :  { %v6480_v26 = vpop.f32.mrf.mxu0  ;;  %5302 = vmatmul.mubr.bf16.gmra.mxu0 %v5719_v0  ;;  %v6482_v55 = vpop.f32.mrf.mxu1  ;;  %5498 = vmatmul.mubr.bf16.gmra.mxu1 %v5720_v24  ;;  %v5724_v0 = vld [vmem:[%s7242_s0 + $0x578] sm:$0xff]   ;;  %v5725_v24 = vld [vmem:[%s7242_s0 + $0x270] sm:$0xff]  }
 0x14b   :  { %7301 = vst [vmem:[#allocation58_spill] sm:$0xff] %v6480_v26  ;;  %7302 = vst [vmem:[#allocation59_spill] sm:$0xff] %v6482_v55  ;;  %5305 = vmatprep.mubr.bf16.mxu0 %v5721_v54  ;;  %5501 = vmatprep.mubr.bf16.mxu1 %v5722_v1  ;;  %v5726_v54 = vld [vmem:[%s7242_s0 + $0x580] sm:$0xff]  }
 0x14c   :  { %v6484_v27 = vpop.f32.mrf.mxu0  ;;  %v6486_v12 = vpop.f32.mrf.mxu1 }
 0x14d   :  { %7303 = vst [vmem:[#allocation60_spill] sm:$0xff] %v6484_v27  ;;  %7304 = vst [vmem:[#allocation61_spill] sm:$0xff] %v6486_v12 }
 0x14e   :  { %v6488_v36 = vpop.f32.mrf.mxu0  ;;  %v6490_v13 = vpop.f32.mrf.mxu1 }
 0x14f   :  { %7305 = vst [vmem:[#allocation62_spill] sm:$0xff] %v6488_v36  ;;  %7306 = vst [vmem:[#allocation63_spill] sm:$0xff] %v6490_v13 }
 0x150   :  { %v6504_v1 = vpop.f32.mrf.mxu0  ;;  %v6506_v36 = vpop.f32.mrf.mxu1 }
 0x151   :  { %7307 = vst [vmem:[#allocation64_spill] sm:$0xff] %v6504_v1  ;;  %7308 = vst [vmem:[#allocation65_spill] sm:$0xff] %v6506_v36  ;;  %v5727_v36 = vld [vmem:[%s7242_s0 + $0x278] sm:$0xff]  }
 0x152   :  { %v6508_v13 = vpop.f32.mrf.mxu0  ;;  %5306 = vmatmul.mubr.bf16.gmra.mxu0 %v5723_v37  ;;  %v6510_v55 = vpop.f32.mrf.mxu1  ;;  %5502 = vmatmul.mubr.bf16.gmra.mxu1 %v5724_v0  ;;  %v5728_v37 = vld [vmem:[%s7242_s0 + $0x588] sm:$0xff]   ;;  %v5729_v0 = vld [vmem:[%s7242_s0 + $0x280] sm:$0xff]  }
 0x153   :  { %7309 = vst [vmem:[#allocation66_spill] sm:$0xff] %v6508_v13  ;;  %7310 = vst [vmem:[#allocation67_spill] sm:$0xff] %v6510_v55  ;;  %5309 = vmatprep.mubr.bf16.mxu0 %v5725_v24  ;;  %5505 = vmatprep.mubr.bf16.mxu1 %v5726_v54  ;;  %v5730_v24 = vld [vmem:[%s7242_s0 + $0x590] sm:$0xff]  }
 0x154   :  { %v6512_v26 = vpop.f32.mrf.mxu0  ;;  %v6514_v12 = vpop.f32.mrf.mxu1 }
 0x155   :  { %7311 = vst [vmem:[#allocation68_spill] sm:$0xff] %v6512_v26  ;;  %7312 = vst [vmem:[#allocation69_spill] sm:$0xff] %v6514_v12 }
 0x156   :  { %v6516_v27 = vpop.f32.mrf.mxu0  ;;  %v6518_v25 = vpop.f32.mrf.mxu1 }
 0x157   :  { %7313 = vst [vmem:[#allocation70_spill] sm:$0xff] %v6516_v27  ;;  %7314 = vst [vmem:[#allocation71_spill] sm:$0xff] %v6518_v25 }
 0x158   :  { %v6532_v54 = vpop.f32.mrf.mxu0  ;;  %v6534_v27 = vpop.f32.mrf.mxu1 }
 0x159   :  { %7315 = vst [vmem:[#allocation72_spill] sm:$0xff] %v6532_v54  ;;  %7316 = vst [vmem:[#allocation73_spill] sm:$0xff] %v6534_v27  ;;  %v5731_v27 = vld [vmem:[%s7242_s0 + $0x288] sm:$0xff]  }
 0x15a   :  { %v6536_v25 = vpop.f32.mrf.mxu0  ;;  %5310 = vmatmul.mubr.bf16.gmra.mxu0 %v5727_v36  ;;  %v6538_v55 = vpop.f32.mrf.mxu1  ;;  %5506 = vmatmul.mubr.bf16.gmra.mxu1 %v5728_v37  ;;  %v5732_v36 = vld [vmem:[%s7242_s0 + $0x598] sm:$0xff]   ;;  %v5733_v37 = vld [vmem:[%s7242_s0 + $0x290] sm:$0xff]  }
 0x15b   :  { %7317 = vst [vmem:[#allocation74_spill] sm:$0xff] %v6536_v25  ;;  %7318 = vst [vmem:[#allocation75_spill] sm:$0xff] %v6538_v55  ;;  %5313 = vmatprep.mubr.bf16.mxu0 %v5729_v0  ;;  %5509 = vmatprep.mubr.bf16.mxu1 %v5730_v24  ;;  %v5734_v0 = vld [vmem:[%s7242_s0 + $0x5a0] sm:$0xff]  }
 0x15c   :  { %v6540_v13 = vpop.f32.mrf.mxu0  ;;  %v6542_v12 = vpop.f32.mrf.mxu1 }
 0x15d   :  { %7319 = vst [vmem:[#allocation76_spill] sm:$0xff] %v6540_v13  ;;  %7320 = vst [vmem:[#allocation77_spill] sm:$0xff] %v6542_v12 }
 0x15e   :  { %v6544_v26 = vpop.f32.mrf.mxu0  ;;  %v6546_v1 = vpop.f32.mrf.mxu1 }
 0x15f   :  { %7321 = vst [vmem:[#allocation78_spill] sm:$0xff] %v6544_v26  ;;  %7322 = vst [vmem:[#allocation79_spill] sm:$0xff] %v6546_v1 }
 0x160   :  { %v6560_v24 = vpop.f32.mrf.mxu0  ;;  %v6562_v26 = vpop.f32.mrf.mxu1 }
 0x161   :  { %7323 = vst [vmem:[#allocation80_spill] sm:$0xff] %v6560_v24  ;;  %7324 = vst [vmem:[#allocation81_spill] sm:$0xff] %v6562_v26  ;;  %v5735_v26 = vld [vmem:[%s7242_s0 + $0x298] sm:$0xff]  }
 0x162   :  { %v6564_v1 = vpop.f32.mrf.mxu0  ;;  %5314 = vmatmul.mubr.bf16.gmra.mxu0 %v5731_v27  ;;  %v6566_v55 = vpop.f32.mrf.mxu1  ;;  %5510 = vmatmul.mubr.bf16.gmra.mxu1 %v5732_v36  ;;  %v5736_v27 = vld [vmem:[%s7242_s0 + $0x5a8] sm:$0xff]   ;;  %v5737_v36 = vld [vmem:[%s7242_s0 + $0x2a0] sm:$0xff]  }
 0x163   :  { %7325 = vst [vmem:[#allocation82_spill] sm:$0xff] %v6564_v1  ;;  %7326 = vst [vmem:[#allocation83_spill] sm:$0xff] %v6566_v55  ;;  %5317 = vmatprep.mubr.bf16.mxu0 %v5733_v37  ;;  %5513 = vmatprep.mubr.bf16.mxu1 %v5734_v0  ;;  %v5738_v37 = vld [vmem:[%s7242_s0 + $0x5b0] sm:$0xff]  }
 0x164   :  { %v6568_v25 = vpop.f32.mrf.mxu0  ;;  %v6570_v12 = vpop.f32.mrf.mxu1 }
 0x165   :  { %7327 = vst [vmem:[#allocation84_spill] sm:$0xff] %v6568_v25  ;;  %7328 = vst [vmem:[#allocation85_spill] sm:$0xff] %v6570_v12 }
 0x166   :  { %v6572_v13 = vpop.f32.mrf.mxu0  ;;  %v6574_v54 = vpop.f32.mrf.mxu1 }
 0x167   :  { %7329 = vst [vmem:[#allocation86_spill] sm:$0xff] %v6572_v13  ;;  %7330 = vst [vmem:[#allocation87_spill] sm:$0xff] %v6574_v54 }
 0x168   :  { %v6588_v0 = vpop.f32.mrf.mxu0  ;;  %v6590_v13 = vpop.f32.mrf.mxu1 }
 0x169   :  { %7331 = vst [vmem:[#allocation88_spill] sm:$0xff] %v6588_v0  ;;  %7332 = vst [vmem:[#allocation89_spill] sm:$0xff] %v6590_v13  ;;  %v5739_v13 = vld [vmem:[%s7242_s0 + $0x2a8] sm:$0xff]  }
 0x16a   :  { %v6592_v54 = vpop.f32.mrf.mxu0  ;;  %5318 = vmatmul.mubr.bf16.gmra.mxu0 %v5735_v26  ;;  %v6594_v55 = vpop.f32.mrf.mxu1  ;;  %5514 = vmatmul.mubr.bf16.gmra.mxu1 %v5736_v27  ;;  %v5740_v26 = vld [vmem:[%s7242_s0 + $0x5b8] sm:$0xff]   ;;  %v5741_v27 = vld [vmem:[%s7242_s0 + $0x2b0] sm:$0xff]  }
 0x16b   :  { %7333 = vst [vmem:[#allocation90_spill] sm:$0xff] %v6592_v54  ;;  %7334 = vst [vmem:[#allocation91_spill] sm:$0xff] %v6594_v55  ;;  %5321 = vmatprep.mubr.bf16.mxu0 %v5737_v36  ;;  %5517 = vmatprep.mubr.bf16.mxu1 %v5738_v37  ;;  %v5742_v36 = vld [vmem:[%s7242_s0 + $0x5c0] sm:$0xff]  }
 0x16c   :  { %v6596_v1 = vpop.f32.mrf.mxu0  ;;  %v6598_v12 = vpop.f32.mrf.mxu1 }
 0x16d   :  { %7335 = vst [vmem:[#allocation92_spill] sm:$0xff] %v6596_v1  ;;  %7336 = vst [vmem:[#allocation93_spill] sm:$0xff] %v6598_v12 }
 0x16e   :  { %v6600_v25 = vpop.f32.mrf.mxu0  ;;  %v6602_v24 = vpop.f32.mrf.mxu1 }
 0x16f   :  { %7337 = vst [vmem:[#allocation94_spill] sm:$0xff] %v6600_v25  ;;  %7338 = vst [vmem:[#allocation95_spill] sm:$0xff] %v6602_v24 }
 0x170   :  { %v6616_v37 = vpop.f32.mrf.mxu0  ;;  %v6618_v25 = vpop.f32.mrf.mxu1 }
 0x171   :  { %7339 = vst [vmem:[#allocation96_spill] sm:$0xff] %v6616_v37  ;;  %7340 = vst [vmem:[#allocation97_spill] sm:$0xff] %v6618_v25  ;;  %v5743_v25 = vld [vmem:[%s7242_s0 + $0x2b8] sm:$0xff]  }
 0x172   :  { %v6620_v24 = vpop.f32.mrf.mxu0  ;;  %5322 = vmatmul.mubr.bf16.gmra.mxu0 %v5739_v13  ;;  %v6622_v55 = vpop.f32.mrf.mxu1  ;;  %5518 = vmatmul.mubr.bf16.gmra.mxu1 %v5740_v26  ;;  %v5744_v13 = vld [vmem:[%s7242_s0 + $0x5c8] sm:$0xff]   ;;  %v5745_v26 = vld [vmem:[%s7242_s0 + $0x2c0] sm:$0xff]  }
 0x173   :  { %7341 = vst [vmem:[#allocation98_spill] sm:$0xff] %v6620_v24  ;;  %7342 = vst [vmem:[#allocation99_spill] sm:$0xff] %v6622_v55  ;;  %5325 = vmatprep.mubr.bf16.mxu0 %v5741_v27  ;;  %5521 = vmatprep.mubr.bf16.mxu1 %v5742_v36  ;;  %v5746_v27 = vld [vmem:[%s7242_s0 + $0x5d0] sm:$0xff]  }
 0x174   :  { %v6624_v54 = vpop.f32.mrf.mxu0  ;;  %v6626_v12 = vpop.f32.mrf.mxu1 }
 0x175   :  { %7343 = vst [vmem:[#allocation100_spill] sm:$0xff] %v6624_v54  ;;  %7344 = vst [vmem:[#allocation101_spill] sm:$0xff] %v6626_v12 }
 0x176   :  { %v6628_v1 = vpop.f32.mrf.mxu0  ;;  %v6630_v0 = vpop.f32.mrf.mxu1 }
 0x177   :  { %7345 = vst [vmem:[#allocation102_spill] sm:$0xff] %v6628_v1  ;;  %7346 = vst [vmem:[#allocation103_spill] sm:$0xff] %v6630_v0 }
 0x178   :  { %v6644_v36 = vpop.f32.mrf.mxu0  ;;  %v6646_v1 = vpop.f32.mrf.mxu1 }
 0x179   :  { %7347 = vst [vmem:[#allocation104_spill] sm:$0xff] %v6644_v36  ;;  %7348 = vst [vmem:[#allocation105_spill] sm:$0xff] %v6646_v1  ;;  %v5747_v1 = vld [vmem:[%s7242_s0 + $0x2c8] sm:$0xff]  }
 0x17a   :  { %v6648_v0 = vpop.f32.mrf.mxu0  ;;  %5326 = vmatmul.mubr.bf16.gmra.mxu0 %v5743_v25  ;;  %v6650_v55 = vpop.f32.mrf.mxu1  ;;  %5522 = vmatmul.mubr.bf16.gmra.mxu1 %v5744_v13  ;;  %v5748_v25 = vld [vmem:[%s7242_s0 + $0x5d8] sm:$0xff]   ;;  %v5749_v13 = vld [vmem:[%s7242_s0 + $0x2d0] sm:$0xff]  }
 0x17b   :  { %7349 = vst [vmem:[#allocation106_spill] sm:$0xff] %v6648_v0  ;;  %7350 = vst [vmem:[#allocation107_spill] sm:$0xff] %v6650_v55  ;;  %5329 = vmatprep.mubr.bf16.mxu0 %v5745_v26  ;;  %5525 = vmatprep.mubr.bf16.mxu1 %v5746_v27  ;;  %v5750_v26 = vld [vmem:[%s7242_s0 + $0x5e0] sm:$0xff]  }
 0x17c   :  { %v6652_v24 = vpop.f32.mrf.mxu0  ;;  %v6654_v12 = vpop.f32.mrf.mxu1 }
 0x17d   :  { %7351 = vst [vmem:[#allocation108_spill] sm:$0xff] %v6652_v24  ;;  %7352 = vst [vmem:[#allocation109_spill] sm:$0xff] %v6654_v12 }
 0x17e   :  { %v6656_v54 = vpop.f32.mrf.mxu0  ;;  %v6658_v37 = vpop.f32.mrf.mxu1 }
 0x17f   :  { %7353 = vst [vmem:[#allocation110_spill] sm:$0xff] %v6656_v54  ;;  %7354 = vst [vmem:[#allocation111_spill] sm:$0xff] %v6658_v37 }
 0x180   :  { %v6672_v27 = vpop.f32.mrf.mxu0  ;;  %v6674_v54 = vpop.f32.mrf.mxu1 }
 0x181   :  { %7355 = vst [vmem:[#allocation112_spill] sm:$0xff] %v6672_v27  ;;  %7356 = vst [vmem:[#allocation113_spill] sm:$0xff] %v6674_v54  ;;  %v5751_v54 = vld [vmem:[%s7242_s0 + $0x2d8] sm:$0xff]  }
 0x182   :  { %v6676_v37 = vpop.f32.mrf.mxu0  ;;  %5330 = vmatmul.mubr.bf16.gmra.mxu0 %v5747_v1  ;;  %v6678_v55 = vpop.f32.mrf.mxu1  ;;  %5526 = vmatmul.mubr.bf16.gmra.mxu1 %v5748_v25  ;;  %v5752_v1 = vld [vmem:[%s7242_s0 + $0x5e8] sm:$0xff]   ;;  %v5753_v25 = vld [vmem:[%s7242_s0 + $0x2e0] sm:$0xff]  }
 0x183   :  { %7357 = vst [vmem:[#allocation114_spill] sm:$0xff] %v6676_v37  ;;  %7358 = vst [vmem:[#allocation115_spill] sm:$0xff] %v6678_v55  ;;  %5333 = vmatprep.mubr.bf16.mxu0 %v5749_v13  ;;  %5529 = vmatprep.mubr.bf16.mxu1 %v5750_v26  ;;  %v5754_v13 = vld [vmem:[%s7242_s0 + $0x5f0] sm:$0xff]  }
 0x184   :  { %v6680_v0 = vpop.f32.mrf.mxu0  ;;  %v6682_v12 = vpop.f32.mrf.mxu1 }
 0x185   :  { %7359 = vst [vmem:[#allocation116_spill] sm:$0xff] %v6680_v0  ;;  %7360 = vst [vmem:[#allocation117_spill] sm:$0xff] %v6682_v12 }
 0x186   :  { %v6684_v24 = vpop.f32.mrf.mxu0  ;;  %v6686_v36 = vpop.f32.mrf.mxu1 }
 0x187   :  { %7361 = vst [vmem:[#allocation118_spill] sm:$0xff] %v6684_v24  ;;  %7362 = vst [vmem:[#allocation119_spill] sm:$0xff] %v6686_v36 }
 0x188   :  { %v6700_v26 = vpop.f32.mrf.mxu0  ;;  %v6702_v24 = vpop.f32.mrf.mxu1 }
 0x189   :  { %7363 = vst [vmem:[#allocation120_spill] sm:$0xff] %v6700_v26  ;;  %7364 = vst [vmem:[#allocation121_spill] sm:$0xff] %v6702_v24  ;;  %v5755_v24 = vld [vmem:[%s7242_s0 + $0x2e8] sm:$0xff]  }
 0x18a   :  { %v6704_v36 = vpop.f32.mrf.mxu0  ;;  %5334 = vmatmul.mubr.bf16.gmra.mxu0 %v5751_v54  ;;  %v6706_v55 = vpop.f32.mrf.mxu1  ;;  %5530 = vmatmul.mubr.bf16.gmra.mxu1 %v5752_v1  ;;  %v5756_v54 = vld [vmem:[%s7242_s0 + $0x5f8] sm:$0xff]   ;;  %v5757_v1 = vld [vmem:[%s7242_s0 + $0x2f0] sm:$0xff]  }
 0x18b   :  { %7365 = vst [vmem:[#allocation122_spill] sm:$0xff] %v6704_v36  ;;  %7366 = vst [vmem:[#allocation123_spill] sm:$0xff] %v6706_v55  ;;  %5337 = vmatprep.mubr.bf16.mxu0 %v5753_v25  ;;  %5533 = vmatprep.mubr.bf16.mxu1 %v5754_v13  ;;  %v5758_v25 = vld [vmem:[%s7242_s0 + $0x600] sm:$0xff]  }
 0x18c   :  { %v6708_v37 = vpop.f32.mrf.mxu0  ;;  %v6710_v12 = vpop.f32.mrf.mxu1 }
 0x18d   :  { %7367 = vst [vmem:[#allocation124_spill] sm:$0xff] %v6708_v37  ;;  %7368 = vst [vmem:[#allocation125_spill] sm:$0xff] %v6710_v12 }
 0x18e   :  { %v6712_v0 = vpop.f32.mrf.mxu0  ;;  %v6714_v27 = vpop.f32.mrf.mxu1 }
 0x18f   :  { %7369 = vst [vmem:[#allocation126_spill] sm:$0xff] %v6712_v0  ;;  %7370 = vst [vmem:[#allocation127_spill] sm:$0xff] %v6714_v27 }
 0x190   :  { %v6728_v13 = vpop.f32.mrf.mxu0  ;;  %v6730_v0 = vpop.f32.mrf.mxu1 }
 0x191   :  { %7371 = vst [vmem:[#allocation128_spill] sm:$0xff] %v6728_v13  ;;  %7372 = vst [vmem:[#allocation129_spill] sm:$0xff] %v6730_v0  ;;  %v5759_v0 = vld [vmem:[%s7242_s0 + $0x2f8] sm:$0xff]  }
 0x192   :  { %v6732_v27 = vpop.f32.mrf.mxu0  ;;  %5338 = vmatmul.mubr.bf16.gmra.mxu0 %v5755_v24  ;;  %v6734_v55 = vpop.f32.mrf.mxu1  ;;  %5534 = vmatmul.mubr.bf16.gmra.mxu1 %v5756_v54  ;;  %v5760_v24 = vld [vmem:[%s7242_s0 + $0x608] sm:$0xff]   ;;  %v5761_v54 = vld [vmem:[%s7242_s0 + $0x300] sm:$0xff]  }
 0x193   :  { %7373 = vst [vmem:[#allocation130_spill] sm:$0xff] %v6732_v27  ;;  %7374 = vst [vmem:[#allocation131_spill] sm:$0xff] %v6734_v55  ;;  %5341 = vmatprep.mubr.bf16.mxu0 %v5757_v1  ;;  %5537 = vmatprep.mubr.bf16.mxu1 %v5758_v25  ;;  %v5762_v1 = vld [vmem:[%s7242_s0 + $0x610] sm:$0xff]  }
 0x194   :  { %v6736_v36 = vpop.f32.mrf.mxu0  ;;  %v6738_v12 = vpop.f32.mrf.mxu1 }
 0x195   :  { %7375 = vst [vmem:[#allocation132_spill] sm:$0xff] %v6736_v36  ;;  %7376 = vst [vmem:[#allocation133_spill] sm:$0xff] %v6738_v12 }
 0x196   :  { %v6740_v37 = vpop.f32.mrf.mxu0  ;;  %v6742_v26 = vpop.f32.mrf.mxu1 }
 0x197   :  { %7377 = vst [vmem:[#allocation134_spill] sm:$0xff] %v6740_v37  ;;  %7378 = vst [vmem:[#allocation135_spill] sm:$0xff] %v6742_v26 }
 0x198   :  { %v6756_v25 = vpop.f32.mrf.mxu0  ;;  %v6758_v37 = vpop.f32.mrf.mxu1 }
 0x199   :  { %7379 = vst [vmem:[#allocation136_spill] sm:$0xff] %v6756_v25  ;;  %7380 = vst [vmem:[#allocation137_spill] sm:$0xff] %v6758_v37  ;;  %v5763_v37 = vld [vmem:[%s7242_s0 + $0x308] sm:$0xff]   ;;  %v6791_v25 = vld [vmem:[%s7243_s2] ss:$0 sm:$0xff] }
 0x19a   :  { %v6760_v26 = vpop.f32.mrf.mxu0  ;;  %5342 = vmatmul.mubr.bf16.gmra.mxu0 %v5759_v0  ;;  %v6762_v55 = vpop.f32.mrf.mxu1  ;;  %5538 = vmatmul.mubr.bf16.gmra.mxu1 %v5760_v24  ;;  %v5764_v0 = vld [vmem:[%s7242_s0 + $0x618] sm:$0xff]  }
 0x19b   :  { %7381 = vst [vmem:[#allocation138_spill] sm:$0xff] %v6760_v26  ;;  %7382 = vst [vmem:[#allocation139_spill] sm:$0xff] %v6762_v55  ;;  %5345 = vmatprep.mubr.bf16.mxu0 %v5761_v54  ;;  %5541 = vmatprep.mubr.bf16.mxu1 %v5762_v1 }
 0x19c   :  { %v6764_v27 = vpop.f32.mrf.mxu0  ;;  %v6766_v12 = vpop.f32.mrf.mxu1 }
 0x19d   :  { %7383 = vst [vmem:[#allocation140_spill] sm:$0xff] %v6764_v27  ;;  %7384 = vst [vmem:[#allocation141_spill] sm:$0xff] %v6766_v12 }
 0x19e   :  { %v6768_v36 = vpop.f32.mrf.mxu0  ;;  %v6770_v13 = vpop.f32.mrf.mxu1 }
 0x19f   :  { %7385 = vst [vmem:[#allocation142_spill] sm:$0xff] %v6768_v36  ;;  %7386 = vst [vmem:[#allocation143_spill] sm:$0xff] %v6770_v13 }
 0x1a0   :  { %v6778_v55 = vpop.f32.mrf.mxu0  ;;  %v6780_v24 = vpop.f32.mrf.mxu1 }
 0x1a1   :  { %7387 = vst [vmem:[#allocation144_spill] sm:$0xff] %v6778_v55  ;;  %7388 = vst [vmem:[#allocation145_spill] sm:$0xff] %v6780_v24 }
 0x1a2   :  { %v5251_v54 = vpop.f32.mrf.mxu0  ;;  %5346 = vmatmul.mubr.bf16.gmra.mxu0 %v5763_v37  ;;  %v5447_v1 = vpop.f32.mrf.mxu1  ;;  %5542 = vmatmul.mubr.bf16.gmra.mxu1 %v5764_v0 }
 0x1a3   :  { %v3248_v36 = vmax.f32 %v6120_v48, %v5251_v54  ;;  %v3346_v13 = vmax.f32 %v6122_v49, %v5447_v1 }
 0x1a4   :  { %v6784_v26 = vpop.f32.mrf.mxu0  ;;  %v6786_v12 = vpop.f32.mrf.mxu1 }
 0x1a5   :  { %7389 = vst [vmem:[#allocation146_spill] sm:$0xff] %v6784_v26  ;;  %7390 = vst [vmem:[#allocation147_spill] sm:$0xff] %v6786_v12  ;;  %v3444_v27 = vmax.f32 %v3248_v36, %v3346_v13 }
 0x1a6   :  { %v5252_v55 = vpop.f32.mrf.mxu0  ;;  %v5448_v24 = vpop.f32.mrf.mxu1 }
 0x1a7   :  { %v3249_v37 = vmax.f32 %v6140_v56, %v5252_v55  ;;  %v3347_v0 = vmax.f32 %v6142_v57, %v5448_v24  ;;  %v3549_v49 = vadd.f32 %v6791_v25, %v3444_v27 }
 0x1a8   :  { %v6795_v53 = vpop.f32.mrf.mxu0  ;;  %v6797_v48 = vpop.f32.mrf.mxu1 }
 0x1a9   :  { %7391 = vst [vmem:[#allocation148_spill] sm:$0xff] %v6795_v53  ;;  %7392 = vst [vmem:[#allocation149_spill] sm:$0xff] %v6797_v48  ;;  %v3445_v54 = vmax.f32 %v3249_v37, %v3347_v0  ;;  %v3647_v56 = vmax.f32 %v3549_v49, 0.0 }
 0x1aa   :  { %v5255_v1 = vpop.f32.mrf.mxu0  ;;  %v5451_v36 = vpop.f32.mrf.mxu1 }
 0x1ab   :  { %v3550_v13 = vadd.f32 %v6791_v25, %v3445_v54  ;;  %v3252_v12 = vmax.f32 %v6148_v60, %v5255_v1  ;;  %v3350_v26 = vmax.f32 %v6150_v61, %v5451_v36 }
 0x1ac   :  { %v2081_v52 = vpop.f32.mrf.mxu0  ;;  %v2865_v39 = vpop.f32.mrf.mxu1 }
 0x1ad   :  { %v3648_v55 = vmax.f32 %v3550_v13, 0.0  ;;  %v3250_v57 = vmax.f32 %v6116_v46, %v2081_v52  ;;  %v3348_v24 = vmax.f32 %v6118_v47, %v2865_v39  ;;  %v3448_v48 = vmax.f32 %v3252_v12, %v3350_v26 }
 0x1ae   :  { %v5256_v53 = vpop.f32.mrf.mxu0  ;;  %v5452_v27 = vpop.f32.mrf.mxu1 }
 0x1af   :  { %v4643_v37 = vpack.c.bf16 %v3648_v55, %v3647_v56  ;;  %v3446_v0 = vmax.f32 %v3250_v57, %v3348_v24  ;;  %v3253_v38 = vmax.f32 %v6168_v4, %v5256_v53  ;;  %v3351_v54 = vmax.f32 %v6170_v5, %v5452_v27 }
 0x1b0   :  { %v2084_v60 = vpop.f32.mrf.mxu0  ;;  %v2868_v1 = vpop.f32.mrf.mxu1  ;;  %v3553_v47 = vadd.f32 %v6791_v25, %v3448_v48 }
 0x1b1   :  { %4644 = vst [vmem:[%s7244_s3] sm:$0xff] %v4643_v37   ;;  %v3251_v61 = vmax.f32 %v6124_v50, %v2084_v60  ;;  %v3349_v46 = vmax.f32 %v6126_v51, %v2868_v1  ;;  %v3449_v52 = vmax.f32 %v3253_v38, %v3351_v54  ;;  %v3551_v26 = vadd.f32 %v6791_v25, %v3446_v0 }
 0x1b2   :  { %v5259_v12 = vpop.f32.mrf.mxu0  ;;  %v5455_v39 = vpop.f32.mrf.mxu1  ;;  %v3651_v38 = vmax.f32 %v3553_v47, 0.0 }
 0x1b3   :  { %v3447_v4 = vmax.f32 %v3251_v61, %v3349_v46  ;;  %v3256_v5 = vmax.f32 %v6176_v8, %v5259_v12  ;;  %v3354_v53 = vmax.f32 %v6178_v9, %v5455_v39  ;;  %v3554_v49 = vadd.f32 %v6791_v25, %v3449_v52 }
 0x1b4   :  { %v2097_v36 = vpop.f32.mrf.mxu0  ;;  %v2881_v13 = vpop.f32.mrf.mxu1  ;;  %v3649_v27 = vmax.f32 %v3551_v26, 0.0 }
 0x1b5   :  { %v3552_v50 = vadd.f32 %v6791_v25, %v3447_v4  ;;  %v3254_v51 = vmax.f32 %v6144_v58, %v2097_v36  ;;  %v3352_v48 = vmax.f32 %v6146_v59, %v2881_v13  ;;  %v3652_v56 = vmax.f32 %v3554_v49, 0.0 }
 0x1b6   :  { %v3452_v55 = vmax.f32 %v3256_v5, %v3354_v53  ;;  %v5260_v57 = vpop.f32.mrf.mxu0  ;;  %v5456_v24 = vpop.f32.mrf.mxu1 }
 0x1b7   :  { %v3650_v37 = vmax.f32 %v3552_v50, 0.0  ;;  %v3257_v8 = vmax.f32 %v6196_v16, %v5260_v57  ;;  %v4653_v9 = vpack.c.bf16 %v3652_v56, %v3651_v38  ;;  %v3450_v0 = vmax.f32 %v3254_v51, %v3352_v48 }
 0x1b8   :  { %v3355_v54 = vmax.f32 %v6198_v17, %v5456_v24  ;;  %v2100_v60 = vpop.f32.mrf.mxu0  ;;  %v2884_v1 = vpop.f32.mrf.mxu1  ;;  %v3557_v59 = vadd.f32 %v6791_v25, %v3452_v55 }
 0x1b9   :  { %v4648_v61 = vpack.c.bf16 %v3650_v37, %v3649_v27  ;;  %v3255_v58 = vmax.f32 %v6152_v62, %v2100_v60  ;;  %4886 = vst [vmem:[%s7244_s3 + $0x10] sm:$0xff] %v4653_v9   ;;  %v3353_v47 = vmax.f32 %v6154_v63, %v2884_v1  ;;  %v3555_v62 = vadd.f32 %v6791_v25, %v3450_v0 }
 0x1ba   :  { %v3453_v46 = vmax.f32 %v3257_v8, %v3355_v54  ;;  %v5263_v52 = vpop.f32.mrf.mxu0  ;;  %v5459_v16 = vpop.f32.mrf.mxu1  ;;  %v3655_v36 = vmax.f32 %v3557_v59, 0.0 }
 0x1bb   :  { %4885 = vst [vmem:[%s7244_s3 + $0x8] sm:$0xff] %v4648_v61   ;;  %v3260_v17 = vmax.f32 %v6204_v20, %v5263_v52  ;;  %v3358_v12 = vmax.f32 %v6206_v21, %v5459_v16  ;;  %v3451_v26 = vmax.f32 %v3255_v58, %v3353_v47  ;;  %v3653_v38 = vmax.f32 %v3555_v62, 0.0 }
 0x1bc   :  { %v3558_v39 = vadd.f32 %v6791_v25, %v3453_v46  ;;  %v2113_v4 = vpop.f32.mrf.mxu0  ;;  %v2897_v5 = vpop.f32.mrf.mxu1 }
 0x1bd   :  { %v3456_v53 = vmax.f32 %v3260_v17, %v3358_v12  ;;  %v3258_v63 = vmax.f32 %v6172_v6, %v2113_v4  ;;  %v3356_v49 = vmax.f32 %v6174_v7, %v2897_v5  ;;  %v3556_v50 = vadd.f32 %v6791_v25, %v3451_v26 }
 0x1be   :  { %v3656_v13 = vmax.f32 %v3558_v39, 0.0  ;;  %v5264_v51 = vpop.f32.mrf.mxu0  ;;  %v5460_v20 = vpop.f32.mrf.mxu1 }
 0x1bf   :  { %v3261_v21 = vmax.f32 %v6224_v28, %v5264_v51  ;;  %v3359_v48 = vmax.f32 %v6226_v29, %v5460_v20  ;;  %v3654_v55 = vmax.f32 %v3556_v50, 0.0  ;;  %v3454_v57 = vmax.f32 %v3258_v63, %v3356_v49 }
 0x1c0   :  { %v4663_v56 = vpack.c.bf16 %v3656_v13, %v3655_v36  ;;  %v2116_v24 = vpop.f32.mrf.mxu0  ;;  %v2900_v27 = vpop.f32.mrf.mxu1  ;;  %v3561_v6 = vadd.f32 %v6791_v25, %v3456_v53 }
 0x1c1   :  { %v3457_v37 = vmax.f32 %v3261_v21, %v3359_v48  ;;  %v3259_v7 = vmax.f32 %v6180_v10, %v2116_v24  ;;  %v4658_v8 = vpack.c.bf16 %v3654_v55, %v3653_v38  ;;  %v3357_v28 = vmax.f32 %v6182_v11, %v2900_v27 }
 0x1c2   :  { %4888 = vst [vmem:[%s7244_s3 + $0x20] sm:$0xff] %v4663_v56   ;;  %v5267_v9 = vpop.f32.mrf.mxu0  ;;  %v5463_v29 = vpop.f32.mrf.mxu1  ;;  %v3559_v10 = vadd.f32 %v6791_v25, %v3454_v57  ;;  %v3659_v59 = vmax.f32 %v3561_v6, 0.0 }
 0x1c3   :  { %v3562_v0 = vadd.f32 %v6791_v25, %v3457_v37  ;;  %v3264_v54 = vmax.f32 %v6232_v32, %v5267_v9  ;;  %v3362_v60 = vmax.f32 %v6234_v33, %v5463_v29  ;;  %4887 = vst [vmem:[%s7244_s3 + $0x18] sm:$0xff] %v4658_v8   ;;  %v3455_v1 = vmax.f32 %v3259_v7, %v3357_v28 }
 0x1c4   :  { %v2129_v61 = vpop.f32.mrf.mxu0  ;;  %v2913_v58 = vpop.f32.mrf.mxu1  ;;  %v3657_v39 = vmax.f32 %v3559_v10, 0.0 }
 0x1c5   :  { %v3660_v46 = vmax.f32 %v3562_v0, 0.0  ;;  %v3262_v11 = vmax.f32 %v6200_v18, %v2129_v61  ;;  %v3360_v47 = vmax.f32 %v6202_v19, %v2913_v58  ;;  %v3560_v52 = vadd.f32 %v6791_v25, %v3455_v1 }
 0x1c6   :  { %v3460_v32 = vmax.f32 %v3264_v54, %v3362_v60  ;;  %v5268_v16 = vpop.f32.mrf.mxu0  ;;  %v5464_v33 = vpop.f32.mrf.mxu1 }
 0x1c7   :  { %v4673_v17 = vpack.c.bf16 %v3660_v46, %v3659_v59  ;;  %v3458_v12 = vmax.f32 %v3262_v11, %v3360_v47  ;;  %v3265_v62 = vmax.f32 %v6252_v40, %v5268_v16  ;;  %v3658_v26 = vmax.f32 %v3560_v52, 0.0 }
 0x1c8   :  { %v3363_v4 = vmax.f32 %v6254_v41, %v5464_v33  ;;  %v2132_v5 = vpop.f32.mrf.mxu0  ;;  %v2916_v53 = vpop.f32.mrf.mxu1  ;;  %v3565_v49 = vadd.f32 %v6791_v25, %v3460_v32 }
 0x1c9   :  { %4890 = vst [vmem:[%s7244_s3 + $0x30] sm:$0xff] %v4673_v17   ;;  %v3263_v18 = vmax.f32 %v6208_v22, %v2132_v5  ;;  %v3361_v19 = vmax.f32 %v6210_v23, %v2916_v53  ;;  %v4668_v63 = vpack.c.bf16 %v3658_v26, %v3657_v39  ;;  %v3563_v50 = vadd.f32 %v6791_v25, %v3458_v12  ;;  %v7393_v17 = vld [vmem:[#allocation8_spill] sm:$0xff]  ;;  %v7394_v12 = vld [vmem:[#allocation9_spill] sm:$0xff] }
 0x1ca   :  { %v3461_v36 = vmax.f32 %v3265_v62, %v3363_v4  ;;  %v5271_v13 = vpop.f32.mrf.mxu0  ;;  %v5467_v40 = vpop.f32.mrf.mxu1  ;;  %v3663_v55 = vmax.f32 %v3565_v49, 0.0 }
 0x1cb   :  { %v3459_v51 = vmax.f32 %v3263_v18, %v3361_v19  ;;  %v3268_v41 = vmax.f32 %v6260_v44, %v5271_v13  ;;  %v3366_v20 = vmax.f32 %v6262_v45, %v5467_v40  ;;  %4889 = vst [vmem:[%s7244_s3 + $0x28] sm:$0xff] %v4668_v63   ;;  %v3661_v45 = vmax.f32 %v3563_v50, 0.0 }
 0x1cc   :  { %v3566_v22 = vadd.f32 %v6791_v25, %v3461_v36  ;;  %v2145_v23 = vpop.f32.mrf.mxu0  ;;  %v2929_v21 = vpop.f32.mrf.mxu1  ;;  %v7396_v36 = vld [vmem:[#allocation3_spill] sm:$0xff] }
 0x1cd   :  { %v3564_v48 = vadd.f32 %v6791_v25, %v3459_v51  ;;  %v3266_v38 = vmax.f32 %v6228_v30, %v2145_v23  ;;  %v3364_v56 = vmax.f32 %v6230_v31, %v2929_v21  ;;  %v3464_v24 = vmax.f32 %v3268_v41, %v3366_v20  ;;  %v7397_v41 = vld [vmem:[#allocation12_spill] sm:$0xff] }
 0x1ce   :  { %v3664_v57 = vmax.f32 %v3566_v22, 0.0  ;;  %v5272_v44 = vpop.f32.mrf.mxu0  ;;  %v5468_v27 = vpop.f32.mrf.mxu1  ;;  %v7398_v22 = vld [vmem:[#allocation13_spill] sm:$0xff] }
 0x1cf   :  { %v3662_v6 = vmax.f32 %v3564_v48, 0.0  ;;  %v3269_v37 = vmax.f32 %v6280_v2, %v5272_v44  ;;  %v3462_v8 = vmax.f32 %v3266_v38, %v3364_v56  ;;  %v3367_v28 = vmax.f32 %v6282_v3, %v5468_v27  ;;  %v7400_v27 = vld [vmem:[#allocation5_spill] sm:$0xff] }
 0x1d0   :  { %v4683_v7 = vpack.c.bf16 %v3664_v57, %v3663_v55  ;;  %v2148_v9 = vpop.f32.mrf.mxu0  ;;  %v2932_v29 = vpop.f32.mrf.mxu1  ;;  %v3569_v31 = vadd.f32 %v6791_v25, %v3464_v24  ;;  %v7399_v24 = vld [vmem:[#allocation4_spill] sm:$0xff] }
 0x1d1   :  { %v4678_v0 = vpack.c.bf16 %v3662_v6, %v3661_v45  ;;  %v3267_v30 = vmax.f32 %v6236_v34, %v2148_v9  ;;  %v3465_v54 = vmax.f32 %v3269_v37, %v3367_v28  ;;  %v3365_v60 = vmax.f32 %v6238_v35, %v2932_v29  ;;  %v7401_v29 = vld [vmem:[#allocation16_spill] sm:$0xff] }
 0x1d2   :  { %4892 = vst [vmem:[%s7244_s3 + $0x40] sm:$0xff] %v4683_v7   ;;  %v5275_v10 = vpop.f32.mrf.mxu0  ;;  %v5471_v2 = vpop.f32.mrf.mxu1  ;;  %v3567_v34 = vadd.f32 %v6791_v25, %v3462_v8  ;;  %v3667_v52 = vmax.f32 %v3569_v31, 0.0 }
 0x1d3   :  { %4891 = vst [vmem:[%s7244_s3 + $0x38] sm:$0xff] %v4678_v0   ;;  %v3272_v3 = vmax.f32 %v6288_v14, %v5275_v10  ;;  %v3370_v1 = vmax.f32 %v6290_v15, %v5471_v2  ;;  %v3570_v61 = vadd.f32 %v6791_v25, %v3465_v54  ;;  %v3463_v58 = vmax.f32 %v3267_v30, %v3365_v60  ;;  %v7402_v54 = vld [vmem:[#allocation17_spill] sm:$0xff] }
 0x1d4   :  { %v2161_v59 = vpop.f32.mrf.mxu0  ;;  %v2945_v46 = vpop.f32.mrf.mxu1  ;;  %v3665_v39 = vmax.f32 %v3567_v34, 0.0  ;;  %v7404_v34 = vld [vmem:[#allocation7_spill] sm:$0xff] }
 0x1d5   :  { %v3468_v11 = vmax.f32 %v3272_v3, %v3370_v1  ;;  %v3270_v35 = vmax.f32 %v6256_v42, %v2161_v59  ;;  %v3368_v47 = vmax.f32 %v6258_v43, %v2945_v46  ;;  %v3668_v32 = vmax.f32 %v3570_v61, 0.0  ;;  %v7395_v43 = vld [vmem:[#allocation2_spill] sm:$0xff] }
 0x1d6   :  { %v3568_v16 = vadd.f32 %v6791_v25, %v3463_v58  ;;  %v5276_v33 = vpop.f32.mrf.mxu0  ;;  %v5472_v14 = vpop.f32.mrf.mxu1  ;;  %v7403_v3 = vld [vmem:[#allocation6_spill] sm:$0xff] }
 0x1d7   :  { %v3273_v15 = vmax.f32 %v7393_v17, %v5276_v33  ;;  %v3371_v62 = vmax.f32 %v7394_v12, %v5472_v14  ;;  %v4693_v26 = vpack.c.bf16 %v3668_v32, %v3667_v52  ;;  %v3466_v5 = vmax.f32 %v3270_v35, %v3368_v47  ;;  %v7405_v32 = vld [vmem:[#allocation20_spill] sm:$0xff]  ;;  %v7406_v33 = vld [vmem:[#allocation21_spill] sm:$0xff] }
 0x1d8   :  { %v3666_v4 = vmax.f32 %v3568_v16, 0.0  ;;  %v2164_v53 = vpop.f32.mrf.mxu0  ;;  %v2948_v18 = vpop.f32.mrf.mxu1  ;;  %v3573_v42 = vadd.f32 %v6791_v25, %v3468_v11 }
 0x1d9   :  { %v3469_v19 = vmax.f32 %v3273_v15, %v3371_v62  ;;  %v3271_v63 = vmax.f32 %v7395_v43, %v2164_v53  ;;  %4894 = vst [vmem:[%s7244_s3 + $0x50] sm:$0xff] %v4693_v26   ;;  %v3369_v13 = vmax.f32 %v7396_v36, %v2948_v18  ;;  %v3571_v21 = vadd.f32 %v6791_v25, %v3466_v5  ;;  %v7409_v36 = vld [vmem:[#allocation24_spill] sm:$0xff] }
 0x1da   :  { %v4688_v49 = vpack.c.bf16 %v3666_v4, %v3665_v39  ;;  %v5279_v40 = vpop.f32.mrf.mxu0  ;;  %v5475_v50 = vpop.f32.mrf.mxu1  ;;  %v3671_v55 = vmax.f32 %v3573_v42, 0.0  ;;  %v7407_v39 = vld [vmem:[#allocation10_spill] sm:$0xff]  ;;  %v7408_v4 = vld [vmem:[#allocation11_spill] sm:$0xff] }
 0x1db   :  { %v3574_v51 = vadd.f32 %v6791_v25, %v3469_v19  ;;  %v3276_v20 = vmax.f32 %v7397_v41, %v5279_v40  ;;  %v3374_v23 = vmax.f32 %v7398_v22, %v5475_v50  ;;  %v3467_v48 = vmax.f32 %v3271_v63, %v3369_v13 }
 0x1dc   :  { %4893 = vst [vmem:[%s7244_s3 + $0x48] sm:$0xff] %v4688_v49   ;;  %v2177_v38 = vpop.f32.mrf.mxu0  ;;  %v2961_v56 = vpop.f32.mrf.mxu1  ;;  %v3669_v30 = vmax.f32 %v3571_v21, 0.0  ;;  %v7411_v21 = vld [vmem:[#allocation14_spill] sm:$0xff] }
 0x1dd   :  { %v3672_v57 = vmax.f32 %v3574_v51, 0.0  ;;  %v3274_v44 = vmax.f32 %v7399_v24, %v2177_v38  ;;  %v3372_v45 = vmax.f32 %v7400_v27, %v2961_v56  ;;  %v3572_v6 = vadd.f32 %v6791_v25, %v3467_v48  ;;  %v7410_v51 = vld [vmem:[#allocation25_spill] sm:$0xff]  ;;  %v7413_v27 = vld [vmem:[#allocation28_spill] sm:$0xff] }
 0x1de   :  { %v3472_v37 = vmax.f32 %v3276_v20, %v3374_v23  ;;  %v5280_v7 = vpop.f32.mrf.mxu0  ;;  %v5476_v8 = vpop.f32.mrf.mxu1 }
 0x1df   :  { %v4703_v28 = vpack.c.bf16 %v3672_v57, %v3671_v55  ;;  %v3470_v9 = vmax.f32 %v3274_v44, %v3372_v45  ;;  %v3277_v0 = vmax.f32 %v7401_v29, %v5280_v7  ;;  %v3670_v31 = vmax.f32 %v3572_v6, 0.0  ;;  %v7412_v55 = vld [vmem:[#allocation15_spill] sm:$0xff]  ;;  %v7414_v6 = vld [vmem:[#allocation29_spill] sm:$0xff] }
 0x1e0   :  { %v3375_v60 = vmax.f32 %v7402_v54, %v5476_v8  ;;  %v2180_v10 = vpop.f32.mrf.mxu0  ;;  %v2964_v2 = vpop.f32.mrf.mxu1  ;;  %v3577_v59 = vadd.f32 %v6791_v25, %v3472_v37  ;;  %v7416_v54 = vld [vmem:[#allocation19_spill] sm:$0xff] }
 0x1e1   :  { %4896 = vst [vmem:[%s7244_s3 + $0x60] sm:$0xff] %v4703_v28   ;;  %v3275_v1 = vmax.f32 %v7403_v3, %v2180_v10  ;;  %v3373_v61 = vmax.f32 %v7404_v34, %v2964_v2  ;;  %v4698_v58 = vpack.c.bf16 %v3670_v31, %v3669_v30  ;;  %v3575_v47 = vadd.f32 %v6791_v25, %v3470_v9  ;;  %v7415_v30 = vld [vmem:[#allocation18_spill] sm:$0xff] }
 0x1e2   :  { %v3473_v46 = vmax.f32 %v3277_v0, %v3375_v60  ;;  %v5283_v11 = vpop.f32.mrf.mxu0  ;;  %v5479_v35 = vpop.f32.mrf.mxu1  ;;  %v3675_v53 = vmax.f32 %v3577_v59, 0.0  ;;  %v7418_v59 = vld [vmem:[#allocation33_spill] sm:$0xff] }
 0x1e3   :  { %v3471_v52 = vmax.f32 %v3275_v1, %v3373_v61  ;;  %v3280_v16 = vmax.f32 %v7405_v32, %v5283_v11  ;;  %v3378_v14 = vmax.f32 %v7406_v33, %v5479_v35  ;;  %4895 = vst [vmem:[%s7244_s3 + $0x58] sm:$0xff] %v4698_v58   ;;  %v3673_v63 = vmax.f32 %v3575_v47, 0.0  ;;  %v7417_v61 = vld [vmem:[#allocation32_spill] sm:$0xff] }
 0x1e4   :  { %v3578_v17 = vadd.f32 %v6791_v25, %v3473_v46  ;;  %v2193_v15 = vpop.f32.mrf.mxu0  ;;  %v2977_v12 = vpop.f32.mrf.mxu1 }
 0x1e5   :  { %v3576_v62 = vadd.f32 %v6791_v25, %v3471_v52  ;;  %v3278_v26 = vmax.f32 %v7407_v39, %v2193_v15  ;;  %v3376_v5 = vmax.f32 %v7408_v4, %v2977_v12  ;;  %v3476_v42 = vmax.f32 %v3280_v16, %v3378_v14 }
 0x1e6   :  { %v3676_v18 = vmax.f32 %v3578_v17, 0.0  ;;  %v5284_v19 = vpop.f32.mrf.mxu0  ;;  %v5480_v43 = vpop.f32.mrf.mxu1  ;;  %v7419_v17 = vld [vmem:[#allocation22_spill] sm:$0xff] }
 0x1e7   :  { %v3674_v49 = vmax.f32 %v3576_v62, 0.0  ;;  %v3281_v13 = vmax.f32 %v7409_v36, %v5284_v19  ;;  %v3474_v50 = vmax.f32 %v3278_v26, %v3376_v5  ;;  %v3379_v41 = vmax.f32 %v7410_v51, %v5480_v43  ;;  %v7420_v62 = vld [vmem:[#allocation23_spill] sm:$0xff] }
 0x1e8   :  { %v4713_v40 = vpack.c.bf16 %v3676_v18, %v3675_v53  ;;  %v2196_v20 = vpop.f32.mrf.mxu0  ;;  %v2980_v22 = vpop.f32.mrf.mxu1  ;;  %v3581_v38 = vadd.f32 %v6791_v25, %v3476_v42  ;;  %v7421_v53 = vld [vmem:[#allocation36_spill] sm:$0xff]  ;;  %v7422_v42 = vld [vmem:[#allocation37_spill] sm:$0xff] }
 0x1e9   :  { %v4708_v23 = vpack.c.bf16 %v3674_v49, %v3673_v63  ;;  %v3279_v48 = vmax.f32 %v7411_v21, %v2196_v20  ;;  %v3477_v56 = vmax.f32 %v3281_v13, %v3379_v41  ;;  %v3377_v57 = vmax.f32 %v7412_v55, %v2980_v22  ;;  %v7424_v41 = vld [vmem:[#allocation27_spill] sm:$0xff]  ;;  %v7425_v55 = vld [vmem:[#allocation40_spill] sm:$0xff] }
 0x1ea   :  { %4898 = vst [vmem:[%s7244_s3 + $0x70] sm:$0xff] %v4713_v40   ;;  %v5287_v24 = vpop.f32.mrf.mxu0  ;;  %v5483_v44 = vpop.f32.mrf.mxu1  ;;  %v3579_v7 = vadd.f32 %v6791_v25, %v3474_v50  ;;  %v3679_v10 = vmax.f32 %v3581_v38, 0.0  ;;  %v7423_v50 = vld [vmem:[#allocation26_spill] sm:$0xff] }
 0x1eb   :  { %4897 = vst [vmem:[%s7244_s3 + $0x68] sm:$0xff] %v4708_v23   ;;  %v3284_v45 = vmax.f32 %v7413_v27, %v5287_v24  ;;  %v3382_v37 = vmax.f32 %v7414_v6, %v5483_v44  ;;  %v3582_v8 = vadd.f32 %v6791_v25, %v3477_v56  ;;  %v3475_v28 = vmax.f32 %v3279_v48, %v3377_v57  ;;  %v7426_v27 = vld [vmem:[#allocation41_spill] sm:$0xff] }
 0x1ec   :  { %v2209_v9 = vpop.f32.mrf.mxu0  ;;  %v2993_v29 = vpop.f32.mrf.mxu1  ;;  %v3677_v11 = vmax.f32 %v3579_v7, 0.0  ;;  %v7427_v7 = vld [vmem:[#allocation30_spill] sm:$0xff] }
 0x1ed   :  { %v3480_v0 = vmax.f32 %v3284_v45, %v3382_v37  ;;  %v3282_v31 = vmax.f32 %v7415_v30, %v2209_v9  ;;  %v3380_v60 = vmax.f32 %v7416_v54, %v2993_v29  ;;  %v3680_v2 = vmax.f32 %v3582_v8, 0.0 }
 0x1ee   :  { %v3580_v3 = vadd.f32 %v6791_v25, %v3475_v28  ;;  %v5288_v1 = vpop.f32.mrf.mxu0  ;;  %v5484_v34 = vpop.f32.mrf.mxu1  ;;  %v7428_v28 = vld [vmem:[#allocation31_spill] sm:$0xff] }
 0x1ef   :  { %v3285_v58 = vmax.f32 %v7417_v61, %v5288_v1  ;;  %v3383_v46 = vmax.f32 %v7418_v59, %v5484_v34  ;;  %v4723_v35 = vpack.c.bf16 %v3680_v2, %v3679_v10  ;;  %v3478_v52 = vmax.f32 %v3282_v31, %v3380_v60  ;;  %v7429_v2 = vld [vmem:[#allocation44_spill] sm:$0xff]  ;;  %v7430_v1 = vld [vmem:[#allocation45_spill] sm:$0xff] }
 0x1f0   :  { %v3678_v47 = vmax.f32 %v3580_v3, 0.0  ;;  %v2212_v32 = vpop.f32.mrf.mxu0  ;;  %v2996_v16 = vpop.f32.mrf.mxu1  ;;  %v3585_v33 = vadd.f32 %v6791_v25, %v3480_v0 }
 0x1f1   :  { %v3481_v14 = vmax.f32 %v3285_v58, %v3383_v46  ;;  %v3283_v15 = vmax.f32 %v7419_v17, %v2212_v32  ;;  %4900 = vst [vmem:[%s7244_s3 + $0x80] sm:$0xff] %v4723_v35   ;;  %v3381_v39 = vmax.f32 %v7420_v62, %v2996_v16  ;;  %v3583_v43 = vadd.f32 %v6791_v25, %v3478_v52  ;;  %v7433_v62 = vld [vmem:[#allocation48_spill] sm:$0xff] }
 0x1f2   :  { %v4718_v12 = vpack.c.bf16 %v3678_v47, %v3677_v11  ;;  %v5291_v26 = vpop.f32.mrf.mxu0  ;;  %v5487_v4 = vpop.f32.mrf.mxu1  ;;  %v3683_v13 = vmax.f32 %v3585_v33, 0.0  ;;  %v7431_v11 = vld [vmem:[#allocation34_spill] sm:$0xff]  ;;  %v7432_v47 = vld [vmem:[#allocation35_spill] sm:$0xff] }
 0x1f3   :  { %v3586_v5 = vadd.f32 %v6791_v25, %v3481_v14  ;;  %v3288_v18 = vmax.f32 %v7421_v53, %v5291_v26  ;;  %v3386_v19 = vmax.f32 %v7422_v42, %v5487_v4  ;;  %v3479_v63 = vmax.f32 %v3283_v15, %v3381_v39 }
 0x1f4   :  { %4899 = vst [vmem:[%s7244_s3 + $0x78] sm:$0xff] %v4718_v12   ;;  %v2225_v49 = vpop.f32.mrf.mxu0  ;;  %v3009_v36 = vpop.f32.mrf.mxu1  ;;  %v3681_v24 = vmax.f32 %v3583_v43, 0.0  ;;  %v7435_v43 = vld [vmem:[#allocation38_spill] sm:$0xff] }
 0x1f5   :  { %v3684_v40 = vmax.f32 %v3586_v5, 0.0  ;;  %v3286_v51 = vmax.f32 %v7423_v50, %v2225_v49  ;;  %v3384_v20 = vmax.f32 %v7424_v41, %v3009_v36  ;;  %v3584_v22 = vadd.f32 %v6791_v25, %v3479_v63  ;;  %v7434_v5 = vld [vmem:[#allocation49_spill] sm:$0xff]  ;;  %v7437_v41 = vld [vmem:[#allocation52_spill] sm:$0xff] }
 0x1f6   :  { %v3484_v23 = vmax.f32 %v3288_v18, %v3386_v19  ;;  %v5292_v21 = vpop.f32.mrf.mxu0  ;;  %v5488_v48 = vpop.f32.mrf.mxu1 }
 0x1f7   :  { %v4733_v38 = vpack.c.bf16 %v3684_v40, %v3683_v13  ;;  %v3482_v56 = vmax.f32 %v3286_v51, %v3384_v20  ;;  %v3289_v57 = vmax.f32 %v7425_v55, %v5292_v21  ;;  %v3682_v44 = vmax.f32 %v3584_v22, 0.0  ;;  %v7436_v13 = vld [vmem:[#allocation39_spill] sm:$0xff]  ;;  %v7438_v22 = vld [vmem:[#allocation53_spill] sm:$0xff] }
 0x1f8   :  { %v3387_v45 = vmax.f32 %v7426_v27, %v5488_v48  ;;  %v2228_v6 = vpop.f32.mrf.mxu0  ;;  %v3012_v37 = vpop.f32.mrf.mxu1  ;;  %v3589_v0 = vadd.f32 %v6791_v25, %v3484_v23  ;;  %v7440_v27 = vld [vmem:[#allocation43_spill] sm:$0xff] }
 0x1f9   :  { %4902 = vst [vmem:[%s7244_s3 + $0x90] sm:$0xff] %v4733_v38   ;;  %v3287_v8 = vmax.f32 %v7427_v7, %v2228_v6  ;;  %v3385_v9 = vmax.f32 %v7428_v28, %v3012_v37  ;;  %v4728_v29 = vpack.c.bf16 %v3682_v44, %v3681_v24  ;;  %v3587_v60 = vadd.f32 %v6791_v25, %v3482_v56  ;;  %v7439_v24 = vld [vmem:[#allocation42_spill] sm:$0xff] }
 0x1fa   :  { %v3485_v30 = vmax.f32 %v3289_v57, %v3387_v45  ;;  %v5295_v31 = vpop.f32.mrf.mxu0  ;;  %v5491_v54 = vpop.f32.mrf.mxu1  ;;  %v3687_v32 = vmax.f32 %v3589_v0, 0.0  ;;  %v7442_v0 = vld [vmem:[#allocation57_spill] sm:$0xff] }
 0x1fb   :  { %v3483_v10 = vmax.f32 %v3287_v8, %v3385_v9  ;;  %v3292_v3 = vmax.f32 %v7429_v2, %v5295_v31  ;;  %v3390_v34 = vmax.f32 %v7430_v1, %v5491_v54  ;;  %4901 = vst [vmem:[%s7244_s3 + $0x88] sm:$0xff] %v4728_v29   ;;  %v3685_v15 = vmax.f32 %v3587_v60, 0.0  ;;  %v7441_v9 = vld [vmem:[#allocation56_spill] sm:$0xff] }
 0x1fc   :  { %v3590_v61 = vadd.f32 %v6791_v25, %v3485_v30  ;;  %v2241_v58 = vpop.f32.mrf.mxu0  ;;  %v3025_v59 = vpop.f32.mrf.mxu1 }
 0x1fd   :  { %v3588_v46 = vadd.f32 %v6791_v25, %v3483_v10  ;;  %v3290_v35 = vmax.f32 %v7431_v11, %v2241_v58  ;;  %v3388_v52 = vmax.f32 %v7432_v47, %v3025_v59  ;;  %v3488_v33 = vmax.f32 %v3292_v3, %v3390_v34 }
 0x1fe   :  { %v3688_v16 = vmax.f32 %v3590_v61, 0.0  ;;  %v5296_v14 = vpop.f32.mrf.mxu0  ;;  %v5492_v17 = vpop.f32.mrf.mxu1  ;;  %v7443_v61 = vld [vmem:[#allocation46_spill] sm:$0xff] }
 0x1ff   :  { %v3686_v12 = vmax.f32 %v3588_v46, 0.0  ;;  %v3293_v39 = vmax.f32 %v7433_v62, %v5296_v14  ;;  %v3486_v4 = vmax.f32 %v3290_v35, %v3388_v52  ;;  %v3391_v53 = vmax.f32 %v7434_v5, %v5492_v17  ;;  %v7444_v46 = vld [vmem:[#allocation47_spill] sm:$0xff] }
 0x200   :  { %v4743_v26 = vpack.c.bf16 %v3688_v16, %v3687_v32  ;;  %v2244_v18 = vpop.f32.mrf.mxu0  ;;  %v3028_v42 = vpop.f32.mrf.mxu1  ;;  %v3593_v49 = vadd.f32 %v6791_v25, %v3488_v33  ;;  %v7445_v32 = vld [vmem:[#allocation60_spill] sm:$0xff]  ;;  %v7446_v33 = vld [vmem:[#allocation61_spill] sm:$0xff] }
 0x201   :  { %v4738_v19 = vpack.c.bf16 %v3686_v12, %v3685_v15  ;;  %v3291_v63 = vmax.f32 %v7435_v43, %v2244_v18  ;;  %v3489_v36 = vmax.f32 %v3293_v39, %v3391_v53  ;;  %v3389_v40 = vmax.f32 %v7436_v13, %v3028_v42  ;;  %v7448_v53 = vld [vmem:[#allocation51_spill] sm:$0xff]  ;;  %v7449_v13 = vld [vmem:[#allocation64_spill] sm:$0xff] }
 0x202   :  { %4904 = vst [vmem:[%s7244_s3 + $0xa0] sm:$0xff] %v4743_v26   ;;  %v5299_v50 = vpop.f32.mrf.mxu0  ;;  %v5495_v51 = vpop.f32.mrf.mxu1  ;;  %v3591_v21 = vadd.f32 %v6791_v25, %v3486_v4  ;;  %v3691_v6 = vmax.f32 %v3593_v49, 0.0  ;;  %v7447_v4 = vld [vmem:[#allocation50_spill] sm:$0xff] }
 0x203   :  { %4903 = vst [vmem:[%s7244_s3 + $0x98] sm:$0xff] %v4738_v19   ;;  %v3296_v20 = vmax.f32 %v7437_v41, %v5299_v50  ;;  %v3394_v23 = vmax.f32 %v7438_v22, %v5495_v51  ;;  %v3594_v48 = vadd.f32 %v6791_v25, %v3489_v36  ;;  %v3487_v38 = vmax.f32 %v3291_v63, %v3389_v40  ;;  %v7450_v41 = vld [vmem:[#allocation65_spill] sm:$0xff] }
 0x204   :  { %v2257_v56 = vpop.f32.mrf.mxu0  ;;  %v3041_v55 = vpop.f32.mrf.mxu1  ;;  %v3689_v31 = vmax.f32 %v3591_v21, 0.0  ;;  %v7451_v21 = vld [vmem:[#allocation54_spill] sm:$0xff] }
 0x205   :  { %v3492_v57 = vmax.f32 %v3296_v20, %v3394_v23  ;;  %v3294_v44 = vmax.f32 %v7439_v24, %v2257_v56  ;;  %v3392_v45 = vmax.f32 %v7440_v27, %v3041_v55  ;;  %v3692_v37 = vmax.f32 %v3594_v48, 0.0 }
 0x206   :  { %v3592_v7 = vadd.f32 %v6791_v25, %v3487_v38  ;;  %v5300_v8 = vpop.f32.mrf.mxu0  ;;  %v5496_v28 = vpop.f32.mrf.mxu1  ;;  %v7452_v38 = vld [vmem:[#allocation55_spill] sm:$0xff] }
 0x207   :  { %v3297_v29 = vmax.f32 %v7441_v9, %v5300_v8  ;;  %v3395_v30 = vmax.f32 %v7442_v0, %v5496_v28  ;;  %v4753_v54 = vpack.c.bf16 %v3692_v37, %v3691_v6  ;;  %v3490_v10 = vmax.f32 %v3294_v44, %v3392_v45  ;;  %v7453_v37 = vld [vmem:[#allocation68_spill] sm:$0xff]  ;;  %v7454_v8 = vld [vmem:[#allocation69_spill] sm:$0xff] }
 0x208   :  { %v3690_v60 = vmax.f32 %v3592_v7, 0.0  ;;  %v2260_v2 = vpop.f32.mrf.mxu0  ;;  %v3044_v3 = vpop.f32.mrf.mxu1  ;;  %v3597_v1 = vadd.f32 %v6791_v25, %v3492_v57 }
 0x209   :  { %v3493_v34 = vmax.f32 %v3297_v29, %v3395_v30  ;;  %v3295_v58 = vmax.f32 %v7443_v61, %v2260_v2  ;;  %4906 = vst [vmem:[%s7244_s3 + $0xb0] sm:$0xff] %v4753_v54   ;;  %v3393_v11 = vmax.f32 %v7444_v46, %v3044_v3  ;;  %v3595_v17 = vadd.f32 %v6791_v25, %v3490_v10  ;;  %v7457_v46 = vld [vmem:[#allocation72_spill] sm:$0xff] }
 0x20a   :  { %v4748_v59 = vpack.c.bf16 %v3690_v60, %v3689_v31  ;;  %v5303_v35 = vpop.f32.mrf.mxu0  ;;  %v5499_v47 = vpop.f32.mrf.mxu1  ;;  %v3695_v39 = vmax.f32 %v3597_v1, 0.0  ;;  %v7455_v31 = vld [vmem:[#allocation58_spill] sm:$0xff]  ;;  %v7456_v60 = vld [vmem:[#allocation59_spill] sm:$0xff] }
 0x20b   :  { %v3598_v52 = vadd.f32 %v6791_v25, %v3493_v34  ;;  %v3300_v16 = vmax.f32 %v7445_v32, %v5303_v35  ;;  %v3398_v14 = vmax.f32 %v7446_v33, %v5499_v47  ;;  %v3491_v15 = vmax.f32 %v3295_v58, %v3393_v11 }
 0x20c   :  { %4905 = vst [vmem:[%s7244_s3 + $0xa8] sm:$0xff] %v4748_v59   ;;  %v2273_v12 = vpop.f32.mrf.mxu0  ;;  %v3057_v62 = vpop.f32.mrf.mxu1  ;;  %v3693_v50 = vmax.f32 %v3595_v17, 0.0  ;;  %v7459_v17 = vld [vmem:[#allocation62_spill] sm:$0xff] }
 0x20d   :  { %v3696_v26 = vmax.f32 %v3598_v52, 0.0  ;;  %v3298_v5 = vmax.f32 %v7447_v4, %v2273_v12  ;;  %v3396_v18 = vmax.f32 %v7448_v53, %v3057_v62  ;;  %v3596_v42 = vadd.f32 %v6791_v25, %v3491_v15  ;;  %v7458_v52 = vld [vmem:[#allocation73_spill] sm:$0xff]  ;;  %v7461_v53 = vld [vmem:[#allocation76_spill] sm:$0xff] }
 0x20e   :  { %v3496_v19 = vmax.f32 %v3300_v16, %v3398_v14  ;;  %v5304_v43 = vpop.f32.mrf.mxu0  ;;  %v5500_v63 = vpop.f32.mrf.mxu1 }
 0x20f   :  { %v4763_v49 = vpack.c.bf16 %v3696_v26, %v3695_v39  ;;  %v3494_v36 = vmax.f32 %v3298_v5, %v3396_v18  ;;  %v3301_v40 = vmax.f32 %v7449_v13, %v5304_v43  ;;  %v3694_v51 = vmax.f32 %v3596_v42, 0.0  ;;  %v7460_v39 = vld [vmem:[#allocation63_spill] sm:$0xff]  ;;  %v7462_v42 = vld [vmem:[#allocation77_spill] sm:$0xff] }
 0x210   :  { %v3399_v20 = vmax.f32 %v7450_v41, %v5500_v63  ;;  %v2276_v22 = vpop.f32.mrf.mxu0  ;;  %v3060_v23 = vpop.f32.mrf.mxu1  ;;  %v3601_v57 = vadd.f32 %v6791_v25, %v3496_v19  ;;  %v7464_v41 = vld [vmem:[#allocation67_spill] sm:$0xff] }
 0x211   :  { %4908 = vst [vmem:[%s7244_s3 + $0xc0] sm:$0xff] %v4763_v49   ;;  %v3299_v48 = vmax.f32 %v7451_v21, %v2276_v22  ;;  %v3397_v56 = vmax.f32 %v7452_v38, %v3060_v23  ;;  %v4758_v55 = vpack.c.bf16 %v3694_v51, %v3693_v50  ;;  %v3599_v45 = vadd.f32 %v6791_v25, %v3494_v36  ;;  %v7463_v50 = vld [vmem:[#allocation66_spill] sm:$0xff] }
 0x212   :  { %v3497_v24 = vmax.f32 %v3301_v40, %v3399_v20  ;;  %v5307_v44 = vpop.f32.mrf.mxu0  ;;  %v5503_v27 = vpop.f32.mrf.mxu1  ;;  %v3699_v2 = vmax.f32 %v3601_v57, 0.0  ;;  %v7466_v57 = vld [vmem:[#allocation81_spill] sm:$0xff] }
 0x213   :  { %v3495_v6 = vmax.f32 %v3299_v48, %v3397_v56  ;;  %v3304_v7 = vmax.f32 %v7453_v37, %v5307_v44  ;;  %v3402_v28 = vmax.f32 %v7454_v8, %v5503_v27  ;;  %4907 = vst [vmem:[%s7244_s3 + $0xb8] sm:$0xff] %v4758_v55   ;;  %v3697_v58 = vmax.f32 %v3599_v45, 0.0  ;;  %v7465_v56 = vld [vmem:[#allocation80_spill] sm:$0xff] }
 0x214   :  { %v3602_v9 = vadd.f32 %v6791_v25, %v3497_v24  ;;  %v2289_v29 = vpop.f32.mrf.mxu0  ;;  %v3073_v0 = vpop.f32.mrf.mxu1 }
 0x215   :  { %v3600_v30 = vadd.f32 %v6791_v25, %v3495_v6  ;;  %v3302_v54 = vmax.f32 %v7455_v31, %v2289_v29  ;;  %v3400_v10 = vmax.f32 %v7456_v60, %v3073_v0  ;;  %v3500_v1 = vmax.f32 %v3304_v7, %v3402_v28 }
 0x216   :  { %v3700_v3 = vmax.f32 %v3602_v9, 0.0  ;;  %v5308_v34 = vpop.f32.mrf.mxu0  ;;  %v5504_v61 = vpop.f32.mrf.mxu1  ;;  %v7467_v9 = vld [vmem:[#allocation70_spill] sm:$0xff] }
 0x217   :  { %v3698_v59 = vmax.f32 %v3600_v30, 0.0  ;;  %v3305_v11 = vmax.f32 %v7457_v46, %v5308_v34  ;;  %v3498_v47 = vmax.f32 %v3302_v54, %v3400_v10  ;;  %v3403_v32 = vmax.f32 %v7458_v52, %v5504_v61  ;;  %v7468_v30 = vld [vmem:[#allocation71_spill] sm:$0xff] }
 0x218   :  { %v4773_v35 = vpack.c.bf16 %v3700_v3, %v3699_v2  ;;  %v2292_v16 = vpop.f32.mrf.mxu0  ;;  %v3076_v33 = vpop.f32.mrf.mxu1  ;;  %v3605_v12 = vadd.f32 %v6791_v25, %v3500_v1  ;;  %v7469_v2 = vld [vmem:[#allocation84_spill] sm:$0xff]  ;;  %v7470_v1 = vld [vmem:[#allocation85_spill] sm:$0xff] }
 0x219   :  { %v4768_v14 = vpack.c.bf16 %v3698_v59, %v3697_v58  ;;  %v3303_v15 = vmax.f32 %v7459_v17, %v2292_v16  ;;  %v3501_v62 = vmax.f32 %v3305_v11, %v3403_v32  ;;  %v3401_v26 = vmax.f32 %v7460_v39, %v3076_v33  ;;  %v7472_v32 = vld [vmem:[#allocation75_spill] sm:$0xff]  ;;  %v7473_v39 = vld [vmem:[#allocation88_spill] sm:$0xff] }
 0x21a   :  { %4910 = vst [vmem:[%s7244_s3 + $0xd0] sm:$0xff] %v4773_v35   ;;  %v5311_v4 = vpop.f32.mrf.mxu0  ;;  %v5507_v5 = vpop.f32.mrf.mxu1  ;;  %v3603_v43 = vadd.f32 %v6791_v25, %v3498_v47  ;;  %v3703_v22 = vmax.f32 %v3605_v12, 0.0  ;;  %v7471_v47 = vld [vmem:[#allocation74_spill] sm:$0xff] }
 0x21b   :  { %4909 = vst [vmem:[%s7244_s3 + $0xc8] sm:$0xff] %v4768_v14   ;;  %v3308_v18 = vmax.f32 %v7461_v53, %v5311_v4  ;;  %v3406_v19 = vmax.f32 %v7462_v42, %v5507_v5  ;;  %v3606_v63 = vadd.f32 %v6791_v25, %v3501_v62  ;;  %v3499_v49 = vmax.f32 %v3303_v15, %v3401_v26  ;;  %v7474_v53 = vld [vmem:[#allocation89_spill] sm:$0xff] }
 0x21c   :  { %v2305_v36 = vpop.f32.mrf.mxu0  ;;  %v3089_v13 = vpop.f32.mrf.mxu1  ;;  %v3701_v44 = vmax.f32 %v3603_v43, 0.0  ;;  %v7475_v43 = vld [vmem:[#allocation78_spill] sm:$0xff] }
 0x21d   :  { %v3504_v40 = vmax.f32 %v3308_v18, %v3406_v19  ;;  %v3306_v51 = vmax.f32 %v7463_v50, %v2305_v36  ;;  %v3404_v20 = vmax.f32 %v7464_v41, %v3089_v13  ;;  %v3704_v23 = vmax.f32 %v3606_v63, 0.0  ;;  %v7082_v13 = vld [vmem:[%s7243_s2] ss:$0 sm:$0xff] }
 0x21e   :  { %v3604_v21 = vadd.f32 %v6791_v25, %v3499_v49  ;;  %v5312_v48 = vpop.f32.mrf.mxu0  ;;  %v5508_v38 = vpop.f32.mrf.mxu1 }
 0x21f   :  { %v3309_v55 = vmax.f32 %v7465_v56, %v5312_v48  ;;  %v3407_v24 = vmax.f32 %v7466_v57, %v5508_v38  ;;  %v4783_v27 = vpack.c.bf16 %v3704_v23, %v3703_v22  ;;  %v3502_v6 = vmax.f32 %v3306_v51, %v3404_v20  ;;  %v7477_v23 = vld [vmem:[#allocation92_spill] sm:$0xff]  ;;  %v7478_v48 = vld [vmem:[#allocation93_spill] sm:$0xff] }
 0x220   :  { %v3702_v45 = vmax.f32 %v3604_v21, 0.0  ;;  %v2308_v37 = vpop.f32.mrf.mxu0  ;;  %v3092_v7 = vpop.f32.mrf.mxu1  ;;  %v3609_v8 = vadd.f32 %v6791_v25, %v3504_v40 }
 0x221   :  { %v3505_v28 = vmax.f32 %v3309_v55, %v3407_v24  ;;  %v3307_v29 = vmax.f32 %v7467_v9, %v2308_v37  ;;  %4912 = vst [vmem:[%s7244_s3 + $0xe0] sm:$0xff] %v4783_v27   ;;  %v3405_v31 = vmax.f32 %v7468_v30, %v3092_v7  ;;  %v3607_v61 = vadd.f32 %v6791_v25, %v3502_v6  ;;  %v7481_v30 = vld [vmem:[#allocation96_spill] sm:$0xff] }
 0x222   :  { %v4778_v0 = vpack.c.bf16 %v3702_v45, %v3701_v44  ;;  %v5315_v54 = vpop.f32.mrf.mxu0  ;;  %v5511_v60 = vpop.f32.mrf.mxu1  ;;  %v3707_v11 = vmax.f32 %v3609_v8, 0.0  ;;  %v7479_v44 = vld [vmem:[#allocation82_spill] sm:$0xff]  ;;  %v7480_v45 = vld [vmem:[#allocation83_spill] sm:$0xff] }
 0x223   :  { %v3610_v10 = vadd.f32 %v6791_v25, %v3505_v28  ;;  %v3312_v3 = vmax.f32 %v7469_v2, %v5315_v54  ;;  %v3410_v34 = vmax.f32 %v7470_v1, %v5511_v60  ;;  %v3503_v58 = vmax.f32 %v3307_v29, %v3405_v31 }
 0x224   :  { %4911 = vst [vmem:[%s7244_s3 + $0xd8] sm:$0xff] %v4778_v0   ;;  %v2321_v59 = vpop.f32.mrf.mxu0  ;;  %v3105_v46 = vpop.f32.mrf.mxu1  ;;  %v3705_v4 = vmax.f32 %v3607_v61, 0.0  ;;  %v7483_v61 = vld [vmem:[#allocation86_spill] sm:$0xff] }
 0x225   :  { %v3708_v35 = vmax.f32 %v3610_v10, 0.0  ;;  %v3310_v52 = vmax.f32 %v7471_v47, %v2321_v59  ;;  %v3408_v16 = vmax.f32 %v7472_v32, %v3105_v46  ;;  %v3608_v33 = vadd.f32 %v6791_v25, %v3503_v58  ;;  %v7476_v25 = vld [vmem:[#allocation79_spill] sm:$0xff]  ;;  %v7482_v10 = vld [vmem:[#allocation97_spill] sm:$0xff]  ;;  %v7485_v32 = vld [vmem:[#allocation100_spill] sm:$0xff] }
 0x226   :  { %v3508_v14 = vmax.f32 %v3312_v3, %v3410_v34  ;;  %v5316_v17 = vpop.f32.mrf.mxu0  ;;  %v5512_v15 = vpop.f32.mrf.mxu1 }
 0x227   :  { %v4793_v12 = vpack.c.bf16 %v3708_v35, %v3707_v11  ;;  %v3506_v62 = vmax.f32 %v3310_v52, %v3408_v16  ;;  %v3313_v26 = vmax.f32 %v7473_v39, %v5316_v17  ;;  %v3706_v5 = vmax.f32 %v3608_v33, 0.0  ;;  %v7484_v11 = vld [vmem:[#allocation87_spill] sm:$0xff]  ;;  %v7486_v33 = vld [vmem:[#allocation101_spill] sm:$0xff] }
 0x228   :  { %v3411_v18 = vmax.f32 %v7474_v53, %v5512_v15  ;;  %v2324_v42 = vpop.f32.mrf.mxu0  ;;  %v3108_v19 = vpop.f32.mrf.mxu1  ;;  %v3613_v40 = vadd.f32 %v7082_v13, %v3508_v14  ;;  %v7488_v53 = vld [vmem:[#allocation91_spill] sm:$0xff] }
 0x229   :  { %4914 = vst [vmem:[%s7244_s3 + $0xf0] sm:$0xff] %v4793_v12   ;;  %v3311_v63 = vmax.f32 %v7475_v43, %v2324_v42  ;;  %v3409_v49 = vmax.f32 %v7476_v25, %v3108_v19  ;;  %v4788_v36 = vpack.c.bf16 %v3706_v5, %v3705_v4  ;;  %v3611_v20 = vadd.f32 %v7082_v13, %v3506_v62  ;;  %v7487_v4 = vld [vmem:[#allocation90_spill] sm:$0xff] }
 0x22a   :  { %v3509_v50 = vmax.f32 %v3313_v26, %v3411_v18  ;;  %v5319_v51 = vpop.f32.mrf.mxu0  ;;  %v5515_v41 = vpop.f32.mrf.mxu1  ;;  %v3711_v37 = vmax.f32 %v3613_v40, 0.0  ;;  %v7490_v40 = vld [vmem:[#allocation105_spill] sm:$0xff] }
 0x22b   :  { %v3507_v22 = vmax.f32 %v3311_v63, %v3409_v49  ;;  %v3316_v21 = vmax.f32 %v7477_v23, %v5319_v51  ;;  %v3414_v38 = vmax.f32 %v7478_v48, %v5515_v41  ;;  %4913 = vst [vmem:[%s7244_s3 + $0xe8] sm:$0xff] %v4788_v36   ;;  %v3709_v29 = vmax.f32 %v3611_v20, 0.0  ;;  %v7489_v49 = vld [vmem:[#allocation104_spill] sm:$0xff] }
 0x22c   :  { %v3614_v56 = vadd.f32 %v7082_v13, %v3509_v50  ;;  %v2337_v55 = vpop.f32.mrf.mxu0  ;;  %v3121_v57 = vpop.f32.mrf.mxu1 }
 0x22d   :  { %v3612_v24 = vadd.f32 %v7082_v13, %v3507_v22  ;;  %v3314_v27 = vmax.f32 %v7479_v44, %v2337_v55  ;;  %v3412_v6 = vmax.f32 %v7480_v45, %v3121_v57  ;;  %v3512_v8 = vmax.f32 %v3316_v21, %v3414_v38 }
 0x22e   :  { %v3712_v7 = vmax.f32 %v3614_v56, 0.0  ;;  %v5320_v28 = vpop.f32.mrf.mxu0  ;;  %v5516_v9 = vpop.f32.mrf.mxu1  ;;  %v7491_v56 = vld [vmem:[#allocation94_spill] sm:$0xff] }
 0x22f   :  { %v3710_v0 = vmax.f32 %v3612_v24, 0.0  ;;  %v3317_v31 = vmax.f32 %v7481_v30, %v5320_v28  ;;  %v3510_v60 = vmax.f32 %v3314_v27, %v3412_v6  ;;  %v3415_v2 = vmax.f32 %v7482_v10, %v5516_v9  ;;  %v7492_v24 = vld [vmem:[#allocation95_spill] sm:$0xff] }
 0x230   :  { %v4803_v54 = vpack.c.bf16 %v3712_v7, %v3711_v37  ;;  %v2340_v3 = vpop.f32.mrf.mxu0  ;;  %v3124_v1 = vpop.f32.mrf.mxu1  ;;  %v3617_v59 = vadd.f32 %v7082_v13, %v3512_v8  ;;  %v7493_v37 = vld [vmem:[#allocation108_spill] sm:$0xff]  ;;  %v7494_v8 = vld [vmem:[#allocation109_spill] sm:$0xff] }
 0x231   :  { %v4798_v34 = vpack.c.bf16 %v3710_v0, %v3709_v29  ;;  %v3315_v58 = vmax.f32 %v7483_v61, %v2340_v3  ;;  %v3513_v46 = vmax.f32 %v3317_v31, %v3415_v2  ;;  %v3413_v35 = vmax.f32 %v7484_v11, %v3124_v1  ;;  %v7496_v2 = vld [vmem:[#allocation99_spill] sm:$0xff]  ;;  %v7497_v11 = vld [vmem:[#allocation112_spill] sm:$0xff] }
 0x232   :  { %4916 = vst [vmem:[%s7244_s3 + $0x100] sm:$0xff] %v4803_v54   ;;  %v5323_v47 = vpop.f32.mrf.mxu0  ;;  %v5519_v52 = vpop.f32.mrf.mxu1  ;;  %v3615_v17 = vadd.f32 %v7082_v13, %v3510_v60  ;;  %v3715_v42 = vmax.f32 %v3617_v59, 0.0  ;;  %v7495_v60 = vld [vmem:[#allocation98_spill] sm:$0xff] }
 0x233   :  { %4915 = vst [vmem:[%s7244_s3 + $0xf8] sm:$0xff] %v4798_v34   ;;  %v3320_v16 = vmax.f32 %v7485_v32, %v5323_v47  ;;  %v3418_v14 = vmax.f32 %v7486_v33, %v5519_v52  ;;  %v3618_v15 = vadd.f32 %v7082_v13, %v3513_v46  ;;  %v3511_v12 = vmax.f32 %v3315_v58, %v3413_v35  ;;  %v7498_v32 = vld [vmem:[#allocation113_spill] sm:$0xff] }
 0x234   :  { %v2353_v62 = vpop.f32.mrf.mxu0  ;;  %v3137_v39 = vpop.f32.mrf.mxu1  ;;  %v3713_v51 = vmax.f32 %v3615_v17, 0.0  ;;  %v7499_v17 = vld [vmem:[#allocation102_spill] sm:$0xff] }
 0x235   :  { %v3516_v26 = vmax.f32 %v3320_v16, %v3418_v14  ;;  %v3318_v5 = vmax.f32 %v7487_v4, %v2353_v62  ;;  %v3416_v18 = vmax.f32 %v7488_v53, %v3137_v39  ;;  %v3716_v19 = vmax.f32 %v3618_v15, 0.0 }
 0x236   :  { %v3616_v43 = vadd.f32 %v7082_v13, %v3511_v12  ;;  %v5324_v63 = vpop.f32.mrf.mxu0  ;;  %v5520_v25 = vpop.f32.mrf.mxu1  ;;  %v7500_v12 = vld [vmem:[#allocation103_spill] sm:$0xff] }
 0x237   :  { %v3321_v36 = vmax.f32 %v7489_v49, %v5324_v63  ;;  %v3419_v50 = vmax.f32 %v7490_v40, %v5520_v25  ;;  %v4813_v41 = vpack.c.bf16 %v3716_v19, %v3715_v42  ;;  %v3514_v22 = vmax.f32 %v3318_v5, %v3416_v18  ;;  %v7501_v19 = vld [vmem:[#allocation116_spill] sm:$0xff]  ;;  %v7502_v63 = vld [vmem:[#allocation117_spill] sm:$0xff] }
 0x238   :  { %v3714_v20 = vmax.f32 %v3616_v43, 0.0  ;;  %v2356_v23 = vpop.f32.mrf.mxu0  ;;  %v3140_v21 = vpop.f32.mrf.mxu1  ;;  %v3621_v48 = vadd.f32 %v7082_v13, %v3516_v26 }
 0x239   :  { %v3517_v38 = vmax.f32 %v3321_v36, %v3419_v50  ;;  %v3319_v55 = vmax.f32 %v7491_v56, %v2356_v23  ;;  %4918 = vst [vmem:[%s7244_s3 + $0x110] sm:$0xff] %v4813_v41   ;;  %v3417_v44 = vmax.f32 %v7492_v24, %v3140_v21  ;;  %v3619_v9 = vadd.f32 %v7082_v13, %v3514_v22  ;;  %v7505_v24 = vld [vmem:[#allocation120_spill] sm:$0xff] }
 0x23a   :  { %v4808_v57 = vpack.c.bf16 %v3714_v20, %v3713_v51  ;;  %v5327_v27 = vpop.f32.mrf.mxu0  ;;  %v5523_v45 = vpop.f32.mrf.mxu1  ;;  %v3719_v31 = vmax.f32 %v3621_v48, 0.0  ;;  %v7503_v51 = vld [vmem:[#allocation106_spill] sm:$0xff]  ;;  %v7504_v20 = vld [vmem:[#allocation107_spill] sm:$0xff] }
 0x23b   :  { %v3622_v6 = vadd.f32 %v7082_v13, %v3517_v38  ;;  %v3324_v7 = vmax.f32 %v7493_v37, %v5327_v27  ;;  %v3422_v28 = vmax.f32 %v7494_v8, %v5523_v45  ;;  %v3515_v29 = vmax.f32 %v3319_v55, %v3417_v44 }
 0x23c   :  { %4917 = vst [vmem:[%s7244_s3 + $0x108] sm:$0xff] %v4808_v57   ;;  %v2369_v0 = vpop.f32.mrf.mxu0  ;;  %v3153_v30 = vpop.f32.mrf.mxu1  ;;  %v3717_v47 = vmax.f32 %v3619_v9, 0.0  ;;  %v7507_v9 = vld [vmem:[#allocation110_spill] sm:$0xff] }
 0x23d   :  { %v3720_v54 = vmax.f32 %v3622_v6, 0.0  ;;  %v3322_v10 = vmax.f32 %v7495_v60, %v2369_v0  ;;  %v3420_v3 = vmax.f32 %v7496_v2, %v3153_v30  ;;  %v3620_v1 = vadd.f32 %v7082_v13, %v3515_v29  ;;  %v7506_v6 = vld [vmem:[#allocation121_spill] sm:$0xff]  ;;  %v7509_v2 = vld [vmem:[#allocation124_spill] sm:$0xff] }
 0x23e   :  { %v3520_v34 = vmax.f32 %v3324_v7, %v3422_v28  ;;  %v5328_v61 = vpop.f32.mrf.mxu0  ;;  %v5524_v58 = vpop.f32.mrf.mxu1 }
 0x23f   :  { %v4823_v59 = vpack.c.bf16 %v3720_v54, %v3719_v31  ;;  %v3518_v46 = vmax.f32 %v3322_v10, %v3420_v3  ;;  %v3325_v35 = vmax.f32 %v7497_v11, %v5328_v61  ;;  %v3718_v52 = vmax.f32 %v3620_v1, 0.0  ;;  %v7508_v31 = vld [vmem:[#allocation111_spill] sm:$0xff]  ;;  %v7510_v1 = vld [vmem:[#allocation125_spill] sm:$0xff] }
 0x240   :  { %v3423_v16 = vmax.f32 %v7498_v32, %v5524_v58  ;;  %v2372_v33 = vpop.f32.mrf.mxu0  ;;  %v3156_v14 = vpop.f32.mrf.mxu1  ;;  %v3625_v26 = vadd.f32 %v7082_v13, %v3520_v34  ;;  %v7512_v32 = vld [vmem:[#allocation115_spill] sm:$0xff] }
 0x241   :  { %4920 = vst [vmem:[%s7244_s3 + $0x120] sm:$0xff] %v4823_v59   ;;  %v3323_v15 = vmax.f32 %v7499_v17, %v2372_v33  ;;  %v3421_v62 = vmax.f32 %v7500_v12, %v3156_v14  ;;  %v4818_v39 = vpack.c.bf16 %v3718_v52, %v3717_v47  ;;  %v3623_v18 = vadd.f32 %v7082_v13, %v3518_v46  ;;  %v7511_v47 = vld [vmem:[#allocation114_spill] sm:$0xff] }
 0x242   :  { %v3521_v4 = vmax.f32 %v3325_v35, %v3423_v16  ;;  %v5331_v5 = vpop.f32.mrf.mxu0  ;;  %v5527_v53 = vpop.f32.mrf.mxu1  ;;  %v3723_v23 = vmax.f32 %v3625_v26, 0.0  ;;  %v7514_v26 = vld [vmem:[#allocation129_spill] sm:$0xff] }
 0x243   :  { %v3519_v42 = vmax.f32 %v3323_v15, %v3421_v62  ;;  %v3328_v43 = vmax.f32 %v7501_v19, %v5331_v5  ;;  %v3426_v25 = vmax.f32 %v7502_v63, %v5527_v53  ;;  %4919 = vst [vmem:[%s7244_s3 + $0x118] sm:$0xff] %v4818_v39   ;;  %v3721_v55 = vmax.f32 %v3623_v18, 0.0  ;;  %v7513_v62 = vld [vmem:[#allocation128_spill] sm:$0xff] }
 0x244   :  { %v3626_v49 = vadd.f32 %v7082_v13, %v3521_v4  ;;  %v2385_v36 = vpop.f32.mrf.mxu0  ;;  %v3169_v40 = vpop.f32.mrf.mxu1 }
 0x245   :  { %v3624_v50 = vadd.f32 %v7082_v13, %v3519_v42  ;;  %v3326_v41 = vmax.f32 %v7503_v51, %v2385_v36  ;;  %v3424_v22 = vmax.f32 %v7504_v20, %v3169_v40  ;;  %v3524_v48 = vmax.f32 %v3328_v43, %v3426_v25 }
 0x246   :  { %v3724_v21 = vmax.f32 %v3626_v49, 0.0  ;;  %v5332_v38 = vpop.f32.mrf.mxu0  ;;  %v5528_v56 = vpop.f32.mrf.mxu1  ;;  %v7515_v49 = vld [vmem:[#allocation118_spill] sm:$0xff] }
 0x247   :  { %v3722_v57 = vmax.f32 %v3624_v50, 0.0  ;;  %v3329_v44 = vmax.f32 %v7505_v24, %v5332_v38  ;;  %v3522_v45 = vmax.f32 %v3326_v41, %v3424_v22  ;;  %v3427_v37 = vmax.f32 %v7506_v6, %v5528_v56  ;;  %v7516_v50 = vld [vmem:[#allocation119_spill] sm:$0xff] }
 0x248   :  { %v4833_v27 = vpack.c.bf16 %v3724_v21, %v3723_v23  ;;  %v2388_v7 = vpop.f32.mrf.mxu0  ;;  %v3172_v8 = vpop.f32.mrf.mxu1  ;;  %v3629_v0 = vadd.f32 %v7082_v13, %v3524_v48  ;;  %v7517_v23 = vld [vmem:[#allocation132_spill] sm:$0xff]  ;;  %v7518_v48 = vld [vmem:[#allocation133_spill] sm:$0xff] }
 0x249   :  { %v4828_v28 = vpack.c.bf16 %v3722_v57, %v3721_v55  ;;  %v3327_v29 = vmax.f32 %v7507_v9, %v2388_v7  ;;  %v3525_v30 = vmax.f32 %v3329_v44, %v3427_v37  ;;  %v3425_v54 = vmax.f32 %v7508_v31, %v3172_v8  ;;  %v7520_v37 = vld [vmem:[#allocation123_spill] sm:$0xff]  ;;  %v7521_v31 = vld [vmem:[#allocation136_spill] sm:$0xff] }
 0x24a   :  { %4922 = vst [vmem:[%s7244_s3 + $0x130] sm:$0xff] %v4833_v27   ;;  %v5335_v60 = vpop.f32.mrf.mxu0  ;;  %v5531_v10 = vpop.f32.mrf.mxu1  ;;  %v3627_v61 = vadd.f32 %v7082_v13, %v3522_v45  ;;  %v3727_v33 = vmax.f32 %v3629_v0, 0.0  ;;  %v7519_v45 = vld [vmem:[#allocation122_spill] sm:$0xff] }
 0x24b   :  { %4921 = vst [vmem:[%s7244_s3 + $0x128] sm:$0xff] %v4828_v28   ;;  %v3332_v3 = vmax.f32 %v7509_v2, %v5335_v60  ;;  %v3430_v34 = vmax.f32 %v7510_v1, %v5531_v10  ;;  %v3630_v58 = vadd.f32 %v7082_v13, %v3525_v30  ;;  %v3523_v59 = vmax.f32 %v3327_v29, %v3425_v54  ;;  %v7522_v2 = vld [vmem:[#allocation137_spill] sm:$0xff] }
 0x24c   :  { %v2401_v46 = vpop.f32.mrf.mxu0  ;;  %v3185_v11 = vpop.f32.mrf.mxu1  ;;  %v3725_v5 = vmax.f32 %v3627_v61, 0.0  ;;  %v7523_v61 = vld [vmem:[#allocation126_spill] sm:$0xff] }
 0x24d   :  { %v3528_v35 = vmax.f32 %v3332_v3, %v3430_v34  ;;  %v3330_v52 = vmax.f32 %v7511_v47, %v2401_v46  ;;  %v3428_v16 = vmax.f32 %v7512_v32, %v3185_v11  ;;  %v3728_v14 = vmax.f32 %v3630_v58, 0.0 }
 0x24e   :  { %v3628_v17 = vadd.f32 %v7082_v13, %v3523_v59  ;;  %v5336_v15 = vpop.f32.mrf.mxu0  ;;  %v5532_v12 = vpop.f32.mrf.mxu1  ;;  %v7524_v59 = vld [vmem:[#allocation127_spill] sm:$0xff] }
 0x24f   :  { %v3333_v39 = vmax.f32 %v7513_v62, %v5336_v15  ;;  %v3431_v4 = vmax.f32 %v7514_v26, %v5532_v12  ;;  %v4843_v53 = vpack.c.bf16 %v3728_v14, %v3727_v33  ;;  %v3526_v42 = vmax.f32 %v3330_v52, %v3428_v16  ;;  %v7525_v14 = vld [vmem:[#allocation140_spill] sm:$0xff]  ;;  %v7526_v15 = vld [vmem:[#allocation141_spill] sm:$0xff] }
 0x250   :  { %v3726_v18 = vmax.f32 %v3628_v17, 0.0  ;;  %v2404_v19 = vpop.f32.mrf.mxu0  ;;  %v3188_v43 = vpop.f32.mrf.mxu1  ;;  %v3633_v63 = vadd.f32 %v7082_v13, %v3528_v35 }
 0x251   :  { %v3529_v25 = vmax.f32 %v3333_v39, %v3431_v4  ;;  %v3331_v36 = vmax.f32 %v7515_v49, %v2404_v19  ;;  %4924 = vst [vmem:[%s7244_s3 + $0x140] sm:$0xff] %v4843_v53   ;;  %v3429_v51 = vmax.f32 %v7516_v50, %v3188_v43  ;;  %v3631_v56 = vadd.f32 %v7082_v13, %v3526_v42  ;;  %v7529_v50 = vld [vmem:[#allocation144_spill] sm:$0xff] }
 0x252   :  { %v4838_v40 = vpack.c.bf16 %v3726_v18, %v3725_v5  ;;  %v5339_v41 = vpop.f32.mrf.mxu0  ;;  %v5535_v20 = vpop.f32.mrf.mxu1  ;;  %v3731_v44 = vmax.f32 %v3633_v63, 0.0  ;;  %v7527_v5 = vld [vmem:[#allocation130_spill] sm:$0xff]  ;;  %v7528_v18 = vld [vmem:[#allocation131_spill] sm:$0xff] }
 0x253   :  { %v3634_v22 = vadd.f32 %v7082_v13, %v3529_v25  ;;  %v3336_v21 = vmax.f32 %v7517_v23, %v5339_v41  ;;  %v3434_v38 = vmax.f32 %v7518_v48, %v5535_v20  ;;  %v3527_v55 = vmax.f32 %v3331_v36, %v3429_v51 }
 0x254   :  { %4923 = vst [vmem:[%s7244_s3 + $0x138] sm:$0xff] %v4838_v40   ;;  %v2417_v57 = vpop.f32.mrf.mxu0  ;;  %v3201_v24 = vpop.f32.mrf.mxu1  ;;  %v3729_v60 = vmax.f32 %v3631_v56, 0.0  ;;  %v7531_v56 = vld [vmem:[#allocation134_spill] sm:$0xff] }
 0x255   :  { %v3732_v27 = vmax.f32 %v3634_v22, 0.0  ;;  %v3334_v6 = vmax.f32 %v7519_v45, %v2417_v57  ;;  %v3432_v7 = vmax.f32 %v7520_v37, %v3201_v24  ;;  %v3632_v8 = vadd.f32 %v7082_v13, %v3527_v55  ;;  %v7530_v22 = vld [vmem:[#allocation145_spill] sm:$0xff]  ;;  %v7533_v37 = vld [vmem:[#allocation146_spill] sm:$0xff] }
 0x256   :  { %v3532_v28 = vmax.f32 %v3336_v21, %v3434_v38  ;;  %v5340_v9 = vpop.f32.mrf.mxu0  ;;  %v5536_v29 = vpop.f32.mrf.mxu1 }
 0x257   :  { %v4853_v0 = vpack.c.bf16 %v3732_v27, %v3731_v44  ;;  %v3530_v30 = vmax.f32 %v3334_v6, %v3432_v7  ;;  %v3337_v54 = vmax.f32 %v7521_v31, %v5340_v9  ;;  %v3730_v10 = vmax.f32 %v3632_v8, 0.0  ;;  %v7532_v44 = vld [vmem:[#allocation135_spill] sm:$0xff] }
 0x258   :  { %v3435_v3 = vmax.f32 %v7522_v2, %v5536_v29  ;;  %v2420_v1 = vpop.f32.mrf.mxu0  ;;  %v3204_v34 = vpop.f32.mrf.mxu1  ;;  %v3637_v35 = vadd.f32 %v7082_v13, %v3532_v28  ;;  %v7534_v8 = vld [vmem:[#allocation147_spill] sm:$0xff] }
 0x259   :  { %4926 = vst [vmem:[%s7244_s3 + $0x150] sm:$0xff] %v4853_v0   ;;  %v3335_v58 = vmax.f32 %v7523_v61, %v2420_v1  ;;  %v3433_v46 = vmax.f32 %v7524_v59, %v3204_v34  ;;  %v4848_v11 = vpack.c.bf16 %v3730_v10, %v3729_v60  ;;  %v3635_v16 = vadd.f32 %v7082_v13, %v3530_v30  ;;  %v7535_v60 = vld [vmem:[#allocation138_spill] sm:$0xff]  ;;  %v7536_v2 = vld [vmem:[#allocation139_spill] sm:$0xff] }
 0x25a   :  { %v3533_v47 = vmax.f32 %v3337_v54, %v3435_v3  ;;  %v5343_v52 = vpop.f32.mrf.mxu0  ;;  %v5539_v32 = vpop.f32.mrf.mxu1  ;;  %v3735_v19 = vmax.f32 %v3637_v35, 0.0  ;;  %v7538_v35 = vld [vmem:[#allocation149_spill] sm:$0xff] }
 0x25b   :  { %v3531_v33 = vmax.f32 %v3335_v58, %v3433_v46  ;;  %v3340_v17 = vmax.f32 %v7525_v14, %v5343_v52  ;;  %v3438_v12 = vmax.f32 %v7526_v15, %v5539_v32  ;;  %4925 = vst [vmem:[%s7244_s3 + $0x148] sm:$0xff] %v4848_v11   ;;  %v3733_v36 = vmax.f32 %v3635_v16, 0.0  ;;  %v7537_v46 = vld [vmem:[#allocation148_spill] sm:$0xff] }
 0x25c   :  { %v3638_v62 = vadd.f32 %v7082_v13, %v3533_v47  ;;  %v2433_v39 = vpop.f32.mrf.mxu0  ;;  %v3217_v26 = vpop.f32.mrf.mxu1 }
 0x25d   :  { %v3636_v4 = vadd.f32 %v7082_v13, %v3531_v33  ;;  %v3338_v53 = vmax.f32 %v7527_v5, %v2433_v39  ;;  %v3436_v42 = vmax.f32 %v7528_v18, %v3217_v26  ;;  %v3536_v63 = vmax.f32 %v3340_v17, %v3438_v12 }
 0x25e   :  { %v3736_v43 = vmax.f32 %v3638_v62, 0.0  ;;  %v5344_v25 = vpop.f32.mrf.mxu0  ;;  %v5540_v49 = vpop.f32.mrf.mxu1  ;;  %v7539_v62 = vld [vmem:[#allocation142_spill] sm:$0xff] }
 0x25f   :  { %v3734_v40 = vmax.f32 %v3636_v4, 0.0  ;;  %v3341_v51 = vmax.f32 %v7529_v50, %v5344_v25  ;;  %v3534_v20 = vmax.f32 %v3338_v53, %v3436_v42  ;;  %v3439_v23 = vmax.f32 %v7530_v22, %v5540_v49  ;;  %v7540_v4 = vld [vmem:[#allocation143_spill] sm:$0xff] }
 0x260   :  { %v4863_v41 = vpack.c.bf16 %v3736_v43, %v3735_v19  ;;  %v2436_v21 = vpop.f32.mrf.mxu0  ;;  %v3220_v48 = vpop.f32.mrf.mxu1  ;;  %v3641_v57 = vadd.f32 %v7082_v13, %v3536_v63 }
 0x261   :  { %v4858_v38 = vpack.c.bf16 %v3734_v40, %v3733_v36  ;;  %v3339_v55 = vmax.f32 %v7531_v56, %v2436_v21  ;;  %v3537_v24 = vmax.f32 %v3341_v51, %v3439_v23  ;;  %v3437_v27 = vmax.f32 %v7532_v44, %v3220_v48 }
 0x262   :  { %4928 = vst [vmem:[%s7244_s3 + $0x160] sm:$0xff] %v4863_v41   ;;  %v5347_v45 = vpop.f32.mrf.mxu0  ;;  %v5543_v6 = vpop.f32.mrf.mxu1  ;;  %v3639_v9 = vadd.f32 %v7082_v13, %v3534_v20  ;;  %v3739_v1 = vmax.f32 %v3641_v57, 0.0 }
 0x263   :  { %4927 = vst [vmem:[%s7244_s3 + $0x158] sm:$0xff] %v4858_v38   ;;  %v3344_v7 = vmax.f32 %v7533_v37, %v5347_v45  ;;  %v3442_v28 = vmax.f32 %v7534_v8, %v5543_v6  ;;  %v3642_v29 = vadd.f32 %v7082_v13, %v3537_v24  ;;  %v3535_v0 = vmax.f32 %v3339_v55, %v3437_v27 }
 0x264   :  { %v2449_v30 = vpop.f32.mrf.mxu0  ;;  %v3233_v31 = vpop.f32.mrf.mxu1  ;;  %v3737_v52 = vmax.f32 %v3639_v9, 0.0 }
 0x265   :  { %v3540_v54 = vmax.f32 %v3344_v7, %v3442_v28  ;;  %v3342_v10 = vmax.f32 %v7535_v60, %v2449_v30  ;;  %v3440_v3 = vmax.f32 %v7536_v2, %v3233_v31  ;;  %v3740_v34 = vmax.f32 %v3642_v29, 0.0 }
 0x266   :  { %v3640_v61 = vadd.f32 %v7082_v13, %v3535_v0  ;;  %v5348_v58 = vpop.f32.mrf.mxu0  ;;  %v5544_v59 = vpop.f32.mrf.mxu1 }
 0x267   :  { %v3345_v11 = vmax.f32 %v7537_v46, %v5348_v58  ;;  %v3443_v47 = vmax.f32 %v7538_v35, %v5544_v59  ;;  %v4873_v32 = vpack.c.bf16 %v3740_v34, %v3739_v1  ;;  %v3538_v33 = vmax.f32 %v3342_v10, %v3440_v3 }
 0x268   :  { %v3738_v16 = vmax.f32 %v3640_v61, 0.0  ;;  %v2452_v14 = vpop.f32.mrf.mxu0  ;;  %v3236_v17 = vpop.f32.mrf.mxu1  ;;  %v3645_v15 = vadd.f32 %v7082_v13, %v3540_v54 }
 0x269   :  { %v3541_v12 = vmax.f32 %v3345_v11, %v3443_v47  ;;  %v3343_v39 = vmax.f32 %v7539_v62, %v2452_v14  ;;  %4930 = vst [vmem:[%s7244_s3 + $0x170] sm:$0xff] %v4873_v32   ;;  %v3441_v5 = vmax.f32 %v7540_v4, %v3236_v17  ;;  %v3643_v18 = vadd.f32 %v7082_v13, %v3538_v33 }
 0x26a   :  { %v4868_v26 = vpack.c.bf16 %v3738_v16, %v3737_v52  ;;  %v3743_v19 = vmax.f32 %v3645_v15, 0.0 }
 0x26b   :  { %v3646_v53 = vadd.f32 %v7082_v13, %v3541_v12  ;;  %v3539_v42 = vmax.f32 %v3343_v39, %v3441_v5  ;;  %v3741_v49 = vmax.f32 %v3643_v18, 0.0 }
 0x26c   :  { %4929 = vst [vmem:[%s7244_s3 + $0x168] sm:$0xff] %v4868_v26  }
 0x26d   :  { %v3744_v43 = vmax.f32 %v3646_v53, 0.0  ;;  %v3644_v63 = vadd.f32 %v7082_v13, %v3539_v42 }
 0x26f   :  { %v4883_v25 = vpack.c.bf16 %v3744_v43, %v3743_v19  ;;  %v3742_v36 = vmax.f32 %v3644_v63, 0.0 }
 0x271   :  { %4932 = vst [vmem:[%s7244_s3 + $0x180] sm:$0xff] %v4883_v25   ;;  %v4878_v40 = vpack.c.bf16 %v3742_v36, %v3741_v49 }
 0x273   :  { %4931 = vst [vmem:[%s7244_s3 + $0x178] sm:$0xff] %v4878_v40  }

// kernel: net_forward.4
= control target key start
LH: loop header
LB: loop body
LE: loop exit
PB: predicated region body
PF: predicated region fallthrough
CT: control target
= control target key end

     0   :  { %v1095_v0 = vmov 0   ;;  %s1463_s1 = inlined_call_operand.vmem [shape: bf16[256,128], index: 1, kind: input, shape index: {}]   ;;  %s1464_s0 = inlined_call_operand.vmem [shape: bf16[4,104,256], index: 0, kind: input, shape index: {}]   ;;  %s1465_s2 = inlined_call_operand.vmem [shape: f32[1,128], index: 2, kind: input, shape index: {}]   ;;  %s1466_s3 = inlined_call_operand.vmem [shape: bf16[104,128], index: 3, kind: output, shape index: {}]  }
   0x1   :  { %455 = vmatprep.subr.bf16.mxu0 %v1095_v0  ;;  %968 = vmatprep.subr.bf16.mxu1 %v1095_v0  ;;  %v1001_v1 = vld [vmem:[%s1463_s1 + $0x38] sm:$0xff]   ;;  %v1002_v2 = vld [vmem:[%s1463_s1 + $0x30] sm:$0xff]   ;;  %v1003_v3 = vld [vmem:[%s1463_s1 + $0x28] sm:$0xff]  }
   0x2   :  { %456 = vmatpush1.bf16.msra.mxu0 %v1001_v1  ;;  %984 = vmatpush1.bf16.msra.mxu1 %v1001_v1  ;;  %v1004_v4 = vld [vmem:[%s1463_s1 + $0x20] sm:$0xff]   ;;  %v1005_v5 = vld [vmem:[%s1463_s1 + $0x18] sm:$0xff]   ;;  %v1006_v7 = vld [vmem:[%s1463_s1 + $0x10] sm:$0xff]  }
   0x3   :  { %457 = vmatprep.subr.bf16.mxu0 %v1095_v0  ;;  %969 = vmatprep.subr.bf16.mxu1 %v1095_v0  ;;  %v1019_v6 = vld [vmem:[%s1464_s0 + $0x4] ss:$8 sps:$4 sm:$0xff]   ;;  %v1022_v8 = vld [vmem:[%s1464_s0 + $0xd4] ss:$8 sps:$4 sm:$0xff]   ;;  %v1017_v19 = vld [vmem:[%s1464_s0] ss:$8 sps:$4 sm:$0xff]  }
   0x4   :  { %487 = vmatprep.mubr.bf16.mxu0 %v1019_v6  ;;  %591 = vmatprep.mubr.bf16.mxu1 %v1022_v8  ;;  %v1007_v9 = vld [vmem:[%s1463_s1 + $0x8] sm:$0xff]   ;;  %v1008_v10 = vld [vmem:[%s1463_s1] sm:$0xff]   ;;  %v1009_v11 = vld [vmem:[%s1463_s1 + $0x78] sm:$0xff]  }
   0x5   :  { %v1010_v12 = vld [vmem:[%s1463_s1 + $0x70] sm:$0xff]   ;;  %v1011_v13 = vld [vmem:[%s1463_s1 + $0x68] sm:$0xff]   ;;  %v1012_v14 = vld [vmem:[%s1463_s1 + $0x60] sm:$0xff]  }
   0x6   :  { %458 = vmatpush1.bf16.msra.mxu0 %v1002_v2  ;;  %985 = vmatpush1.bf16.msra.mxu1 %v1002_v2  ;;  %v1013_v15 = vld [vmem:[%s1463_s1 + $0x58] sm:$0xff]   ;;  %v1014_v16 = vld [vmem:[%s1463_s1 + $0x50] sm:$0xff]   ;;  %v1015_v17 = vld [vmem:[%s1463_s1 + $0x48] sm:$0xff]  }
   0x7   :  { %459 = vmatprep.subr.bf16.mxu0 %v1095_v0  ;;  %970 = vmatprep.subr.bf16.mxu1 %v1095_v0  ;;  %v1016_v18 = vld [vmem:[%s1463_s1 + $0x40] sm:$0xff]   ;;  %v1020_v20 = vld [vmem:[%s1464_s0 + $0xd0] ss:$8 sps:$4 sm:$0xff]   ;;  %v1023_v21 = vld [vmem:[%s1464_s0 + $0x14] ss:$8 sps:$4 sm:$0xff]  }
   0x8   :  { %v1025_v22 = vld [vmem:[%s1464_s0 + $0xe4] ss:$8 sps:$4 sm:$0xff]   ;;  %v1027_v23 = vld [vmem:[%s1464_s0 + $0x10] ss:$8 sps:$4 sm:$0xff]   ;;  %v1028_v24 = vld [vmem:[%s1464_s0 + $0xe0] ss:$8 sps:$4 sm:$0xff]  }
   0x9   :  { %v1029_v25 = vld [vmem:[%s1464_s0 + $0x24] ss:$8 sps:$4 sm:$0xff]   ;;  %v1031_v26 = vld [vmem:[%s1464_s0 + $0xf4] ss:$8 sps:$4 sm:$0xff]   ;;  %v1033_v27 = vld [vmem:[%s1464_s0 + $0x20] ss:$8 sps:$4 sm:$0xff]  }
   0xa   :  { %460 = vmatpush1.bf16.msra.mxu0 %v1003_v3  ;;  %986 = vmatpush1.bf16.msra.mxu1 %v1003_v3  ;;  %v1034_v28 = vld [vmem:[%s1464_s0 + $0xf0] ss:$8 sps:$4 sm:$0xff]   ;;  %v1035_v29 = vld [vmem:[%s1464_s0 + $0x34] ss:$8 sps:$4 sm:$0xff]   ;;  %v1037_v30 = vld [vmem:[%s1464_s0 + $0x104] ss:$8 sps:$4 sm:$0xff]  }
   0xb   :  { %461 = vmatprep.subr.bf16.mxu0 %v1095_v0  ;;  %971 = vmatprep.subr.bf16.mxu1 %v1095_v0  ;;  %v1039_v31 = vld [vmem:[%s1464_s0 + $0x30] ss:$8 sps:$4 sm:$0xff]   ;;  %v1040_v32 = vld [vmem:[%s1464_s0 + $0x100] ss:$8 sps:$4 sm:$0xff]   ;;  %v1041_v33 = vld [vmem:[%s1464_s0 + $0x44] ss:$8 sps:$4 sm:$0xff]  }
   0xc   :  { %v1043_v34 = vld [vmem:[%s1464_s0 + $0x114] ss:$8 sps:$4 sm:$0xff]   ;;  %v1045_v35 = vld [vmem:[%s1464_s0 + $0x40] ss:$8 sps:$4 sm:$0xff]   ;;  %v1046_v36 = vld [vmem:[%s1464_s0 + $0x110] ss:$8 sps:$4 sm:$0xff]  }
   0xd   :  { %v1047_v37 = vld [vmem:[%s1464_s0 + $0x54] ss:$8 sps:$4 sm:$0xff]   ;;  %v1049_v38 = vld [vmem:[%s1464_s0 + $0x124] ss:$8 sps:$4 sm:$0xff]   ;;  %v1051_v39 = vld [vmem:[%s1464_s0 + $0x50] ss:$8 sps:$4 sm:$0xff]  }
   0xe   :  { %462 = vmatpush1.bf16.msra.mxu0 %v1004_v4  ;;  %987 = vmatpush1.bf16.msra.mxu1 %v1004_v4  ;;  %v1052_v40 = vld [vmem:[%s1464_s0 + $0x120] ss:$8 sps:$4 sm:$0xff]   ;;  %v1053_v41 = vld [vmem:[%s1464_s0 + $0x64] ss:$8 sps:$4 sm:$0xff]   ;;  %v1055_v42 = vld [vmem:[%s1464_s0 + $0x134] ss:$8 sps:$4 sm:$0xff]  }
   0xf   :  { %463 = vmatprep.subr.bf16.mxu0 %v1095_v0  ;;  %972 = vmatprep.subr.bf16.mxu1 %v1095_v0  ;;  %v1057_v43 = vld [vmem:[%s1464_s0 + $0x60] ss:$8 sps:$4 sm:$0xff]   ;;  %v1058_v44 = vld [vmem:[%s1464_s0 + $0x130] ss:$8 sps:$4 sm:$0xff]   ;;  %v1059_v45 = vld [vmem:[%s1464_s0 + $0x74] ss:$8 sps:$4 sm:$0xff]  }
  0x10   :  { %v1061_v46 = vld [vmem:[%s1464_s0 + $0x144] ss:$8 sps:$4 sm:$0xff]   ;;  %v1063_v47 = vld [vmem:[%s1464_s0 + $0x70] ss:$8 sps:$4 sm:$0xff]   ;;  %v1064_v48 = vld [vmem:[%s1464_s0 + $0x140] ss:$8 sps:$4 sm:$0xff]  }
  0x11   :  { %v1065_v49 = vld [vmem:[%s1464_s0 + $0x84] ss:$8 sps:$4 sm:$0xff]   ;;  %v1067_v50 = vld [vmem:[%s1464_s0 + $0x154] ss:$8 sps:$4 sm:$0xff]   ;;  %v1069_v51 = vld [vmem:[%s1464_s0 + $0x80] ss:$8 sps:$4 sm:$0xff]  }
  0x12   :  { %464 = vmatpush1.bf16.msra.mxu0 %v1005_v5  ;;  %988 = vmatpush1.bf16.msra.mxu1 %v1005_v5  ;;  %v1070_v52 = vld [vmem:[%s1464_s0 + $0x150] ss:$8 sps:$4 sm:$0xff]   ;;  %v1071_v53 = vld [vmem:[%s1464_s0 + $0x94] ss:$8 sps:$4 sm:$0xff]   ;;  %v1073_v54 = vld [vmem:[%s1464_s0 + $0x164] ss:$8 sps:$4 sm:$0xff]  }
  0x13   :  { %465 = vmatprep.subr.bf16.mxu0 %v1095_v0  ;;  %973 = vmatprep.subr.bf16.mxu1 %v1095_v0  ;;  %v1075_v55 = vld [vmem:[%s1464_s0 + $0x90] ss:$8 sps:$4 sm:$0xff]   ;;  %v1076_v56 = vld [vmem:[%s1464_s0 + $0x160] ss:$8 sps:$4 sm:$0xff]   ;;  %v1077_v57 = vld [vmem:[%s1464_s0 + $0xa4] ss:$8 sps:$4 sm:$0xff]  }
  0x14   :  { %v1079_v58 = vld [vmem:[%s1464_s0 + $0x174] ss:$8 sps:$4 sm:$0xff]   ;;  %v1081_v59 = vld [vmem:[%s1464_s0 + $0xa0] ss:$8 sps:$4 sm:$0xff]   ;;  %v1082_v60 = vld [vmem:[%s1464_s0 + $0x170] ss:$8 sps:$4 sm:$0xff]  }
  0x15   :  { %v1083_v61 = vld [vmem:[%s1464_s0 + $0xb4] ss:$8 sps:$4 sm:$0xff]   ;;  %v1085_v62 = vld [vmem:[%s1464_s0 + $0x184] ss:$8 sps:$4 sm:$0xff]   ;;  %v1087_v63 = vld [vmem:[%s1464_s0 + $0xb0] ss:$8 sps:$4 sm:$0xff]  }
  0x16   :  { %466 = vmatpush1.bf16.msra.mxu0 %v1006_v7  ;;  %989 = vmatpush1.bf16.msra.mxu1 %v1006_v7  ;;  %v1089_v1 = vld [vmem:[%s1464_s0 + $0xc4] ss:$8 sps:$4 sm:$0xff]   ;;  %v1091_v2 = vld [vmem:[%s1464_s0 + $0x194] ss:$8 sps:$4 sm:$0xff]   ;;  %v1093_v3 = vld [vmem:[%s1464_s0 + $0xc0] ss:$8 sps:$4 sm:$0xff]  }
  0x17   :  { %467 = vmatprep.subr.bf16.mxu0 %v1095_v0  ;;  %974 = vmatprep.subr.bf16.mxu1 %v1095_v0  ;;  %v1094_v4 = vld [vmem:[%s1464_s0 + $0x190] ss:$8 sps:$4 sm:$0xff]  }
  0x1a   :  { %468 = vmatpush1.bf16.msra.mxu0 %v1007_v9  ;;  %990 = vmatpush1.bf16.msra.mxu1 %v1007_v9 }
  0x1b   :  { %469 = vmatprep.subr.bf16.mxu0 %v1095_v0  ;;  %975 = vmatprep.subr.bf16.mxu1 %v1095_v0 }
  0x1e   :  { %470 = vmatpush1.bf16.msra.mxu0 %v1008_v10  ;;  %991 = vmatpush1.bf16.msra.mxu1 %v1008_v10 }
  0x1f   :  { %471 = vmatprep.subr.bf16.mxu0 %v1095_v0  ;;  %976 = vmatprep.subr.bf16.mxu1 %v1095_v0 }
  0x22   :  { %472 = vmatpush2.bf16.msra.mxu0 %v1009_v11  ;;  %992 = vmatpush2.bf16.msra.mxu1 %v1009_v11 }
  0x23   :  { %473 = vmatprep.subr.bf16.mxu0 %v1095_v0  ;;  %977 = vmatprep.subr.bf16.mxu1 %v1095_v0 }
  0x26   :  { %474 = vmatpush2.bf16.msra.mxu0 %v1010_v12  ;;  %993 = vmatpush2.bf16.msra.mxu1 %v1010_v12 }
  0x27   :  { %475 = vmatprep.subr.bf16.mxu0 %v1095_v0  ;;  %978 = vmatprep.subr.bf16.mxu1 %v1095_v0 }
  0x2a   :  { %476 = vmatpush2.bf16.msra.mxu0 %v1011_v13  ;;  %994 = vmatpush2.bf16.msra.mxu1 %v1011_v13 }
  0x2b   :  { %477 = vmatprep.subr.bf16.mxu0 %v1095_v0  ;;  %979 = vmatprep.subr.bf16.mxu1 %v1095_v0 }
  0x2e   :  { %478 = vmatpush2.bf16.msra.mxu0 %v1012_v14  ;;  %995 = vmatpush2.bf16.msra.mxu1 %v1012_v14 }
  0x2f   :  { %479 = vmatprep.subr.bf16.mxu0 %v1095_v0  ;;  %980 = vmatprep.subr.bf16.mxu1 %v1095_v0 }
  0x32   :  { %480 = vmatpush2.bf16.msra.mxu0 %v1013_v15  ;;  %996 = vmatpush2.bf16.msra.mxu1 %v1013_v15 }
  0x33   :  { %481 = vmatprep.subr.bf16.mxu0 %v1095_v0  ;;  %981 = vmatprep.subr.bf16.mxu1 %v1095_v0 }
  0x36   :  { %482 = vmatpush2.bf16.msra.mxu0 %v1014_v16  ;;  %997 = vmatpush2.bf16.msra.mxu1 %v1014_v16 }
  0x37   :  { %483 = vmatprep.subr.bf16.mxu0 %v1095_v0  ;;  %982 = vmatprep.subr.bf16.mxu1 %v1095_v0 }
  0x3a   :  { %484 = vmatpush2.bf16.msra.mxu0 %v1015_v17  ;;  %998 = vmatpush2.bf16.msra.mxu1 %v1015_v17 }
  0x3b   :  { %485 = vmatprep.subr.bf16.mxu0 %v1095_v0  ;;  %983 = vmatprep.subr.bf16.mxu1 %v1095_v0  ;;  %v1088_v0 = vld [vmem:[%s1464_s0 + $0x180] ss:$8 sps:$4 sm:$0xff]  }
  0x3e   :  { %486 = vmatpush2.bf16.msra.mxu0 %v1016_v18  ;;  %999 = vmatpush2.bf16.msra.mxu1 %v1016_v18 }
  0x41   :  { %488 = vmatmul.mubr.bf16.vlgmr.msra.gmra.mxu0 %v1017_v19  ;;  %592 = vmatmul.mubr.bf16.vlgmr.msra.gmra.mxu1 %v1020_v20 }
  0x42   :  { %495 = vmatprep.mubr.bf16.mxu0 %v1023_v21  ;;  %599 = vmatprep.mubr.bf16.mxu1 %v1025_v22 }
  0x49   :  { %496 = vmatmul.mubr.bf16.gmra.mxu0 %v1027_v23  ;;  %600 = vmatmul.mubr.bf16.gmra.mxu1 %v1028_v24 }
  0x4a   :  { %503 = vmatprep.mubr.bf16.mxu0 %v1029_v25  ;;  %607 = vmatprep.mubr.bf16.mxu1 %v1031_v26 }
  0x51   :  { %504 = vmatmul.mubr.bf16.gmra.mxu0 %v1033_v27  ;;  %608 = vmatmul.mubr.bf16.gmra.mxu1 %v1034_v28 }
  0x52   :  { %511 = vmatprep.mubr.bf16.mxu0 %v1035_v29  ;;  %615 = vmatprep.mubr.bf16.mxu1 %v1037_v30 }
  0x59   :  { %512 = vmatmul.mubr.bf16.gmra.mxu0 %v1039_v31  ;;  %616 = vmatmul.mubr.bf16.gmra.mxu1 %v1040_v32 }
  0x5a   :  { %519 = vmatprep.mubr.bf16.mxu0 %v1041_v33  ;;  %623 = vmatprep.mubr.bf16.mxu1 %v1043_v34 }
  0x61   :  { %520 = vmatmul.mubr.bf16.gmra.mxu0 %v1045_v35  ;;  %624 = vmatmul.mubr.bf16.gmra.mxu1 %v1046_v36 }
  0x62   :  { %527 = vmatprep.mubr.bf16.mxu0 %v1047_v37  ;;  %631 = vmatprep.mubr.bf16.mxu1 %v1049_v38 }
  0x69   :  { %528 = vmatmul.mubr.bf16.gmra.mxu0 %v1051_v39  ;;  %632 = vmatmul.mubr.bf16.gmra.mxu1 %v1052_v40 }
  0x6a   :  { %535 = vmatprep.mubr.bf16.mxu0 %v1053_v41  ;;  %639 = vmatprep.mubr.bf16.mxu1 %v1055_v42 }
  0x71   :  { %536 = vmatmul.mubr.bf16.gmra.mxu0 %v1057_v43  ;;  %640 = vmatmul.mubr.bf16.gmra.mxu1 %v1058_v44 }
  0x72   :  { %543 = vmatprep.mubr.bf16.mxu0 %v1059_v45  ;;  %647 = vmatprep.mubr.bf16.mxu1 %v1061_v46 }
  0x79   :  { %544 = vmatmul.mubr.bf16.gmra.mxu0 %v1063_v47  ;;  %648 = vmatmul.mubr.bf16.gmra.mxu1 %v1064_v48 }
  0x7a   :  { %551 = vmatprep.mubr.bf16.mxu0 %v1065_v49  ;;  %655 = vmatprep.mubr.bf16.mxu1 %v1067_v50 }
  0x81   :  { %552 = vmatmul.mubr.bf16.gmra.mxu0 %v1069_v51  ;;  %656 = vmatmul.mubr.bf16.gmra.mxu1 %v1070_v52 }
  0x82   :  { %559 = vmatprep.mubr.bf16.mxu0 %v1071_v53  ;;  %663 = vmatprep.mubr.bf16.mxu1 %v1073_v54 }
  0x89   :  { %560 = vmatmul.mubr.bf16.gmra.mxu0 %v1075_v55  ;;  %664 = vmatmul.mubr.bf16.gmra.mxu1 %v1076_v56 }
  0x8a   :  { %567 = vmatprep.mubr.bf16.mxu0 %v1077_v57  ;;  %671 = vmatprep.mubr.bf16.mxu1 %v1079_v58 }
  0x91   :  { %568 = vmatmul.mubr.bf16.gmra.mxu0 %v1081_v59  ;;  %672 = vmatmul.mubr.bf16.gmra.mxu1 %v1082_v60 }
  0x92   :  { %575 = vmatprep.mubr.bf16.mxu0 %v1083_v61  ;;  %679 = vmatprep.mubr.bf16.mxu1 %v1085_v62 }
  0x99   :  { %576 = vmatmul.mubr.bf16.gmra.mxu0 %v1087_v63  ;;  %680 = vmatmul.mubr.bf16.gmra.mxu1 %v1088_v0  ;;  %v1403_v0 = vld [vmem:[%s1465_s2] ss:$0 sm:$0xff] }
  0x9a   :  { %583 = vmatprep.mubr.bf16.mxu0 %v1089_v1  ;;  %687 = vmatprep.mubr.bf16.mxu1 %v1091_v2 }
  0xa1   :  { %584 = vmatmul.mubr.bf16.gmra.mxu0 %v1093_v3  ;;  %688 = vmatmul.mubr.bf16.gmra.mxu1 %v1094_v4 }
 0x101   :  { %v489_v5 = vpop.f32.mrf.mxu0  ;;  %v593_v6 = vpop.f32.mrf.mxu1 }
 0x103   :  { %v491_v7 = vpop.f32.mrf.mxu0  ;;  %v595_v8 = vpop.f32.mrf.mxu1 }
 0x105   :  { %v1352_v9 = vpop.f32.mrf.mxu0  ;;  %v1354_v10 = vpop.f32.mrf.mxu1 }
 0x107   :  { %v494_v11 = vpop.f32.mrf.mxu0  ;;  %v598_v12 = vpop.f32.mrf.mxu1 }
 0x109   :  { %v1356_v13 = vpop.f32.mrf.mxu0  ;;  %v1358_v14 = vpop.f32.mrf.mxu1 }
 0x10b   :  { %v499_v15 = vpop.f32.mrf.mxu0  ;;  %v603_v16 = vpop.f32.mrf.mxu1 }
 0x10d   :  { %v1360_v17 = vpop.f32.mrf.mxu0  ;;  %v1362_v18 = vpop.f32.mrf.mxu1 }
 0x10f   :  { %v502_v19 = vpop.f32.mrf.mxu0  ;;  %v606_v20 = vpop.f32.mrf.mxu1 }
 0x111   :  { %v1364_v21 = vpop.f32.mrf.mxu0  ;;  %v1366_v22 = vpop.f32.mrf.mxu1 }
 0x113   :  { %v507_v23 = vpop.f32.mrf.mxu0  ;;  %v611_v24 = vpop.f32.mrf.mxu1 }
 0x115   :  { %v1368_v25 = vpop.f32.mrf.mxu0  ;;  %v1370_v26 = vpop.f32.mrf.mxu1 }
 0x117   :  { %v510_v27 = vpop.f32.mrf.mxu0  ;;  %v614_v28 = vpop.f32.mrf.mxu1 }
 0x119   :  { %v1372_v29 = vpop.f32.mrf.mxu0  ;;  %v1374_v30 = vpop.f32.mrf.mxu1 }
 0x11b   :  { %v515_v31 = vpop.f32.mrf.mxu0  ;;  %v619_v32 = vpop.f32.mrf.mxu1 }
 0x11d   :  { %v1376_v33 = vpop.f32.mrf.mxu0  ;;  %v1378_v34 = vpop.f32.mrf.mxu1 }
 0x11f   :  { %v518_v35 = vpop.f32.mrf.mxu0  ;;  %v622_v36 = vpop.f32.mrf.mxu1 }
 0x121   :  { %v1380_v37 = vpop.f32.mrf.mxu0  ;;  %v1382_v38 = vpop.f32.mrf.mxu1 }
 0x123   :  { %v523_v39 = vpop.f32.mrf.mxu0  ;;  %v627_v40 = vpop.f32.mrf.mxu1 }
 0x125   :  { %v1384_v41 = vpop.f32.mrf.mxu0  ;;  %v1386_v42 = vpop.f32.mrf.mxu1 }
 0x127   :  { %v526_v43 = vpop.f32.mrf.mxu0  ;;  %v630_v44 = vpop.f32.mrf.mxu1 }
 0x129   :  { %v1388_v45 = vpop.f32.mrf.mxu0  ;;  %v1390_v46 = vpop.f32.mrf.mxu1 }
 0x12b   :  { %v531_v47 = vpop.f32.mrf.mxu0  ;;  %v635_v48 = vpop.f32.mrf.mxu1 }
 0x12d   :  { %v1392_v49 = vpop.f32.mrf.mxu0  ;;  %v1394_v50 = vpop.f32.mrf.mxu1 }
 0x12f   :  { %v534_v51 = vpop.f32.mrf.mxu0  ;;  %v638_v52 = vpop.f32.mrf.mxu1 }
 0x131   :  { %v1396_v53 = vpop.f32.mrf.mxu0  ;;  %v1398_v54 = vpop.f32.mrf.mxu1 }
 0x133   :  { %v539_v55 = vpop.f32.mrf.mxu0  ;;  %v643_v56 = vpop.f32.mrf.mxu1 }
 0x135   :  { %v540_v57 = vpop.f32.mrf.mxu0  ;;  %v644_v58 = vpop.f32.mrf.mxu1 }
 0x136   :  { %v696_v59 = vmax.f32 %v489_v5, %v540_v57  ;;  %v709_v60 = vmax.f32 %v593_v6, %v644_v58 }
 0x137   :  { %v542_v61 = vpop.f32.mrf.mxu0  ;;  %v646_v62 = vpop.f32.mrf.mxu1 }
 0x138   :  { %v722_v63 = vmax.f32 %v696_v59, %v709_v60 }
 0x139   :  { %v545_v1 = vpop.f32.mrf.mxu0  ;;  %v649_v2 = vpop.f32.mrf.mxu1 }
 0x13a   :  { %v697_v3 = vmax.f32 %v1352_v9, %v545_v1  ;;  %v710_v4 = vmax.f32 %v1354_v10, %v649_v2  ;;  %v742_v11 = vadd.f32 %v1403_v0, %v722_v63 }
 0x13b   :  { %v547_v7 = vpop.f32.mrf.mxu0  ;;  %v651_v8 = vpop.f32.mrf.mxu1 }
 0x13c   :  { %v723_v5 = vmax.f32 %v697_v3, %v710_v4  ;;  %v755_v24 = vmax.f32 %v742_v11, 0.0 }
 0x13d   :  { %v548_v6 = vpop.f32.mrf.mxu0  ;;  %v652_v12 = vpop.f32.mrf.mxu1 }
 0x13e   :  { %v743_v15 = vadd.f32 %v1403_v0, %v723_v5  ;;  %v698_v16 = vmax.f32 %v1356_v13, %v548_v6  ;;  %v711_v19 = vmax.f32 %v1358_v14, %v652_v12 }
 0x13f   :  { %v550_v20 = vpop.f32.mrf.mxu0  ;;  %v654_v23 = vpop.f32.mrf.mxu1 }
 0x140   :  { %v756_v27 = vmax.f32 %v743_v15, 0.0  ;;  %v724_v9 = vmax.f32 %v698_v16, %v711_v19 }
 0x141   :  { %v553_v28 = vpop.f32.mrf.mxu0  ;;  %v657_v10 = vpop.f32.mrf.mxu1 }
 0x142   :  { %v936_v31 = vpack.c.bf16 %v756_v27, %v755_v24  ;;  %v699_v32 = vmax.f32 %v1360_v17, %v553_v28  ;;  %v712_v35 = vmax.f32 %v1362_v18, %v657_v10  ;;  %v744_v13 = vadd.f32 %v1403_v0, %v724_v9 }
 0x143   :  { %v555_v36 = vpop.f32.mrf.mxu0  ;;  %v659_v39 = vpop.f32.mrf.mxu1 }
 0x144   :  { %937 = vst [vmem:[%s1466_s3] sm:$0xff] %v936_v31   ;;  %v725_v14 = vmax.f32 %v699_v32, %v712_v35  ;;  %v757_v18 = vmax.f32 %v744_v13, 0.0 }
 0x145   :  { %v556_v40 = vpop.f32.mrf.mxu0  ;;  %v660_v43 = vpop.f32.mrf.mxu1 }
 0x146   :  { %v745_v44 = vadd.f32 %v1403_v0, %v725_v14  ;;  %v700_v47 = vmax.f32 %v1364_v21, %v556_v40  ;;  %v713_v48 = vmax.f32 %v1366_v22, %v660_v43 }
 0x147   :  { %v558_v17 = vpop.f32.mrf.mxu0  ;;  %v662_v51 = vpop.f32.mrf.mxu1 }
 0x148   :  { %v758_v52 = vmax.f32 %v745_v44, 0.0  ;;  %v726_v55 = vmax.f32 %v700_v47, %v713_v48 }
 0x149   :  { %v561_v56 = vpop.f32.mrf.mxu0  ;;  %v665_v57 = vpop.f32.mrf.mxu1 }
 0x14a   :  { %v941_v58 = vpack.c.bf16 %v758_v52, %v757_v18  ;;  %v701_v59 = vmax.f32 %v1368_v25, %v561_v56  ;;  %v714_v60 = vmax.f32 %v1370_v26, %v665_v57  ;;  %v746_v21 = vadd.f32 %v1403_v0, %v726_v55 }
 0x14b   :  { %v563_v61 = vpop.f32.mrf.mxu0  ;;  %v667_v62 = vpop.f32.mrf.mxu1 }
 0x14c   :  { %963 = vst [vmem:[%s1466_s3 + $0x8] sm:$0xff] %v941_v58   ;;  %v727_v22 = vmax.f32 %v701_v59, %v714_v60  ;;  %v759_v26 = vmax.f32 %v746_v21, 0.0 }
 0x14d   :  { %v564_v63 = vpop.f32.mrf.mxu0  ;;  %v668_v1 = vpop.f32.mrf.mxu1 }
 0x14e   :  { %v747_v2 = vadd.f32 %v1403_v0, %v727_v22  ;;  %v702_v3 = vmax.f32 %v1372_v29, %v564_v63  ;;  %v715_v4 = vmax.f32 %v1374_v30, %v668_v1 }
 0x14f   :  { %v566_v25 = vpop.f32.mrf.mxu0  ;;  %v670_v7 = vpop.f32.mrf.mxu1 }
 0x150   :  { %v760_v8 = vmax.f32 %v747_v2, 0.0  ;;  %v728_v11 = vmax.f32 %v702_v3, %v715_v4 }
 0x151   :  { %v569_v5 = vpop.f32.mrf.mxu0  ;;  %v673_v6 = vpop.f32.mrf.mxu1 }
 0x152   :  { %v946_v12 = vpack.c.bf16 %v760_v8, %v759_v26  ;;  %v703_v15 = vmax.f32 %v1376_v33, %v569_v5  ;;  %v716_v16 = vmax.f32 %v1378_v34, %v673_v6  ;;  %v748_v29 = vadd.f32 %v1403_v0, %v728_v11 }
 0x153   :  { %v571_v19 = vpop.f32.mrf.mxu0  ;;  %v675_v20 = vpop.f32.mrf.mxu1 }
 0x154   :  { %964 = vst [vmem:[%s1466_s3 + $0x10] sm:$0xff] %v946_v12   ;;  %v729_v30 = vmax.f32 %v703_v15, %v716_v16  ;;  %v761_v34 = vmax.f32 %v748_v29, 0.0 }
 0x155   :  { %v572_v23 = vpop.f32.mrf.mxu0  ;;  %v676_v24 = vpop.f32.mrf.mxu1 }
 0x156   :  { %v749_v27 = vadd.f32 %v1403_v0, %v729_v30  ;;  %v704_v9 = vmax.f32 %v1380_v37, %v572_v23  ;;  %v717_v28 = vmax.f32 %v1382_v38, %v676_v24 }
 0x157   :  { %v574_v33 = vpop.f32.mrf.mxu0  ;;  %v678_v10 = vpop.f32.mrf.mxu1 }
 0x158   :  { %v762_v31 = vmax.f32 %v749_v27, 0.0  ;;  %v730_v32 = vmax.f32 %v704_v9, %v717_v28 }
 0x159   :  { %v577_v35 = vpop.f32.mrf.mxu0  ;;  %v681_v36 = vpop.f32.mrf.mxu1 }
 0x15a   :  { %v951_v39 = vpack.c.bf16 %v762_v31, %v761_v34  ;;  %v705_v13 = vmax.f32 %v1384_v41, %v577_v35  ;;  %v718_v14 = vmax.f32 %v1386_v42, %v681_v36  ;;  %v750_v37 = vadd.f32 %v1403_v0, %v730_v32 }
 0x15b   :  { %v579_v40 = vpop.f32.mrf.mxu0  ;;  %v683_v43 = vpop.f32.mrf.mxu1 }
 0x15c   :  { %965 = vst [vmem:[%s1466_s3 + $0x18] sm:$0xff] %v951_v39   ;;  %v731_v38 = vmax.f32 %v705_v13, %v718_v14  ;;  %v763_v42 = vmax.f32 %v750_v37, 0.0 }
 0x15d   :  { %v580_v44 = vpop.f32.mrf.mxu0  ;;  %v684_v47 = vpop.f32.mrf.mxu1 }
 0x15e   :  { %v751_v48 = vadd.f32 %v1403_v0, %v731_v38  ;;  %v706_v17 = vmax.f32 %v1388_v45, %v580_v44  ;;  %v719_v51 = vmax.f32 %v1390_v46, %v684_v47 }
 0x15f   :  { %v582_v41 = vpop.f32.mrf.mxu0  ;;  %v686_v18 = vpop.f32.mrf.mxu1 }
 0x160   :  { %v764_v52 = vmax.f32 %v751_v48, 0.0  ;;  %v732_v55 = vmax.f32 %v706_v17, %v719_v51 }
 0x161   :  { %v585_v56 = vpop.f32.mrf.mxu0  ;;  %v689_v57 = vpop.f32.mrf.mxu1 }
 0x162   :  { %v956_v58 = vpack.c.bf16 %v764_v52, %v763_v42  ;;  %v707_v59 = vmax.f32 %v1392_v49, %v585_v56  ;;  %v720_v60 = vmax.f32 %v1394_v50, %v689_v57  ;;  %v752_v45 = vadd.f32 %v1403_v0, %v732_v55 }
 0x163   :  { %v587_v61 = vpop.f32.mrf.mxu0  ;;  %v691_v62 = vpop.f32.mrf.mxu1 }
 0x164   :  { %966 = vst [vmem:[%s1466_s3 + $0x20] sm:$0xff] %v956_v58   ;;  %v733_v46 = vmax.f32 %v707_v59, %v720_v60  ;;  %v765_v50 = vmax.f32 %v752_v45, 0.0 }
 0x165   :  { %v588_v21 = vpop.f32.mrf.mxu0  ;;  %v692_v22 = vpop.f32.mrf.mxu1 }
 0x166   :  { %v753_v63 = vadd.f32 %v1403_v0, %v733_v46  ;;  %v708_v1 = vmax.f32 %v1396_v53, %v588_v21  ;;  %v721_v2 = vmax.f32 %v1398_v54, %v692_v22 }
 0x167   :  { %v590_v49 = vpop.f32.mrf.mxu0  ;;  %v694_v3 = vpop.f32.mrf.mxu1 }
 0x168   :  { %v766_v4 = vmax.f32 %v753_v63, 0.0  ;;  %v734_v25 = vmax.f32 %v708_v1, %v721_v2 }
 0x16a   :  { %v961_v7 = vpack.c.bf16 %v766_v4, %v765_v50  ;;  %v754_v26 = vadd.f32 %v1403_v0, %v734_v25 }
 0x16c   :  { %967 = vst [vmem:[%s1466_s3 + $0x28] sm:$0xff] %v961_v7   ;;  %v767_v8 = vmax.f32 %v754_v26, 0.0 }
 0x16e   :  { %v932_v11 = vpack.c.bf16 %v767_v8, %v767_v8 }
 0x170   :  { %833 = vst [vmem:[%s1466_s3 + $0x30] sm:$0xf] %v932_v11 }

// kernel: net_forward.5
= control target key start
LH: loop header
LB: loop body
LE: loop exit
PB: predicated region body
PF: predicated region fallthrough
CT: control target
= control target key end

     0   :  { %v741_v0 = vmov 0   ;;  %vm249_vm0 = vcmask 130048   ;;  %v742_v32 = vmov 0.0   ;;  %vm743_vm1 = vmmov 0   ;;  %s952_s1 = inlined_call_operand.vmem [shape: bf16[400,128], index: 1, kind: input, shape index: {}]   ;;  %s953_s0 = inlined_call_operand.vmem [shape: bf16[8,400], index: 0, kind: input, shape index: {}]   ;;  %s954_s3 = inlined_call_operand.vmem [shape: bf16[128,128], index: 3, kind: input, shape index: {}]   ;;  %s955_s5 = inlined_call_operand.vmem [shape: bf16[128,128], index: 5, kind: input, shape index: {}]   ;;  %s956_s2 = inlined_call_operand.vmem [shape: f32[1,128], index: 2, kind: input, shape index: {}]   ;;  %s957_s4 = inlined_call_operand.vmem [shape: f32[1,128], index: 4, kind: input, shape index: {}]   ;;  %s958_s6 = inlined_call_operand.vmem [shape: f32[1,128], index: 6, kind: input, shape index: {}]   ;;  %s959_s7 = inlined_call_operand.vmem [shape: f32[8,128], index: 7, kind: output, shape index: {}]  }
   0x1   :  { %293 = vmatprep.subr.bf16.mxu1 %v741_v0  ;;  %v696_v1 = vld [vmem:[%s952_s1 + $0x78] sm:$0xff]   ;;  %v699_v4 = vld [vmem:[%s952_s1 + $0x70] sm:$0xff]   ;;  %v702_v7 = vld [vmem:[%s952_s1 + $0x68] sm:$0xff]  }
   0x2   :  { %v697_v2 = vld [vmem:[%s952_s1 + $0xb8] sm:$0xff]   ;;  %613 = vmatprep.subr.bf16.mxu0 %v696_v1  ;;  %v700_v5 = vld [vmem:[%s952_s1 + $0xb0] sm:$0xff]   ;;  %v703_v8 = vld [vmem:[%s952_s1 + $0xa8] sm:$0xff]  }
   0x3   :  { %v698_v3 = vld [vmem:[%s952_s1 + $0x38] sm:$0xff]   ;;  %294 = vmatpush1.bf16.msra.mxu1 %v697_v2  ;;  %v701_v6 = vld [vmem:[%s952_s1 + $0x30] sm:$0xff]   ;;  %v704_v9 = vld [vmem:[%s952_s1 + $0x28] sm:$0xff]  }
   0x4   :  { %614 = vmatpush3.bf16.msra.mxu0 %v698_v3  ;;  %295 = vmatprep.subr.bf16.mxu1 %v741_v0  ;;  %v705_v10 = vld [vmem:[%s952_s1 + $0x60] sm:$0xff]   ;;  %v708_v13 = vld [vmem:[%s952_s1 + $0x58] sm:$0xff]   ;;  %v711_v16 = vld [vmem:[%s952_s1 + $0x50] sm:$0xff]  }
   0x5   :  { %615 = vmatprep.subr.bf16.mxu0 %v699_v4  ;;  %v706_v11 = vld [vmem:[%s952_s1 + $0xa0] sm:$0xff]   ;;  %v709_v14 = vld [vmem:[%s952_s1 + $0x98] sm:$0xff]   ;;  %v712_v17 = vld [vmem:[%s952_s1 + $0x90] sm:$0xff]  }
   0x6   :  { %v707_v12 = vld [vmem:[%s952_s1 + $0x20] sm:$0xff]   ;;  %v710_v15 = vld [vmem:[%s952_s1 + $0x18] sm:$0xff]   ;;  %v713_v18 = vld [vmem:[%s952_s1 + $0x10] sm:$0xff]  }
   0x7   :  { %296 = vmatpush1.bf16.msra.mxu1 %v700_v5  ;;  %v714_v19 = vld [vmem:[%s952_s1 + $0x48] sm:$0xff]   ;;  %v27_v22 = vld [vmem:[%s953_s0] sm:$0xff]  ;;  %v725_v31 = vld [vmem:[%s954_s3 + $0x38] sm:$0xff]  }
   0x8   :  { %616 = vmatpush3.bf16.msra.mxu0 %v701_v6  ;;  %297 = vmatprep.subr.bf16.mxu1 %v741_v0  ;;  %v715_v20 = vld [vmem:[%s952_s1 + $0x88] sm:$0xff]   ;;  %v717_v23 = vld [vmem:[%s952_s1 + $0x40] sm:$0xff]   ;;  %v566_v24 = vcombine.high %v27_v22, %v27_v22  ;;  %v565_v30 = vcombine.low %v27_v22, %v27_v22  ;;  %v726_v34 = vld [vmem:[%s954_s3 + $0x30] sm:$0xff]  }
   0x9   :  { %617 = vmatprep.subr.bf16.mxu0 %v702_v7  ;;  %v716_v21 = vld [vmem:[%s952_s1 + $0x8] sm:$0xff]   ;;  %v718_v27 = vld [vmem:[%s952_s1 + $0x80] sm:$0xff]   ;;  %v729_v37 = vld [vmem:[%s954_s3 + $0x18] sm:$0xff]  }
   0xa   :  { %v28_v25 = vld [vmem:[%s953_s0 + $0x8] sm:$0xff]  ;;  %285 = vmatprep.mubr.bf16.mxu0 %v566_v24  ;;  %v719_v28 = vld [vmem:[%s952_s1] sm:$0xff]   ;;  %v730_v38 = vld [vmem:[%s954_s3 + $0x10] sm:$0xff]  }
   0xb   :  { %298 = vmatpush1.bf16.msra.mxu1 %v703_v8  ;;  %v568_v26 = vcombine.high %v28_v25, %v28_v25  ;;  %v722_v29 = vld [vmem:[%s952_s1 + $0xc0] sm:$0xff]   ;;  %v567_v33 = vcombine.low %v28_v25, %v28_v25  ;;  %v727_v35 = vld [vmem:[%s954_s3 + $0x28] sm:$0xff]   ;;  %v733_v41 = vld [vmem:[%s955_s5 + $0x38] sm:$0xff]  }
   0xc   :  { %618 = vmatpush3.bf16.msra.mxu0 %v704_v9  ;;  %299 = vmatprep.subr.bf16.mxu1 %v741_v0  ;;  %v728_v36 = vld [vmem:[%s954_s3 + $0x20] sm:$0xff]   ;;  %v731_v39 = vld [vmem:[%s954_s3 + $0x8] sm:$0xff]   ;;  %v734_v42 = vld [vmem:[%s955_s5 + $0x30] sm:$0xff]  }
   0xd   :  { %619 = vmatprep.subr.bf16.mxu0 %v705_v10  ;;  %594 = vmatprep.mubr.msk.bf16.mxu1 %vm249_vm0, %v568_v26  ;;  %v732_v40 = vld [vmem:[%s954_s3] sm:$0xff]   ;;  %v735_v43 = vld [vmem:[%s955_s5 + $0x28] sm:$0xff]   ;;  %v737_v45 = vld [vmem:[%s955_s5 + $0x18] sm:$0xff]  }
   0xe   :  { %v736_v44 = vld [vmem:[%s955_s5 + $0x20] sm:$0xff]   ;;  %v738_v46 = vld [vmem:[%s955_s5 + $0x10] sm:$0xff]   ;;  %v739_v61 = vld [vmem:[%s955_s5 + $0x8] sm:$0xff]  }
   0xf   :  { %300 = vmatpush1.bf16.msra.mxu1 %v706_v11  ;;  %v564_v49 = vld [vmem:[%s956_s2] ss:$0 sm:$0xff] }
  0x10   :  { %620 = vmatpush3.bf16.msra.mxu0 %v707_v12  ;;  %301 = vmatprep.subr.bf16.mxu1 %v741_v0  ;;  %v740_v62 = vld [vmem:[%s955_s5] sm:$0xff]  }
  0x11   :  { %621 = vmatprep.subr.bf16.mxu0 %v708_v13  ;;  %v595_v63 = vld [vmem:[%s957_s4] ss:$0 sm:$0xff] }
  0x12   :  { %v604_v7 = vld [vmem:[%s958_s6] ss:$0 sm:$0xff] }
  0x13   :  { %302 = vmatpush1.bf16.msra.mxu1 %v709_v14 }
  0x14   :  { %622 = vmatpush3.bf16.msra.mxu0 %v710_v15  ;;  %303 = vmatprep.subr.bf16.mxu1 %v741_v0 }
  0x15   :  { %623 = vmatprep.subr.bf16.mxu0 %v711_v16 }
  0x17   :  { %304 = vmatpush1.bf16.msra.mxu1 %v712_v17 }
  0x18   :  { %624 = vmatpush3.bf16.msra.mxu0 %v713_v18  ;;  %305 = vmatprep.subr.bf16.mxu1 %v741_v0 }
  0x19   :  { %625 = vmatprep.subr.bf16.mxu0 %v714_v19 }
  0x1b   :  { %306 = vmatpush1.bf16.msra.mxu1 %v715_v20 }
  0x1c   :  { %626 = vmatpush3.bf16.msra.mxu0 %v716_v21  ;;  %307 = vmatprep.subr.bf16.mxu1 %v741_v0 }
  0x1d   :  { %627 = vmatprep.subr.bf16.mxu0 %v717_v23 }
  0x1f   :  { %308 = vmatpush1.bf16.msra.mxu1 %v718_v27 }
  0x20   :  { %628 = vmatpush3.bf16.msra.mxu0 %v719_v28  ;;  %323 = vmatprep.subr.bf16.mxu1 %v741_v0 }
  0x21   :  { %653 = vmatprep.subr.bf16.mxu0 %v742_v32 }
  0x23   :  { %286 = vmatmul.mubr.bf16.vlgmr.msra.gmra.mxu0 %v565_v30  ;;  %324 = vmatpush2.bf16.msra.mxu1 %v722_v29 }
  0x24   :  { %654 = vmatpush3.bf16.msra.mxu0 %v725_v31  ;;  %673 = vmatprep.subr.bf16.mxu1 %v742_v32 }
  0x25   :  { %655 = vmatprep.subr.bf16.mxu0 %v742_v32  ;;  %669 = vmatprep.mubr.msk.bf16.mxu0 %vm743_vm1, %v742_v32 }
  0x26   :  { %326 = vmatmul.mubr.bf16.vlgmr.msra.gmra.mxu1 %v567_v33 }
  0x27   :  { %689 = vmatprep.mubr.msk.bf16.mxu1 %vm743_vm1, %v742_v32  ;;  %674 = vmatpush3.bf16.msra.mxu1 %v733_v41 }
  0x28   :  { %656 = vmatpush3.bf16.msra.mxu0 %v726_v34  ;;  %675 = vmatprep.subr.bf16.mxu1 %v742_v32 }
  0x29   :  { %657 = vmatprep.subr.bf16.mxu0 %v742_v32 }
  0x2b   :  { %676 = vmatpush3.bf16.msra.mxu1 %v734_v42 }
  0x2c   :  { %658 = vmatpush3.bf16.msra.mxu0 %v727_v35  ;;  %677 = vmatprep.subr.bf16.mxu1 %v742_v32 }
  0x2d   :  { %659 = vmatprep.subr.bf16.mxu0 %v742_v32 }
  0x2f   :  { %678 = vmatpush3.bf16.msra.mxu1 %v735_v43 }
  0x30   :  { %660 = vmatpush3.bf16.msra.mxu0 %v728_v36  ;;  %679 = vmatprep.subr.bf16.mxu1 %v742_v32 }
  0x31   :  { %661 = vmatprep.subr.bf16.mxu0 %v742_v32 }
  0x33   :  { %680 = vmatpush3.bf16.msra.mxu1 %v736_v44 }
  0x34   :  { %662 = vmatpush3.bf16.msra.mxu0 %v729_v37  ;;  %681 = vmatprep.subr.bf16.mxu1 %v742_v32 }
  0x35   :  { %663 = vmatprep.subr.bf16.mxu0 %v742_v32 }
  0x37   :  { %682 = vmatpush3.bf16.msra.mxu1 %v737_v45 }
  0x38   :  { %664 = vmatpush3.bf16.msra.mxu0 %v730_v38  ;;  %683 = vmatprep.subr.bf16.mxu1 %v742_v32 }
  0x39   :  { %665 = vmatprep.subr.bf16.mxu0 %v742_v32 }
  0x3b   :  { %684 = vmatpush3.bf16.msra.mxu1 %v738_v46 }
  0x3c   :  { %666 = vmatpush3.bf16.msra.mxu0 %v731_v39  ;;  %685 = vmatprep.subr.bf16.mxu1 %v742_v32 }
  0x3d   :  { %667 = vmatprep.subr.bf16.mxu0 %v742_v32 }
  0x3f   :  { %686 = vmatpush3.bf16.msra.mxu1 %v739_v61 }
  0x40   :  { %668 = vmatpush3.bf16.msra.mxu0 %v732_v40  ;;  %687 = vmatprep.subr.bf16.mxu1 %v742_v32 }
  0x43   :  { %688 = vmatpush3.bf16.msra.mxu1 %v740_v62 }
  0xe3   :  { %v629_v47 = vpop.f32.mrf.mxu0 }
  0xe5   :  { %v630_v48 = vpop.f32.mrf.mxu0 }
  0xe6   :  { %v631_v50 = vadd.f32 %v630_v48, %v629_v47  ;;  %v327_v51 = vpop.f32.mrf.mxu1 }
  0xe7   :  { %v632_v52 = vpop.f32.mrf.mxu0 }
  0xe8   :  { %v288_v53 = vadd.f32 %v631_v50, %v564_v49  ;;  %v329_v54 = vpop.f32.mrf.mxu1 }
  0xe9   :  { %v633_v55 = vpop.f32.mrf.mxu0 }
  0xea   :  { %v328_v56 = vadd.f32 %v327_v51, %v288_v53  ;;  %v330_v57 = vpop.f32.mrf.mxu1 }
  0xec   :  { %v333_v58 = vmax.f32 %v328_v56, 0.0  ;;  %v331_v59 = vpop.f32.mrf.mxu1 }
  0xee   :  { %v334_v60 = vpack.c.bf16 %v333_v58, %v333_v58 }
  0xf0   :  { %670 = vmatmul.mubr.bf16.vlgmr.msra.gmra.mxu0 %v334_v60 }
 0x1b0   :  { %v440_v0 = vpop.f32.mrf.mxu0 }
 0x1b1   :  { %v441_v1 = vadd.f32 %v595_v63, %v440_v0 }
 0x1b2   :  { %v671_v2 = vpop.f32.mrf.mxu0 }
 0x1b3   :  { %v446_v3 = vmax.f32 %v441_v1, 0.0 }
 0x1b4   :  { %v443_v4 = vpop.f32.mrf.mxu0 }
 0x1b5   :  { %v447_v5 = vpack.c.bf16 %v446_v3, %v446_v3 }
 0x1b6   :  { %v672_v6 = vpop.f32.mrf.mxu0 }
 0x1b7   :  { %690 = vmatmul.mubr.bf16.vlgmr.msra.gmra.mxu1 %v447_v5 }
 0x277   :  { %v553_v8 = vpop.f32.mrf.mxu1 }
 0x278   :  { %v554_v9 = vadd.f32 %v604_v7, %v553_v8 }
 0x279   :  { %v691_v10 = vpop.f32.mrf.mxu1 }
 0x27a   :  { %559 = vst [vmem:[%s959_s7] sm:$0xff] %v554_v9 }
 0x27b   :  { %v556_v11 = vpop.f32.mrf.mxu1 }
 0x27d   :  { %v692_v12 = vpop.f32.mrf.mxu1 }

</bundles_post_ra>
